<compile_context>
chip_gen: v7x
topology: tpu7x:2x2x1
jax: 0.10.0
libtpu: 0.0.40
codegen_flags: <defaults>
</compile_context>

<pallas_src>
import functools
import math

import jax
import jax.numpy as jnp
from jax.experimental import pallas as pl
from jax.experimental.pallas import tpu as pltpu


# ----------------------------------------------------------------------------
# Fused kernel: one grid step == one encoder layer (layer 0 also does the
# segment embedding + positional encoding). Everything stays in VMEM.
# ----------------------------------------------------------------------------
def _fused_encoder_kernel(
        xseg_ref, w_se_ref, b_se_ref, pe_ref, head_mask_ref,
        w_q_ref, w_k_ref, w_v_ref, b_q_ref, b_k_ref, b_v_ref,
        wo_ref, bo_ref, ln1_g_ref, ln1_b_ref,
        w1_ref, b1_ref, w2_ref, b2_ref, ln2_g_ref, ln2_b_ref,
        out_ref,
        x_ref,                       # VMEM scratch: resident activation
        *, S, N, H, Dh, eps, ffn_chunk):
    layer = pl.program_id(0)
    scale = 1.0 / math.sqrt(Dh)

    def mxu(a, b):
        # bf16 operands on the MXU, f32 accumulation.
        return jnp.dot(a.astype(jnp.bfloat16), b.astype(jnp.bfloat16),
                       preferred_element_type=jnp.float32)

    def layer_norm(h, g, b):
        mu = jnp.mean(h, axis=-1, keepdims=True)
        c = h - mu
        var = jnp.mean(c * c, axis=-1, keepdims=True)
        return c * jax.lax.rsqrt(var + eps) * g + b

    # ---- layer-0 prologue: segment embedding + positional encoding --------
    @pl.when(layer == 0)
    def _():
        emb = mxu(xseg_ref[...], w_se_ref[...]) + b_se_ref[...]
        x_ref[...] = emb + pe_ref[...]

    x = x_ref[...]                                   # (S*N, E) float32

    # ---- multi-head self-attention (seq axis = S, batch = N, heads = H) ---
    q = (mxu(x, w_q_ref[...]) + b_q_ref[...]) * scale
    k = mxu(x, w_k_ref[...]) + b_k_ref[...]
    v = mxu(x, w_v_ref[...]) + b_v_ref[...]

    # (E, E) block-diagonal 0/1 head-membership mask: summing q*k products
    # through it yields per-head scores replicated across each head's lanes.
    head_mask = head_mask_ref[...]

    q_s = [q[s * N:(s + 1) * N, :] for s in range(S)]
    k_s = [k[s * N:(s + 1) * N, :] for s in range(S)]
    v_s = [v[s * N:(s + 1) * N, :] for s in range(S)]

    # NOTE: S is the attention sequence length == the original batch size of
    # the module (small); static Python loops are intentional here.
    attn_blocks = []
    for sq in range(S):
        scores = [jnp.dot(q_s[sq] * k_s[sk], head_mask,
                          preferred_element_type=jnp.float32)      # (N, E)
                  for sk in range(S)]
        m = scores[0]
        for sk in range(1, S):
            m = jnp.maximum(m, scores[sk])
        exps = [jnp.exp(sc - m) for sc in scores]
        denom = exps[0]
        for sk in range(1, S):
            denom = denom + exps[sk]
        inv = 1.0 / denom
        o_blk = None
        for sk in range(S):
            term = (exps[sk] * inv) * v_s[sk]                       # (N, E)
            o_blk = term if o_blk is None else o_blk + term
        attn_blocks.append(o_blk)
    attn = jnp.concatenate(attn_blocks, axis=0)                     # (S*N, E)
    attn = mxu(attn, wo_ref[...]) + bo_ref[...]

    # ---- residual + LayerNorm 1 (post-LN) ----------------------------------
    h1 = layer_norm(x + attn, ln1_g_ref[...], ln1_b_ref[...])

    # ---- FFN: relu(h1 @ w1 + b1) @ w2 + b2, hidden kept on-chip ------------
    h1_bf = h1.astype(jnp.bfloat16)
    F = w1_ref.shape[-1]
    ffn = None
    for c in range(F // ffn_chunk):
        lo = c * ffn_chunk
        hid = jnp.dot(h1_bf,
                      w1_ref[:, lo:lo + ffn_chunk].astype(jnp.bfloat16),
                      preferred_element_type=jnp.float32)
        hid = jnp.maximum(hid + b1_ref[:, lo:lo + ffn_chunk], 0.0)
        part = jnp.dot(hid.astype(jnp.bfloat16),
                       w2_ref[lo:lo + ffn_chunk, :].astype(jnp.bfloat16),
                       preferred_element_type=jnp.float32)
        ffn = part if ffn is None else ffn + part
    ffn = ffn + b2_ref[...]

    # ---- residual + LayerNorm 2 --------------------------------------------
    x_new = layer_norm(h1 + ffn, ln2_g_ref[...], ln2_b_ref[...])
    x_ref[...] = x_new

    @pl.when(layer == pl.num_programs(0) - 1)
    def _():
        out_ref[...] = x_new.astype(out_ref.dtype)


# ----------------------------------------------------------------------------
# Wrapper: layout prep (row permutation, per-row PE) + single pallas_call.
# ----------------------------------------------------------------------------
def full_attention_encoder_forward(inputs, params, *, ffn_chunk=512):
    B, Dv, L = inputs.shape
    SL = params["segment_len"]
    E = params["embed_dim"]
    H = params["num_heads"]
    num_layers = params["num_layers"]
    NS = L // SL
    Dh = E // H
    S, N = B, NS * Dv                  # attention: seq = B, batch = NS*Dv
    rows = S * N
    F = params["w1"].shape[-1]
    if F % ffn_chunk != 0:
        ffn_chunk = F

    # Segment rows permuted up-front to the encoder's (b, ns, d) row order so
    # the '(b d) ns e -> b (ns d) e' rearrange never happens on activations.
    xseg = (inputs.reshape(B, Dv, NS, SL)
            .transpose(0, 2, 1, 3)
            .reshape(rows, SL))

    # Per-row positional encoding: pe[ns] for row = (b*NS + ns)*Dv + d.
    pe_rows = jnp.tile(jnp.repeat(params["pe"], Dv, axis=0), (B, 1))

    # Block-diagonal head-membership mask (E, E).
    head_mask = jnp.kron(jnp.eye(H, dtype=jnp.float32),
                         jnp.ones((Dh, Dh), jnp.float32))

    def const_spec(shape):
        return pl.BlockSpec(shape, lambda l: (0, 0))

    def layer_spec(shape):
        return pl.BlockSpec((None,) + shape, lambda l: (l, 0, 0))

    in_specs = [
        const_spec((rows, SL)),        # xseg
        const_spec((SL, E)),           # w_se
        const_spec((1, E)),            # b_se
        const_spec((rows, E)),         # pe_rows
        const_spec((E, E)),            # head_mask
        layer_spec((E, E)),            # w_q
        layer_spec((E, E)),            # w_k
        layer_spec((E, E)),            # w_v
        layer_spec((1, E)),            # b_q
        layer_spec((1, E)),            # b_k
        layer_spec((1, E)),            # b_v
        layer_spec((E, E)),            # wo
        layer_spec((1, E)),            # bo
        layer_spec((1, E)),            # ln1_g
        layer_spec((1, E)),            # ln1_b
        layer_spec((E, F)),            # w1
        layer_spec((1, F)),            # b1
        layer_spec((F, E)),            # w2
        layer_spec((1, E)),            # b2
        layer_spec((1, E)),            # ln2_g
        layer_spec((1, E)),            # ln2_b
    ]

    out = pl.pallas_call(
        functools.partial(_fused_encoder_kernel, S=S, N=N, H=H, Dh=Dh,
                          eps=1e-5, ffn_chunk=ffn_chunk),
        out_shape=jax.ShapeDtypeStruct((rows, E), jnp.float32),
        grid_spec=pltpu.PrefetchScalarGridSpec(
            num_scalar_prefetch=0,
            grid=(num_layers,),
            in_specs=in_specs,
            out_specs=pl.BlockSpec((rows, E), lambda l: (0, 0)),
            scratch_shapes=[pltpu.VMEM((rows, E), jnp.float32)],
        ),
        compiler_params=pltpu.CompilerParams(
            dimension_semantics=("arbitrary",),   # layers are sequential
        ),
    )(xseg, params["w_se"], params["b_se"], pe_rows, head_mask,
      params["w_q"], params["w_k"], params["w_v"],
      params["b_q"], params["b_k"], params["b_v"],
      params["wo"], params["bo"], params["ln1_g"], params["ln1_b"],
      params["w1"], params["b1"], params["w2"], params["b2"],
      params["ln2_g"], params["ln2_b"])

    return out.reshape(S, N, E)


# ----------------------------------------------------------------------------
# Parameters (stacked per-layer weights) + pure-JAX reference.
# ----------------------------------------------------------------------------
def make_pe(max_len, d_model):
    position = jnp.arange(max_len, dtype=jnp.float32)[:, None]
    div_term = jnp.exp(jnp.arange(0, d_model, 2, dtype=jnp.float32)
                       * (-math.log(10000.0) / d_model))
    pe = jnp.zeros((max_len, d_model), jnp.float32)
    pe = pe.at[:, 0::2].set(jnp.sin(position * div_term))
    pe = pe.at[:, 1::2].set(jnp.cos(position * div_term))
    return pe


def init_params(key, *, embed_dim, input_len, segment_len, num_heads=4,
                ffn_dim=2048, num_layers=2):
    E = embed_dim
    NS = input_len // segment_len
    assert input_len % segment_len == 0 and E % num_heads == 0
    keys = jax.random.split(key, 1 + num_layers)

    def uniform(k, shape, fan_in):
        bound = 1.0 / math.sqrt(fan_in)
        return jax.random.uniform(k, shape, jnp.float32, -bound, bound)

    k_se = jax.random.split(keys[0], 2)
    names = ("w_q", "w_k", "w_v", "b_q", "b_k", "b_v", "wo", "bo",
             "ln1_g", "ln1_b", "w1", "b1", "w2", "b2", "ln2_g", "ln2_b")
    per = {n: [] for n in names}
    for li in range(num_layers):
        lk = jax.random.split(keys[1 + li], 8)
        w_qkv = uniform(lk[0], (E, 3 * E), E)
        b_qkv = uniform(lk[1], (3 * E,), E)
        per["w_q"].append(w_qkv[:, :E])
        per["w_k"].append(w_qkv[:, E:2 * E])
        per["w_v"].append(w_qkv[:, 2 * E:])
        per["b_q"].append(b_qkv[:E].reshape(1, E))
        per["b_k"].append(b_qkv[E:2 * E].reshape(1, E))
        per["b_v"].append(b_qkv[2 * E:].reshape(1, E))
        per["wo"].append(uniform(lk[2], (E, E), E))
        per["bo"].append(uniform(lk[3], (E,), E).reshape(1, E))
        per["ln1_g"].append(jnp.ones((1, E), jnp.float32))
        per["ln1_b"].append(jnp.zeros((1, E), jnp.float32))
        per["w1"].append(uniform(lk[4], (E, ffn_dim), E))
        per["b1"].append(uniform(lk[5], (ffn_dim,), E).reshape(1, ffn_dim))
        per["w2"].append(uniform(lk[6], (ffn_dim, E), ffn_dim))
        per["b2"].append(uniform(lk[7], (E,), ffn_dim).reshape(1, E))
        per["ln2_g"].append(jnp.ones((1, E), jnp.float32))
        per["ln2_b"].append(jnp.zeros((1, E), jnp.float32))

    params = {
        "segment_len": segment_len,
        "embed_dim": E,
        "num_heads": num_heads,
        "num_layers": num_layers,
        "w_se": uniform(k_se[0], (segment_len, E), segment_len),
        "b_se": uniform(k_se[1], (E,), segment_len).reshape(1, E),
        "pe": make_pe(NS, E),
    }
    params.update({n: jnp.stack(v) for n, v in per.items()})
    return params


def _ln_ref(h, g, b, eps=1e-5):
    mu = jnp.mean(h, axis=-1, keepdims=True)
    c = h - mu
    var = jnp.mean(c * c, axis=-1, keepdims=True)
    return c * jax.lax.rsqrt(var + eps) * g + b


def reference_forward(inputs, params):
    """Pure-JAX reference mirroring the PyTorch eval() forward (bf16 MXU)."""
    B, Dv, L = inputs.shape
    SL = params["segment_len"]
    E = params["embed_dim"]
    H = params["num_heads"]
    NS = L // SL
    Dh = E // H

    def mm(a, b):
        return jnp.dot(a.astype(jnp.bfloat16), b.astype(jnp.bfloat16),
                       preferred_element_type=jnp.float32)

    x_seg = inputs.reshape(B * Dv * NS, SL)
    emb = mm(x_seg, params["w_se"]) + params["b_se"]
    emb = emb.reshape(B * Dv, NS, E) + params["pe"][None]
    emb = emb.reshape(B, Dv, NS, E)
    x = jnp.transpose(emb, (0, 2, 1, 3)).reshape(B, NS * Dv, E)

    S, N = B, NS * Dv
    scale = 1.0 / math.sqrt(Dh)

    for li in range(params["num_layers"]):
        rows = x.reshape(S * N, E)
        q = mm(rows, params["w_q"][li]) + params["b_q"][li]
        k = mm(rows, params["w_k"][li]) + params["b_k"][li]
        v = mm(rows, params["w_v"][li]) + params["b_v"][li]

        def to_heads(t):
            return (t.reshape(S, N, H, Dh).transpose(1, 2, 0, 3)
                    .reshape(N * H, S, Dh))

        qh, kh, vh = to_heads(q), to_heads(k), to_heads(v)
        s = jnp.einsum("bqd,bkd->bqk", qh * scale, kh)
        p = jax.nn.softmax(s, axis=-1)
        oh = jnp.einsum("bqk,bkd->bqd", p, vh)
        attn = (oh.reshape(N, H, S, Dh).transpose(2, 0, 1, 3)
                .reshape(S * N, E))
        attn = mm(attn, params["wo"][li]) + params["bo"][li]

        h1 = _ln_ref(rows + attn, params["ln1_g"][li], params["ln1_b"][li])
        ff = jnp.maximum(mm(h1, params["w1"][li]) + params["b1"][li], 0.0)
        ff = mm(ff, params["w2"][li]) + params["b2"][li]
        x = _ln_ref(h1 + ff, params["ln2_g"][li], params["ln2_b"][li]
                    ).reshape(S, N, E)
    return x


if __name__ == "__main__":
    # batch=2, num_vars=4, input_len=16, segment_len=8, embedding_dim=32
    B, Dv, L = 2, 4, 16
    SL, E, H = 8, 32, 4
    NS = L // SL

    key = jax.random.PRNGKey(0)
    k_param, k_x = jax.random.split(key)
    params = init_params(k_param, embed_dim=E, input_len=L, segment_len=SL,
                         num_heads=H, ffn_dim=2048, num_layers=2)
    x = jax.random.normal(k_x, (B, Dv, L), dtype=jnp.float32)

    fwd = jax.jit(lambda inp: full_attention_encoder_forward(inp, params))
    y = jax.block_until_ready(fwd(x))

    y_ref = reference_forward(x, params)

    assert y.shape == (B, NS * Dv, E), y.shape
    max_err = float(jnp.max(jnp.abs(y - y_ref)))
    assert max_err < 2e-2, max_err
    print("KERNEL_OK")
</pallas_src>

<mosaic_0001>
module attributes {stable_mosaic.version = 11 : i64} {
  func.func @_fused_encoder_kernel(%arg0: i32, %arg1: memref<16x8xf32, #tpu.memory_space<vmem>>, %arg2: memref<8x32xf32, #tpu.memory_space<vmem>>, %arg3: memref<1x32xf32, #tpu.memory_space<vmem>>, %arg4: memref<16x32xf32, #tpu.memory_space<vmem>>, %arg5: memref<32x32xf32, #tpu.memory_space<vmem>>, %arg6: memref<1x32x32xf32, #tpu.memory_space<vmem>>, %arg7: memref<1x32x32xf32, #tpu.memory_space<vmem>>, %arg8: memref<1x32x32xf32, #tpu.memory_space<vmem>>, %arg9: memref<1x1x32xf32, #tpu.memory_space<vmem>>, %arg10: memref<1x1x32xf32, #tpu.memory_space<vmem>>, %arg11: memref<1x1x32xf32, #tpu.memory_space<vmem>>, %arg12: memref<1x32x32xf32, #tpu.memory_space<vmem>>, %arg13: memref<1x1x32xf32, #tpu.memory_space<vmem>>, %arg14: memref<1x1x32xf32, #tpu.memory_space<vmem>>, %arg15: memref<1x1x32xf32, #tpu.memory_space<vmem>>, %arg16: memref<1x32x2048xf32, #tpu.memory_space<vmem>>, %arg17: memref<1x1x2048xf32, #tpu.memory_space<vmem>>, %arg18: memref<1x2048x32xf32, #tpu.memory_space<vmem>>, %arg19: memref<1x1x32xf32, #tpu.memory_space<vmem>>, %arg20: memref<1x1x32xf32, #tpu.memory_space<vmem>>, %arg21: memref<1x1x32xf32, #tpu.memory_space<vmem>>, %arg22: memref<16x32xf32, #tpu.memory_space<vmem>>, %arg23: memref<16x32xf32, #tpu.memory_space<vmem>>) attributes {dimension_semantics = [#tpu.dimension_semantics<arbitrary>], iteration_bounds = array<i64: 2>, scalar_prefetch = 0 : i64, scratch_operands = 1 : i64, tpu.core_type = #tpu.core_type<tc>, window_params = [{pipeline_mode = #tpu.pipeline_mode<synchronous>, transform_indices = @transform_0, window_bounds = array<i64: 16, 8>}, {pipeline_mode = #tpu.pipeline_mode<synchronous>, transform_indices = @transform_1, window_bounds = array<i64: 8, 32>}, {pipeline_mode = #tpu.pipeline_mode<synchronous>, transform_indices = @transform_2, window_bounds = array<i64: 1, 32>}, {pipeline_mode = #tpu.pipeline_mode<synchronous>, transform_indices = @transform_3, window_bounds = array<i64: 16, 32>}, {pipeline_mode = #tpu.pipeline_mode<synchronous>, transform_indices = @transform_4, window_bounds = array<i64: 32, 32>}, {transform_indices = @transform_5, window_bounds = array<i64: 1, 32, 32>}, {transform_indices = @transform_6, window_bounds = array<i64: 1, 32, 32>}, {transform_indices = @transform_7, window_bounds = array<i64: 1, 32, 32>}, {transform_indices = @transform_8, window_bounds = array<i64: 1, 1, 32>}, {transform_indices = @transform_9, window_bounds = array<i64: 1, 1, 32>}, {transform_indices = @transform_10, window_bounds = array<i64: 1, 1, 32>}, {transform_indices = @transform_11, window_bounds = array<i64: 1, 32, 32>}, {transform_indices = @transform_12, window_bounds = array<i64: 1, 1, 32>}, {transform_indices = @transform_13, window_bounds = array<i64: 1, 1, 32>}, {transform_indices = @transform_14, window_bounds = array<i64: 1, 1, 32>}, {transform_indices = @transform_15, window_bounds = array<i64: 1, 32, 2048>}, {transform_indices = @transform_16, window_bounds = array<i64: 1, 1, 2048>}, {transform_indices = @transform_17, window_bounds = array<i64: 1, 2048, 32>}, {transform_indices = @transform_18, window_bounds = array<i64: 1, 1, 32>}, {transform_indices = @transform_19, window_bounds = array<i64: 1, 1, 32>}, {transform_indices = @transform_20, window_bounds = array<i64: 1, 1, 32>}, {pipeline_mode = #tpu.pipeline_mode<synchronous>, transform_indices = @transform_21, window_bounds = array<i64: 16, 32>}]} {
    %c0_i32 = arith.constant 0 : i32
    %0 = arith.cmpi eq, %arg0, %c0_i32 : i32
    %1 = arith.extui %0 : i1 to i32
    %c0_i32_0 = arith.constant 0 : i32
    %2 = arith.cmpi ne, %1, %c0_i32_0 : i32
    scf.if %2 {
      %c0_111 = arith.constant 0 : index
      %c0_112 = arith.constant 0 : index
      %206 = vector.load %arg1[%c0_111, %c0_112] : memref<16x8xf32, #tpu.memory_space<vmem>>, vector<16x8xf32>
      %c0_113 = arith.constant 0 : index
      %c0_114 = arith.constant 0 : index
      %207 = vector.load %arg2[%c0_113, %c0_114] : memref<8x32xf32, #tpu.memory_space<vmem>>, vector<8x32xf32>
      %208 = arith.truncf %206 : vector<16x8xf32> to vector<16x8xbf16>
      %209 = arith.truncf %207 : vector<8x32xf32> to vector<8x32xbf16>
      %cst_115 = arith.constant dense<0.000000e+00> : vector<16x32xf32>
      %210 = tpu.matmul %208, %209, %cst_115 {dimension_numbers = #tpu.dot_dimension_numbers<[1], [0], [0], [1], [0, 0, 1, 1], [], []>} : vector<16x8xbf16>, vector<8x32xbf16>, vector<16x32xf32> -> vector<16x32xf32>
      %c0_116 = arith.constant 0 : index
      %c0_117 = arith.constant 0 : index
      %211 = vector.load %arg3[%c0_116, %c0_117] : memref<1x32xf32, #tpu.memory_space<vmem>>, vector<1x32xf32>
      %212 = vector.broadcast %211 : vector<1x32xf32> to vector<16x32xf32>
      %213 = arith.addf %210, %212 : vector<16x32xf32>
      %c0_118 = arith.constant 0 : index
      %c0_119 = arith.constant 0 : index
      %214 = vector.load %arg4[%c0_118, %c0_119] : memref<16x32xf32, #tpu.memory_space<vmem>>, vector<16x32xf32>
      %215 = arith.addf %213, %214 : vector<16x32xf32>
      %c0_120 = arith.constant 0 : index
      %c0_121 = arith.constant 0 : index
      %216 = vector.load %arg23[%c0_120, %c0_121] : memref<16x32xf32, #tpu.memory_space<vmem>>, vector<16x32xf32>
      tpu.vector_store %arg23[%c0_120, %c0_121], %215 {strides = array<i32>} : memref<16x32xf32, #tpu.memory_space<vmem>>, vector<16x32xf32>,
    } else {
    }
    %c0 = arith.constant 0 : index
    %c0_1 = arith.constant 0 : index
    %3 = vector.load %arg23[%c0, %c0_1] : memref<16x32xf32, #tpu.memory_space<vmem>>, vector<16x32xf32>
    %c0_2 = arith.constant 0 : index
    %c0_3 = arith.constant 0 : index
    %c0_4 = arith.constant 0 : index
    %4 = vector.load %arg6[%c0_2, %c0_3, %c0_4] : memref<1x32x32xf32, #tpu.memory_space<vmem>>, vector<1x32x32xf32>
    %5 = vector.shape_cast %4 : vector<1x32x32xf32> to vector<32x32xf32>
    %6 = arith.truncf %3 : vector<16x32xf32> to vector<16x32xbf16>
    %7 = arith.truncf %5 : vector<32x32xf32> to vector<32x32xbf16>
    %cst = arith.constant dense<0.000000e+00> : vector<16x32xf32>
    %8 = tpu.matmul %6, %7, %cst {dimension_numbers = #tpu.dot_dimension_numbers<[1], [0], [0], [1], [0, 0, 1, 1], [], []>} : vector<16x32xbf16>, vector<32x32xbf16>, vector<16x32xf32> -> vector<16x32xf32>
    %c0_5 = arith.constant 0 : index
    %c0_6 = arith.constant 0 : index
    %c0_7 = arith.constant 0 : index
    %9 = vector.load %arg9[%c0_5, %c0_6, %c0_7] : memref<1x1x32xf32, #tpu.memory_space<vmem>>, vector<1x1x32xf32>
    %10 = vector.shape_cast %9 : vector<1x1x32xf32> to vector<1x32xf32>
    %11 = vector.broadcast %10 : vector<1x32xf32> to vector<16x32xf32>
    %12 = arith.addf %8, %11 : vector<16x32xf32>
    %cst_8 = arith.constant 0.353553385 : f32
    %13 = vector.broadcast %cst_8 : f32 to vector<16x32xf32>
    %14 = arith.mulf %12, %13 : vector<16x32xf32>
    %c0_9 = arith.constant 0 : index
    %c0_10 = arith.constant 0 : index
    %c0_11 = arith.constant 0 : index
    %15 = vector.load %arg7[%c0_9, %c0_10, %c0_11] : memref<1x32x32xf32, #tpu.memory_space<vmem>>, vector<1x32x32xf32>
    %16 = vector.shape_cast %15 : vector<1x32x32xf32> to vector<32x32xf32>
    %17 = arith.truncf %3 : vector<16x32xf32> to vector<16x32xbf16>
    %18 = arith.truncf %16 : vector<32x32xf32> to vector<32x32xbf16>
    %cst_12 = arith.constant dense<0.000000e+00> : vector<16x32xf32>
    %19 = tpu.matmul %17, %18, %cst_12 {dimension_numbers = #tpu.dot_dimension_numbers<[1], [0], [0], [1], [0, 0, 1, 1], [], []>} : vector<16x32xbf16>, vector<32x32xbf16>, vector<16x32xf32> -> vector<16x32xf32>
    %c0_13 = arith.constant 0 : index
    %c0_14 = arith.constant 0 : index
    %c0_15 = arith.constant 0 : index
    %20 = vector.load %arg10[%c0_13, %c0_14, %c0_15] : memref<1x1x32xf32, #tpu.memory_space<vmem>>, vector<1x1x32xf32>
    %21 = vector.shape_cast %20 : vector<1x1x32xf32> to vector<1x32xf32>
    %22 = vector.broadcast %21 : vector<1x32xf32> to vector<16x32xf32>
    %23 = arith.addf %19, %22 : vector<16x32xf32>
    %c0_16 = arith.constant 0 : index
    %c0_17 = arith.constant 0 : index
    %c0_18 = arith.constant 0 : index
    %24 = vector.load %arg8[%c0_16, %c0_17, %c0_18] : memref<1x32x32xf32, #tpu.memory_space<vmem>>, vector<1x32x32xf32>
    %25 = vector.shape_cast %24 : vector<1x32x32xf32> to vector<32x32xf32>
    %26 = arith.truncf %3 : vector<16x32xf32> to vector<16x32xbf16>
    %27 = arith.truncf %25 : vector<32x32xf32> to vector<32x32xbf16>
    %cst_19 = arith.constant dense<0.000000e+00> : vector<16x32xf32>
    %28 = tpu.matmul %26, %27, %cst_19 {dimension_numbers = #tpu.dot_dimension_numbers<[1], [0], [0], [1], [0, 0, 1, 1], [], []>} : vector<16x32xbf16>, vector<32x32xbf16>, vector<16x32xf32> -> vector<16x32xf32>
    %c0_20 = arith.constant 0 : index
    %c0_21 = arith.constant 0 : index
    %c0_22 = arith.constant 0 : index
    %29 = vector.load %arg11[%c0_20, %c0_21, %c0_22] : memref<1x1x32xf32, #tpu.memory_space<vmem>>, vector<1x1x32xf32>
    %30 = vector.shape_cast %29 : vector<1x1x32xf32> to vector<1x32xf32>
    %31 = vector.broadcast %30 : vector<1x32xf32> to vector<16x32xf32>
    %32 = arith.addf %28, %31 : vector<16x32xf32>
    %c0_23 = arith.constant 0 : index
    %c0_24 = arith.constant 0 : index
    %33 = vector.load %arg5[%c0_23, %c0_24] : memref<32x32xf32, #tpu.memory_space<vmem>>, vector<32x32xf32>
    %34 = vector.extract_strided_slice %14 {offsets = [0, 0], sizes = [8, 32], strides = [1, 1]} : vector<16x32xf32> to vector<8x32xf32>
    %35 = vector.extract_strided_slice %14 {offsets = [8, 0], sizes = [8, 32], strides = [1, 1]} : vector<16x32xf32> to vector<8x32xf32>
    %36 = vector.extract_strided_slice %23 {offsets = [0, 0], sizes = [8, 32], strides = [1, 1]} : vector<16x32xf32> to vector<8x32xf32>
    %37 = vector.extract_strided_slice %23 {offsets = [8, 0], sizes = [8, 32], strides = [1, 1]} : vector<16x32xf32> to vector<8x32xf32>
    %38 = vector.extract_strided_slice %32 {offsets = [0, 0], sizes = [8, 32], strides = [1, 1]} : vector<16x32xf32> to vector<8x32xf32>
    %39 = vector.extract_strided_slice %32 {offsets = [8, 0], sizes = [8, 32], strides = [1, 1]} : vector<16x32xf32> to vector<8x32xf32>
    %40 = arith.mulf %34, %36 : vector<8x32xf32>
    %cst_25 = arith.constant dense<0.000000e+00> : vector<8x32xf32>
    %41 = tpu.matmul %40, %33, %cst_25 {dimension_numbers = #tpu.dot_dimension_numbers<[1], [0], [0], [1], [0, 0, 1, 1], [], []>} : vector<8x32xf32>, vector<32x32xf32>, vector<8x32xf32> -> vector<8x32xf32>
    %42 = arith.mulf %34, %37 : vector<8x32xf32>
    %cst_26 = arith.constant dense<0.000000e+00> : vector<8x32xf32>
    %43 = tpu.matmul %42, %33, %cst_26 {dimension_numbers = #tpu.dot_dimension_numbers<[1], [0], [0], [1], [0, 0, 1, 1], [], []>} : vector<8x32xf32>, vector<32x32xf32>, vector<8x32xf32> -> vector<8x32xf32>
    %44 = arith.maximumf %41, %43 : vector<8x32xf32>
    %45 = arith.subf %41, %44 : vector<8x32xf32>
    %46 = math.exp %45 : vector<8x32xf32>
    %47 = arith.subf %43, %44 : vector<8x32xf32>
    %48 = math.exp %47 : vector<8x32xf32>
    %49 = arith.addf %46, %48 : vector<8x32xf32>
    %cst_27 = arith.constant 1.000000e+00 : f32
    %50 = vector.broadcast %cst_27 : f32 to vector<8x32xf32>
    %51 = arith.divf %50, %49 : vector<8x32xf32>
    %52 = arith.mulf %46, %51 : vector<8x32xf32>
    %53 = arith.mulf %52, %38 : vector<8x32xf32>
    %54 = arith.mulf %48, %51 : vector<8x32xf32>
    %55 = arith.mulf %54, %39 : vector<8x32xf32>
    %56 = arith.addf %53, %55 : vector<8x32xf32>
    %57 = arith.mulf %35, %36 : vector<8x32xf32>
    %cst_28 = arith.constant dense<0.000000e+00> : vector<8x32xf32>
    %58 = tpu.matmul %57, %33, %cst_28 {dimension_numbers = #tpu.dot_dimension_numbers<[1], [0], [0], [1], [0, 0, 1, 1], [], []>} : vector<8x32xf32>, vector<32x32xf32>, vector<8x32xf32> -> vector<8x32xf32>
    %59 = arith.mulf %35, %37 : vector<8x32xf32>
    %cst_29 = arith.constant dense<0.000000e+00> : vector<8x32xf32>
    %60 = tpu.matmul %59, %33, %cst_29 {dimension_numbers = #tpu.dot_dimension_numbers<[1], [0], [0], [1], [0, 0, 1, 1], [], []>} : vector<8x32xf32>, vector<32x32xf32>, vector<8x32xf32> -> vector<8x32xf32>
    %61 = arith.maximumf %58, %60 : vector<8x32xf32>
    %62 = arith.subf %58, %61 : vector<8x32xf32>
    %63 = math.exp %62 : vector<8x32xf32>
    %64 = arith.subf %60, %61 : vector<8x32xf32>
    %65 = math.exp %64 : vector<8x32xf32>
    %66 = arith.addf %63, %65 : vector<8x32xf32>
    %cst_30 = arith.constant 1.000000e+00 : f32
    %67 = vector.broadcast %cst_30 : f32 to vector<8x32xf32>
    %68 = arith.divf %67, %66 : vector<8x32xf32>
    %69 = arith.mulf %63, %68 : vector<8x32xf32>
    %70 = arith.mulf %69, %38 : vector<8x32xf32>
    %71 = arith.mulf %65, %68 : vector<8x32xf32>
    %72 = arith.mulf %71, %39 : vector<8x32xf32>
    %73 = arith.addf %70, %72 : vector<8x32xf32>
    %74 = tpu.concatenate %56, %73 in 0 : vector<8x32xf32>, vector<8x32xf32> -> vector<16x32xf32>
    %c0_31 = arith.constant 0 : index
    %c0_32 = arith.constant 0 : index
    %c0_33 = arith.constant 0 : index
    %75 = vector.load %arg12[%c0_31, %c0_32, %c0_33] : memref<1x32x32xf32, #tpu.memory_space<vmem>>, vector<1x32x32xf32>
    %76 = vector.shape_cast %75 : vector<1x32x32xf32> to vector<32x32xf32>
    %77 = arith.truncf %74 : vector<16x32xf32> to vector<16x32xbf16>
    %78 = arith.truncf %76 : vector<32x32xf32> to vector<32x32xbf16>
    %cst_34 = arith.constant dense<0.000000e+00> : vector<16x32xf32>
    %79 = tpu.matmul %77, %78, %cst_34 {dimension_numbers = #tpu.dot_dimension_numbers<[1], [0], [0], [1], [0, 0, 1, 1], [], []>} : vector<16x32xbf16>, vector<32x32xbf16>, vector<16x32xf32> -> vector<16x32xf32>
    %c0_35 = arith.constant 0 : index
    %c0_36 = arith.constant 0 : index
    %c0_37 = arith.constant 0 : index
    %80 = vector.load %arg13[%c0_35, %c0_36, %c0_37] : memref<1x1x32xf32, #tpu.memory_space<vmem>>, vector<1x1x32xf32>
    %81 = vector.shape_cast %80 : vector<1x1x32xf32> to vector<1x32xf32>
    %82 = vector.broadcast %81 : vector<1x32xf32> to vector<16x32xf32>
    %83 = arith.addf %79, %82 : vector<16x32xf32>
    %84 = arith.addf %3, %83 : vector<16x32xf32>
    %c0_38 = arith.constant 0 : index
    %c0_39 = arith.constant 0 : index
    %c0_40 = arith.constant 0 : index
    %85 = vector.load %arg14[%c0_38, %c0_39, %c0_40] : memref<1x1x32xf32, #tpu.memory_space<vmem>>, vector<1x1x32xf32>
    %86 = vector.shape_cast %85 : vector<1x1x32xf32> to vector<1x32xf32>
    %c0_41 = arith.constant 0 : index
    %c0_42 = arith.constant 0 : index
    %c0_43 = arith.constant 0 : index
    %87 = vector.load %arg15[%c0_41, %c0_42, %c0_43] : memref<1x1x32xf32, #tpu.memory_space<vmem>>, vector<1x1x32xf32>
    %88 = vector.shape_cast %87 : vector<1x1x32xf32> to vector<1x32xf32>
    %cst_44 = arith.constant dense<0.000000e+00> : vector<16xf32>
    %89 = vector.multi_reduction <add>, %84, %cst_44 [1] : vector<16x32xf32> to vector<16xf32>
    %90 = vector.shape_cast %89 : vector<16xf32> to vector<16x1xf32>
    %cst_45 = arith.constant 3.200000e+01 : f32
    %91 = vector.broadcast %cst_45 : f32 to vector<16x1xf32>
    %92 = arith.divf %90, %91 : vector<16x1xf32>
    %93 = vector.broadcast %92 : vector<16x1xf32> to vector<16x32xf32>
    %94 = arith.subf %84, %93 : vector<16x32xf32>
    %95 = arith.mulf %94, %94 : vector<16x32xf32>
    %cst_46 = arith.constant dense<0.000000e+00> : vector<16xf32>
    %96 = vector.multi_reduction <add>, %95, %cst_46 [1] : vector<16x32xf32> to vector<16xf32>
    %97 = vector.shape_cast %96 : vector<16xf32> to vector<16x1xf32>
    %cst_47 = arith.constant 3.200000e+01 : f32
    %98 = vector.broadcast %cst_47 : f32 to vector<16x1xf32>
    %99 = arith.divf %97, %98 : vector<16x1xf32>
    %cst_48 = arith.constant 9.99999974E-6 : f32
    %100 = vector.broadcast %cst_48 : f32 to vector<16x1xf32>
    %101 = arith.addf %99, %100 : vector<16x1xf32>
    %102 = math.rsqrt %101 : vector<16x1xf32>
    %103 = vector.broadcast %102 : vector<16x1xf32> to vector<16x32xf32>
    %104 = arith.mulf %94, %103 : vector<16x32xf32>
    %105 = vector.broadcast %86 : vector<1x32xf32> to vector<16x32xf32>
    %106 = arith.mulf %104, %105 : vector<16x32xf32>
    %107 = vector.broadcast %88 : vector<1x32xf32> to vector<16x32xf32>
    %108 = arith.addf %106, %107 : vector<16x32xf32>
    %109 = arith.truncf %108 : vector<16x32xf32> to vector<16x32xbf16>
    %c0_49 = arith.constant 0 : index
    %c0_50 = arith.constant 0 : index
    %c0_51 = arith.constant 0 : index
    %110 = vector.load %arg16[%c0_49, %c0_50, %c0_51] : memref<1x32x2048xf32, #tpu.memory_space<vmem>>, vector<1x32x512xf32>
    %111 = vector.shape_cast %110 : vector<1x32x512xf32> to vector<32x512xf32>
    %112 = arith.truncf %111 : vector<32x512xf32> to vector<32x512xbf16>
    %cst_52 = arith.constant dense<0.000000e+00> : vector<16x512xf32>
    %113 = tpu.matmul %109, %112, %cst_52 {dimension_numbers = #tpu.dot_dimension_numbers<[1], [0], [0], [1], [0, 0, 1, 1], [], []>} : vector<16x32xbf16>, vector<32x512xbf16>, vector<16x512xf32> -> vector<16x512xf32>
    %c0_53 = arith.constant 0 : index
    %c0_54 = arith.constant 0 : index
    %c0_55 = arith.constant 0 : index
    %114 = vector.load %arg17[%c0_53, %c0_54, %c0_55] : memref<1x1x2048xf32, #tpu.memory_space<vmem>>, vector<1x1x512xf32>
    %115 = vector.shape_cast %114 : vector<1x1x512xf32> to vector<1x512xf32>
    %116 = vector.broadcast %115 : vector<1x512xf32> to vector<16x512xf32>
    %117 = arith.addf %113, %116 : vector<16x512xf32>
    %cst_56 = arith.constant 0.000000e+00 : f32
    %118 = vector.broadcast %cst_56 : f32 to vector<16x512xf32>
    %119 = arith.maximumf %117, %118 : vector<16x512xf32>
    %120 = arith.truncf %119 : vector<16x512xf32> to vector<16x512xbf16>
    %c0_57 = arith.constant 0 : index
    %c0_58 = arith.constant 0 : index
    %c0_59 = arith.constant 0 : index
    %121 = vector.load %arg18[%c0_57, %c0_58, %c0_59] : memref<1x2048x32xf32, #tpu.memory_space<vmem>>, vector<1x512x32xf32>
    %122 = vector.shape_cast %121 : vector<1x512x32xf32> to vector<512x32xf32>
    %123 = arith.truncf %122 : vector<512x32xf32> to vector<512x32xbf16>
    %cst_60 = arith.constant dense<0.000000e+00> : vector<16x32xf32>
    %124 = tpu.matmul %120, %123, %cst_60 {dimension_numbers = #tpu.dot_dimension_numbers<[1], [0], [0], [1], [0, 0, 1, 1], [], []>} : vector<16x512xbf16>, vector<512x32xbf16>, vector<16x32xf32> -> vector<16x32xf32>
    %c0_61 = arith.constant 0 : index
    %c0_62 = arith.constant 0 : index
    %c512 = arith.constant 512 : index
    %125 = vector.load %arg16[%c0_61, %c0_62, %c512] : memref<1x32x2048xf32, #tpu.memory_space<vmem>>, vector<1x32x512xf32>
    %126 = vector.shape_cast %125 : vector<1x32x512xf32> to vector<32x512xf32>
    %127 = arith.truncf %126 : vector<32x512xf32> to vector<32x512xbf16>
    %cst_63 = arith.constant dense<0.000000e+00> : vector<16x512xf32>
    %128 = tpu.matmul %109, %127, %cst_63 {dimension_numbers = #tpu.dot_dimension_numbers<[1], [0], [0], [1], [0, 0, 1, 1], [], []>} : vector<16x32xbf16>, vector<32x512xbf16>, vector<16x512xf32> -> vector<16x512xf32>
    %c0_64 = arith.constant 0 : index
    %c0_65 = arith.constant 0 : index
    %c512_66 = arith.constant 512 : index
    %129 = vector.load %arg17[%c0_64, %c0_65, %c512_66] : memref<1x1x2048xf32, #tpu.memory_space<vmem>>, vector<1x1x512xf32>
    %130 = vector.shape_cast %129 : vector<1x1x512xf32> to vector<1x512xf32>
    %131 = vector.broadcast %130 : vector<1x512xf32> to vector<16x512xf32>
    %132 = arith.addf %128, %131 : vector<16x512xf32>
    %cst_67 = arith.constant 0.000000e+00 : f32
    %133 = vector.broadcast %cst_67 : f32 to vector<16x512xf32>
    %134 = arith.maximumf %132, %133 : vector<16x512xf32>
    %135 = arith.truncf %134 : vector<16x512xf32> to vector<16x512xbf16>
    %c0_68 = arith.constant 0 : index
    %c512_69 = arith.constant 512 : index
    %c0_70 = arith.constant 0 : index
    %136 = vector.load %arg18[%c0_68, %c512_69, %c0_70] : memref<1x2048x32xf32, #tpu.memory_space<vmem>>, vector<1x512x32xf32>
    %137 = vector.shape_cast %136 : vector<1x512x32xf32> to vector<512x32xf32>
    %138 = arith.truncf %137 : vector<512x32xf32> to vector<512x32xbf16>
    %cst_71 = arith.constant dense<0.000000e+00> : vector<16x32xf32>
    %139 = tpu.matmul %135, %138, %cst_71 {dimension_numbers = #tpu.dot_dimension_numbers<[1], [0], [0], [1], [0, 0, 1, 1], [], []>} : vector<16x512xbf16>, vector<512x32xbf16>, vector<16x32xf32> -> vector<16x32xf32>
    %140 = arith.addf %124, %139 : vector<16x32xf32>
    %c0_72 = arith.constant 0 : index
    %c0_73 = arith.constant 0 : index
    %c1024 = arith.constant 1024 : index
    %141 = vector.load %arg16[%c0_72, %c0_73, %c1024] : memref<1x32x2048xf32, #tpu.memory_space<vmem>>, vector<1x32x512xf32>
    %142 = vector.shape_cast %141 : vector<1x32x512xf32> to vector<32x512xf32>
    %143 = arith.truncf %142 : vector<32x512xf32> to vector<32x512xbf16>
    %cst_74 = arith.constant dense<0.000000e+00> : vector<16x512xf32>
    %144 = tpu.matmul %109, %143, %cst_74 {dimension_numbers = #tpu.dot_dimension_numbers<[1], [0], [0], [1], [0, 0, 1, 1], [], []>} : vector<16x32xbf16>, vector<32x512xbf16>, vector<16x512xf32> -> vector<16x512xf32>
    %c0_75 = arith.constant 0 : index
    %c0_76 = arith.constant 0 : index
    %c1024_77 = arith.constant 1024 : index
    %145 = vector.load %arg17[%c0_75, %c0_76, %c1024_77] : memref<1x1x2048xf32, #tpu.memory_space<vmem>>, vector<1x1x512xf32>
    %146 = vector.shape_cast %145 : vector<1x1x512xf32> to vector<1x512xf32>
    %147 = vector.broadcast %146 : vector<1x512xf32> to vector<16x512xf32>
    %148 = arith.addf %144, %147 : vector<16x512xf32>
    %cst_78 = arith.constant 0.000000e+00 : f32
    %149 = vector.broadcast %cst_78 : f32 to vector<16x512xf32>
    %150 = arith.maximumf %148, %149 : vector<16x512xf32>
    %151 = arith.truncf %150 : vector<16x512xf32> to vector<16x512xbf16>
    %c0_79 = arith.constant 0 : index
    %c1024_80 = arith.constant 1024 : index
    %c0_81 = arith.constant 0 : index
    %152 = vector.load %arg18[%c0_79, %c1024_80, %c0_81] : memref<1x2048x32xf32, #tpu.memory_space<vmem>>, vector<1x512x32xf32>
    %153 = vector.shape_cast %152 : vector<1x512x32xf32> to vector<512x32xf32>
    %154 = arith.truncf %153 : vector<512x32xf32> to vector<512x32xbf16>
    %cst_82 = arith.constant dense<0.000000e+00> : vector<16x32xf32>
    %155 = tpu.matmul %151, %154, %cst_82 {dimension_numbers = #tpu.dot_dimension_numbers<[1], [0], [0], [1], [0, 0, 1, 1], [], []>} : vector<16x512xbf16>, vector<512x32xbf16>, vector<16x32xf32> -> vector<16x32xf32>
    %156 = arith.addf %140, %155 : vector<16x32xf32>
    %c0_83 = arith.constant 0 : index
    %c0_84 = arith.constant 0 : index
    %c1536 = arith.constant 1536 : index
    %157 = vector.load %arg16[%c0_83, %c0_84, %c1536] : memref<1x32x2048xf32, #tpu.memory_space<vmem>>, vector<1x32x512xf32>
    %158 = vector.shape_cast %157 : vector<1x32x512xf32> to vector<32x512xf32>
    %159 = arith.truncf %158 : vector<32x512xf32> to vector<32x512xbf16>
    %cst_85 = arith.constant dense<0.000000e+00> : vector<16x512xf32>
    %160 = tpu.matmul %109, %159, %cst_85 {dimension_numbers = #tpu.dot_dimension_numbers<[1], [0], [0], [1], [0, 0, 1, 1], [], []>} : vector<16x32xbf16>, vector<32x512xbf16>, vector<16x512xf32> -> vector<16x512xf32>
    %c0_86 = arith.constant 0 : index
    %c0_87 = arith.constant 0 : index
    %c1536_88 = arith.constant 1536 : index
    %161 = vector.load %arg17[%c0_86, %c0_87, %c1536_88] : memref<1x1x2048xf32, #tpu.memory_space<vmem>>, vector<1x1x512xf32>
    %162 = vector.shape_cast %161 : vector<1x1x512xf32> to vector<1x512xf32>
    %163 = vector.broadcast %162 : vector<1x512xf32> to vector<16x512xf32>
    %164 = arith.addf %160, %163 : vector<16x512xf32>
    %cst_89 = arith.constant 0.000000e+00 : f32
    %165 = vector.broadcast %cst_89 : f32 to vector<16x512xf32>
    %166 = arith.maximumf %164, %165 : vector<16x512xf32>
    %167 = arith.truncf %166 : vector<16x512xf32> to vector<16x512xbf16>
    %c0_90 = arith.constant 0 : index
    %c1536_91 = arith.constant 1536 : index
    %c0_92 = arith.constant 0 : index
    %168 = vector.load %arg18[%c0_90, %c1536_91, %c0_92] : memref<1x2048x32xf32, #tpu.memory_space<vmem>>, vector<1x512x32xf32>
    %169 = vector.shape_cast %168 : vector<1x512x32xf32> to vector<512x32xf32>
    %170 = arith.truncf %169 : vector<512x32xf32> to vector<512x32xbf16>
    %cst_93 = arith.constant dense<0.000000e+00> : vector<16x32xf32>
    %171 = tpu.matmul %167, %170, %cst_93 {dimension_numbers = #tpu.dot_dimension_numbers<[1], [0], [0], [1], [0, 0, 1, 1], [], []>} : vector<16x512xbf16>, vector<512x32xbf16>, vector<16x32xf32> -> vector<16x32xf32>
    %172 = arith.addf %156, %171 : vector<16x32xf32>
    %c0_94 = arith.constant 0 : index
    %c0_95 = arith.constant 0 : index
    %c0_96 = arith.constant 0 : index
    %173 = vector.load %arg19[%c0_94, %c0_95, %c0_96] : memref<1x1x32xf32, #tpu.memory_space<vmem>>, vector<1x1x32xf32>
    %174 = vector.shape_cast %173 : vector<1x1x32xf32> to vector<1x32xf32>
    %175 = vector.broadcast %174 : vector<1x32xf32> to vector<16x32xf32>
    %176 = arith.addf %172, %175 : vector<16x32xf32>
    %177 = arith.addf %108, %176 : vector<16x32xf32>
    %c0_97 = arith.constant 0 : index
    %c0_98 = arith.constant 0 : index
    %c0_99 = arith.constant 0 : index
    %178 = vector.load %arg20[%c0_97, %c0_98, %c0_99] : memref<1x1x32xf32, #tpu.memory_space<vmem>>, vector<1x1x32xf32>
    %179 = vector.shape_cast %178 : vector<1x1x32xf32> to vector<1x32xf32>
    %c0_100 = arith.constant 0 : index
    %c0_101 = arith.constant 0 : index
    %c0_102 = arith.constant 0 : index
    %180 = vector.load %arg21[%c0_100, %c0_101, %c0_102] : memref<1x1x32xf32, #tpu.memory_space<vmem>>, vector<1x1x32xf32>
    %181 = vector.shape_cast %180 : vector<1x1x32xf32> to vector<1x32xf32>
    %cst_103 = arith.constant dense<0.000000e+00> : vector<16xf32>
    %182 = vector.multi_reduction <add>, %177, %cst_103 [1] : vector<16x32xf32> to vector<16xf32>
    %183 = vector.shape_cast %182 : vector<16xf32> to vector<16x1xf32>
    %cst_104 = arith.constant 3.200000e+01 : f32
    %184 = vector.broadcast %cst_104 : f32 to vector<16x1xf32>
    %185 = arith.divf %183, %184 : vector<16x1xf32>
    %186 = vector.broadcast %185 : vector<16x1xf32> to vector<16x32xf32>
    %187 = arith.subf %177, %186 : vector<16x32xf32>
    %188 = arith.mulf %187, %187 : vector<16x32xf32>
    %cst_105 = arith.constant dense<0.000000e+00> : vector<16xf32>
    %189 = vector.multi_reduction <add>, %188, %cst_105 [1] : vector<16x32xf32> to vector<16xf32>
    %190 = vector.shape_cast %189 : vector<16xf32> to vector<16x1xf32>
    %cst_106 = arith.constant 3.200000e+01 : f32
    %191 = vector.broadcast %cst_106 : f32 to vector<16x1xf32>
    %192 = arith.divf %190, %191 : vector<16x1xf32>
    %cst_107 = arith.constant 9.99999974E-6 : f32
    %193 = vector.broadcast %cst_107 : f32 to vector<16x1xf32>
    %194 = arith.addf %192, %193 : vector<16x1xf32>
    %195 = math.rsqrt %194 : vector<16x1xf32>
    %196 = vector.broadcast %195 : vector<16x1xf32> to vector<16x32xf32>
    %197 = arith.mulf %187, %196 : vector<16x32xf32>
    %198 = vector.broadcast %179 : vector<1x32xf32> to vector<16x32xf32>
    %199 = arith.mulf %197, %198 : vector<16x32xf32>
    %200 = vector.broadcast %181 : vector<1x32xf32> to vector<16x32xf32>
    %201 = arith.addf %199, %200 : vector<16x32xf32>
    %c0_108 = arith.constant 0 : index
    %c0_109 = arith.constant 0 : index
    %202 = vector.load %arg23[%c0_108, %c0_109] : memref<16x32xf32, #tpu.memory_space<vmem>>, vector<16x32xf32>
    tpu.vector_store %arg23[%c0_108, %c0_109], %201 {strides = array<i32>} : memref<16x32xf32, #tpu.memory_space<vmem>>, vector<16x32xf32>,
    %c1_i32 = arith.constant 1 : i32
    %203 = arith.cmpi eq, %arg0, %c1_i32 : i32
    %204 = arith.extui %203 : i1 to i32
    %c0_i32_110 = arith.constant 0 : i32
    %205 = arith.cmpi ne, %204, %c0_i32_110 : i32
    scf.if %205 {
      %c0_111 = arith.constant 0 : index
      %c0_112 = arith.constant 0 : index
      %206 = vector.load %arg22[%c0_111, %c0_112] : memref<16x32xf32, #tpu.memory_space<vmem>>, vector<16x32xf32>
      tpu.vector_store %arg22[%c0_111, %c0_112], %201 {strides = array<i32>} : memref<16x32xf32, #tpu.memory_space<vmem>>, vector<16x32xf32>,
    } else {
    }
    return
  }
  func.func @transform_0(%arg0: i32) -> (i32, i32) {
    %c0_i32 = arith.constant 0 : i32
    %c0_i32_0 = arith.constant 0 : i32
    %c0_i32_1 = arith.constant 0 : i32
    return %c0_i32, %c0_i32_0 : i32, i32
  }
  func.func @transform_1(%arg0: i32) -> (i32, i32) {
    %c0_i32 = arith.constant 0 : i32
    %c0_i32_0 = arith.constant 0 : i32
    %c0_i32_1 = arith.constant 0 : i32
    return %c0_i32, %c0_i32_0 : i32, i32
  }
  func.func @transform_2(%arg0: i32) -> (i32, i32) {
    %c0_i32 = arith.constant 0 : i32
    %c0_i32_0 = arith.constant 0 : i32
    %c0_i32_1 = arith.constant 0 : i32
    return %c0_i32, %c0_i32_0 : i32, i32
  }
  func.func @transform_3(%arg0: i32) -> (i32, i32) {
    %c0_i32 = arith.constant 0 : i32
    %c0_i32_0 = arith.constant 0 : i32
    %c0_i32_1 = arith.constant 0 : i32
    return %c0_i32, %c0_i32_0 : i32, i32
  }
  func.func @transform_4(%arg0: i32) -> (i32, i32) {
    %c0_i32 = arith.constant 0 : i32
    %c0_i32_0 = arith.constant 0 : i32
    %c0_i32_1 = arith.constant 0 : i32
    return %c0_i32, %c0_i32_0 : i32, i32
  }
  func.func @transform_5(%arg0: i32) -> (i32, i32, i32) {
    %c0_i32 = arith.constant 0 : i32
    %c0_i32_0 = arith.constant 0 : i32
    %c0_i32_1 = arith.constant 0 : i32
    return %arg0, %c0_i32, %c0_i32_0 : i32, i32, i32
  }
  func.func @transform_6(%arg0: i32) -> (i32, i32, i32) {
    %c0_i32 = arith.constant 0 : i32
    %c0_i32_0 = arith.constant 0 : i32
    %c0_i32_1 = arith.constant 0 : i32
    return %arg0, %c0_i32, %c0_i32_0 : i32, i32, i32
  }
  func.func @transform_7(%arg0: i32) -> (i32, i32, i32) {
    %c0_i32 = arith.constant 0 : i32
    %c0_i32_0 = arith.constant 0 : i32
    %c0_i32_1 = arith.constant 0 : i32
    return %arg0, %c0_i32, %c0_i32_0 : i32, i32, i32
  }
  func.func @transform_8(%arg0: i32) -> (i32, i32, i32) {
    %c0_i32 = arith.constant 0 : i32
    %c0_i32_0 = arith.constant 0 : i32
    %c0_i32_1 = arith.constant 0 : i32
    return %arg0, %c0_i32, %c0_i32_0 : i32, i32, i32
  }
  func.func @transform_9(%arg0: i32) -> (i32, i32, i32) {
    %c0_i32 = arith.constant 0 : i32
    %c0_i32_0 = arith.constant 0 : i32
    %c0_i32_1 = arith.constant 0 : i32
    return %arg0, %c0_i32, %c0_i32_0 : i32, i32, i32
  }
  func.func @transform_10(%arg0: i32) -> (i32, i32, i32) {
    %c0_i32 = arith.constant 0 : i32
    %c0_i32_0 = arith.constant 0 : i32
    %c0_i32_1 = arith.constant 0 : i32
    return %arg0, %c0_i32, %c0_i32_0 : i32, i32, i32
  }
  func.func @transform_11(%arg0: i32) -> (i32, i32, i32) {
    %c0_i32 = arith.constant 0 : i32
    %c0_i32_0 = arith.constant 0 : i32
    %c0_i32_1 = arith.constant 0 : i32
    return %arg0, %c0_i32, %c0_i32_0 : i32, i32, i32
  }
  func.func @transform_12(%arg0: i32) -> (i32, i32, i32) {
    %c0_i32 = arith.constant 0 : i32
    %c0_i32_0 = arith.constant 0 : i32
    %c0_i32_1 = arith.constant 0 : i32
    return %arg0, %c0_i32, %c0_i32_0 : i32, i32, i32
  }
  func.func @transform_13(%arg0: i32) -> (i32, i32, i32) {
    %c0_i32 = arith.constant 0 : i32
    %c0_i32_0 = arith.constant 0 : i32
    %c0_i32_1 = arith.constant 0 : i32
    return %arg0, %c0_i32, %c0_i32_0 : i32, i32, i32
  }
  func.func @transform_14(%arg0: i32) -> (i32, i32, i32) {
    %c0_i32 = arith.constant 0 : i32
    %c0_i32_0 = arith.constant 0 : i32
    %c0_i32_1 = arith.constant 0 : i32
    return %arg0, %c0_i32, %c0_i32_0 : i32, i32, i32
  }
  func.func @transform_15(%arg0: i32) -> (i32, i32, i32) {
    %c0_i32 = arith.constant 0 : i32
    %c0_i32_0 = arith.constant 0 : i32
    %c0_i32_1 = arith.constant 0 : i32
    return %arg0, %c0_i32, %c0_i32_0 : i32, i32, i32
  }
  func.func @transform_16(%arg0: i32) -> (i32, i32, i32) {
    %c0_i32 = arith.constant 0 : i32
    %c0_i32_0 = arith.constant 0 : i32
    %c0_i32_1 = arith.constant 0 : i32
    return %arg0, %c0_i32, %c0_i32_0 : i32, i32, i32
  }
  func.func @transform_17(%arg0: i32) -> (i32, i32, i32) {
    %c0_i32 = arith.constant 0 : i32
    %c0_i32_0 = arith.constant 0 : i32
    %c0_i32_1 = arith.constant 0 : i32
    return %arg0, %c0_i32, %c0_i32_0 : i32, i32, i32
  }
  func.func @transform_18(%arg0: i32) -> (i32, i32, i32) {
    %c0_i32 = arith.constant 0 : i32
    %c0_i32_0 = arith.constant 0 : i32
    %c0_i32_1 = arith.constant 0 : i32
    return %arg0, %c0_i32, %c0_i32_0 : i32, i32, i32
  }
  func.func @transform_19(%arg0: i32) -> (i32, i32, i32) {
    %c0_i32 = arith.constant 0 : i32
    %c0_i32_0 = arith.constant 0 : i32
    %c0_i32_1 = arith.constant 0 : i32
    return %arg0, %c0_i32, %c0_i32_0 : i32, i32, i32
  }
  func.func @transform_20(%arg0: i32) -> (i32, i32, i32) {
    %c0_i32 = arith.constant 0 : i32
    %c0_i32_0 = arith.constant 0 : i32
    %c0_i32_1 = arith.constant 0 : i32
    return %arg0, %c0_i32, %c0_i32_0 : i32, i32, i32
  }
  func.func @transform_21(%arg0: i32) -> (i32, i32) {
    %c0_i32 = arith.constant 0 : i32
    %c0_i32_0 = arith.constant 0 : i32
    %c0_i32_1 = arith.constant 0 : i32
    return %c0_i32, %c0_i32_0 : i32, i32
  }
}

</mosaic_0001>

<bundles_post_ra>
// kernel: _lambda_.1
= control target key start
LH: loop header
LB: loop body
LE: loop exit
PB: predicated region body
PF: predicated region fallthrough
CT: control target
= control target key end

     0   :  { %s5752_s0 = inlined_call_operand.vmem [shape: f32[16,8], index: 0, kind: input, shape index: {}]   ;;  %s5753_s1 = inlined_call_operand.hbm [shape: f32[8,32], index: 1, kind: input, shape index: {}]   ;;  %s5754_s2 = inlined_call_operand.hbm [shape: f32[1,32], index: 2, kind: input, shape index: {}]   ;;  %s5755_s3 = inlined_call_operand.vmem [shape: f32[16,32], index: 3, kind: input, shape index: {}]   ;;  %s5756_s4 = inlined_call_operand.vmem [shape: f32[32,32], index: 4, kind: input, shape index: {}]   ;;  %s5757_s5 = inlined_call_operand.hbm [shape: f32[2,32,32], index: 5, kind: input, shape index: {}]   ;;  %s5758_s6 = inlined_call_operand.hbm [shape: f32[2,32,32], index: 6, kind: input, shape index: {}]   ;;  %s5759_s7 = inlined_call_operand.hbm [shape: f32[2,32,32], index: 7, kind: input, shape index: {}]   ;;  %s5760_s8 = inlined_call_operand.hbm [shape: f32[2,1,32], index: 8, kind: input, shape index: {}]   ;;  %s5761_s9 = inlined_call_operand.hbm [shape: f32[2,1,32], index: 9, kind: input, shape index: {}]   ;;  %s5762_s10 = inlined_call_operand.hbm [shape: f32[2,1,32], index: 10, kind: input, shape index: {}]   ;;  %s5763_s11 = inlined_call_operand.hbm [shape: f32[2,32,32], index: 11, kind: input, shape index: {}]   ;;  %s5764_s12 = inlined_call_operand.hbm [shape: f32[2,1,32], index: 12, kind: input, shape index: {}]   ;;  %s5765_s13 = inlined_call_operand.vmem [shape: f32[2,1,32], index: 13, kind: input, shape index: {}, may-alias: {13,19}]   ;;  %s5766_s14 = inlined_call_operand.vmem [shape: f32[2,1,32], index: 14, kind: input, shape index: {}, may-alias: {14,20}]   ;;  %s5767_s15 = inlined_call_operand.hbm [shape: f32[2,32,2048], index: 15, kind: input, shape index: {}]   ;;  %s5768_s16 = inlined_call_operand.hbm [shape: f32[2,1,2048], index: 16, kind: input, shape index: {}]   ;;  %s5769_s17 = inlined_call_operand.hbm [shape: f32[2,2048,32], index: 17, kind: input, shape index: {}]   ;;  %s5770_s18 = inlined_call_operand.hbm [shape: f32[2,1,32], index: 18, kind: input, shape index: {}]   ;;  %s5771_s19 = inlined_call_operand.vmem [shape: f32[2,1,32], index: 19, kind: input, shape index: {}, may-alias: {13,19}]   ;;  %s5772_s20 = inlined_call_operand.vmem [shape: f32[2,1,32], index: 20, kind: input, shape index: {}, may-alias: {14,20}]   ;;  %s5773_s21 = inlined_call_operand.hbm [shape: f32[16,32], index: 21, kind: output, shape index: {}]  }
   0x1   :  { %5809 = sst [smem:[#allocation32_spill]] %s5752_s0 }
   0x2   :  { %5810 = sst [smem:[#allocation33_spill]] %s5753_s1 }
   0x3   :  { %5811 = sst [smem:[#allocation34_spill]] %s5754_s2 }
   0x4   :  { %5812 = sst [smem:[#allocation35_spill]] %s5755_s3 }
   0x5   :  { %5813 = sst [smem:[#allocation36_spill]] %s5756_s4 }
   0x6   :  { %5814 = sst [smem:[#allocation37_spill]] %s5757_s5 }
   0x7   :  { %5815 = sst [smem:[#allocation38_spill]] %s5758_s6 }
   0x8   :  { %5816 = sst [smem:[#allocation39_spill]] %s5759_s7 }
   0x9   :  { %5817 = sst [smem:[#allocation40_spill]] %s5760_s8 }
   0xa   :  { %5818 = sst [smem:[#allocation41_spill]] %s5761_s9 }
   0xb   :  { %5819 = sst [smem:[#allocation42_spill]] %s5762_s10 }
   0xc   :  { %5820 = sst [smem:[#allocation43_spill]] %s5763_s11 }
   0xd   :  { %5821 = sst [smem:[#allocation44_spill]] %s5764_s12 }
   0xe   :  { %5822 = sst [smem:[#allocation45_spill]] %s5765_s13 }
   0xf   :  { %5823 = sst [smem:[#allocation46_spill]] %s5766_s14 }
  0x10   :  { %5824 = sst [smem:[#allocation47_spill]] %s5767_s15 }
  0x11   :  { %5825 = sst [smem:[#allocation48_spill]] %s5770_s18 }
  0x12   :  { %5826 = sst [smem:[#allocation49_spill]] %s5771_s19 }
  0x13   :  { %5827 = sst [smem:[#allocation50_spill]] %s5772_s20 }
  0x14   :  { %5828 = sst [smem:[#allocation51_spill]] %s5773_s21 }
  0x15   :  { %26 = vsyncpa [#allocation4], 0 }
  0x16   :  { %27 = vsyncpa [#allocation7], 0 }
  0x17   :  { %28 = vsyncpa [#allocation5], 0  ;;  %s4650_s2 = smov 0   ;;  %s4652_s25 = smov 0  }
  0x18   :  { %s4654_s26 = smov 0   ;;  %s4656_s27 = smov 0  }
  0x19 LB: > { %5829 = sst [smem:[#allocation25_spill]] %s4504_s25  ;;  %s4669_s3 = sadd.s32 4294967295, %s4512_s27   ;;  %s4512_s27 = sphi %s4656_s27, %s5893_s27   ;;  %s4508_s26 = sphi %s4654_s26, %s5896_s26   ;;  %s4504_s25 = sphi %s4652_s25, %s5895_s25   ;;  %s4500_s2 = sphi %s4650_s2, %s5894_s2  }
  0x1a   : > { %5830 = sst [smem:[#allocation26_spill]] %s4508_s26  ;;  %s4672_s28 = sadd.s32 1, %s4512_s27  }
  0x1b   : > { %5831 = sst [smem:[#allocation27_spill]] %s4669_s3  ;;  %s143_s29 = ssub.s32 %s4512_s27, %s4672_s28 }
  0x1c   : > { %5832 = sst [smem:[#allocation28_spill]] %s4672_s28  ;;  %s146_s0 = sadd.s32 1, %s4508_s26 }
  0x1d   : > { %p144_p0 = scmp.eq.s32.totalorder %s143_s29, 0  ;;  %p153_p1 = scmp.ne.s32.totalorder %s4508_s26, %s4504_s25 }
  0x1e   : > { %p154_p2 = scmp.eq.s32.totalorder %s4512_s27, 0  ;;  %p159_p3 = scmp.ne.s32.totalorder %s4504_s25, %s4500_s2 }
  0x1f   : > { %s4682_s4 = scalar_select %p144_p0, %s4508_s26, %s146_s0  }
  0x20   : > { %p4684_p4 = por %p154_p2, %p153_p1  ;;  %p5786_p5 = scmp.eq.s32.totalorder %s4669_s3, 0 }
  0x21   : > { %5833 = sst [smem:[#allocation29_spill]] %s4682_s4  ;;  %p3475_p6 = scmp.ge.s32.totalorder %s4512_s27, 1 }
  0x22   : > { %p581_p7 = scmp.lt.s32.totalorder %s4512_s27, 3  ;;  %p4693_p8 = por %p5786_p5, %p159_p3 }
  0x23   : > { %s4514_s23 = smov [#allocation3]   ;;  %p3953_p12 = scmp.lt.s32.totalorder %s4512_s27, 2 }
  0x24   : > { %s5835_s5 = scalar_select %p4693_p8, 1, 0 }
  0x25   : > { %p4698_p10 = pnand %p3475_p6, %p581_p7  ;;  %s597_s1 = sshll.u32 %s4514_s23, 4  ;;  %s598_s1 = int_to_ptr.vmem [resolvable:$true] %s597_s1 }
  0x26   : > { %5836 = sst [smem:[#allocation30_spill]] %s5835_s5  ;;  %s4706_s24 = sand.u32 1, %s4508_s26  }
  0x27   : > { %s5837_s22 = scalar_select %p4698_p10, 1, 0 }
  0x28   : > { %p3907_p11 = pneg %p4698_p10  ;;  %s625_s29 = sand.u32 1, %s4512_s27  }
  0x29   : > { %5838 = sst [smem:[#allocation31_spill]] %s5837_s22  ;;  %p4717_p0 = pnand %p3953_p12, %p4684_p4 }
  0x2a   : > { %p4710_p13 = pnand %p3907_p11, %p5786_p5  ;;  %s4722_s23 = sshll.u32 %s4706_s24, 5 }
  0x2b   : > { %s5840_s0 = scalar_select %p4717_p0, 1, 0 }
  0x2c   : > { %s5839_s2 = scalar_select %p4710_p13, 1, 0 }
  0x2d   : > { %s5841_s26 = sld [smem:[#allocation33_spill]]  ;;  %p5792_p2 = pneg %p4710_p13 }
  0x33   : > { %s5842_s21 = smov %s5841_s26  ;;  %s4024_s20 = scalar_lea.hbm %s5841_s26, 128 }
  0x34   : > { %p4025_p1 = scmp.ne.s32.totalorder %s5842_s21, %s4024_s20  ;;  %p4031_p4 = scmp.lt.u32.totalorder %s4024_s20, %s5842_s21 }
  0x36   : > { %p4027_p3 = pnand %p5792_p2, %p4025_p1 }
  0x38   : > { %p4028_p6 = pneg %p4027_p3 }
  0x3a   : > { %p4033_p7 = pnand %p4031_p4, %p4028_p6 }
  0x3c   : > { %4036 = shalt.err (!%p4033_p7)
}
  0x3d   : > { %s4037_s5 = scalar_lea.vmem %s598_s1, 128  ;;  %p4045_p5 = scmp.lt.s32.totalorder %s598_s1, %s598_s1 }
  0x3e   : > { %p4038_p11 = scmp.ne.s32.totalorder %s598_s1, %s4037_s5  ;;  %p4046_p8 = scmp.lt.s32.totalorder %s4037_s5, %s4037_s5 }
  0x40   : > { %p4040_p12 = pnand %p4038_p11, %p5792_p2  ;;  %p4047_p10 = por %p4046_p8, %p4045_p5 }
  0x42   : > { %p4041_p9 = pneg %p4040_p12 }
  0x44   : > { %p4048_p0 = pnand %p4047_p10, %p4041_p9 }
  0x46   : > { %4051 = shalt.err (!%p4048_p0)
}
  0x47   : > { %3910 = dma.hbm_to_vmem [thread:$0]  (!%p4710_p13), %s5842_s21, 128, %s598_s1, [#allocation4]  }
  0x48   : > { %s4747_s13 = sshll.u32 %s4512_s27, 9  ;;  %s629_s20 = scalar_lea.vmem [#allocation8], %s4722_s23 }
  0x49   : > { %s636_s26 = sshll.u32 %s629_s20, 4  ;;  %s5843_s5 = sld [smem:[#allocation37_spill]]  ;;  %s4756_s26 = int_to_ptr.vmem [resolvable:$true] %s636_s26 }
  0x4a   : > { %s4758_s14 = scalar_lea.sflag [#allocation4], %s625_s29  ;;  %p5844_p8 = scmp.ne.s32.totalorder %s5840_s0, 0 }
  0x4c   : > { %p4764_p9 = pneg %p5844_p8 }
  0x4e   : > { %s5845_s1 = scalar_select %p4764_p9, 1, 0 }
  0x4f   : > { %s4754_s30 = scalar_lea.hbm %s5843_s5, %s4747_s13  ;;  %s4057_s4 = scalar_lea.hbm %s5843_s5, 1024 }
  0x50   : > { %s4052_s19 = scalar_lea.hbm %s4754_s30, 512  ;;  %p4058_p1 = scmp.lt.u32.totalorder %s4754_s30, %s5843_s5 }
  0x51   : > { %p4053_p5 = scmp.ne.s32.totalorder %s4754_s30, %s4052_s19  ;;  %p4059_p3 = scmp.lt.u32.totalorder %s4057_s4, %s4052_s19 }
  0x52   : > { %p4061_p4 = scmp.lt.u32.totalorder %s4052_s19, %s4754_s30 }
  0x53   : > { %p4055_p10 = pnand %p4764_p9, %p4053_p5  ;;  %p4060_p6 = por %p4059_p3, %p4058_p1 }
  0x55   : > { %p4056_p0 = pneg %p4055_p10  ;;  %p4062_p7 = por %p4061_p4, %p4060_p6 }
  0x57   : > { %p4063_p11 = pnand %p4062_p7, %p4056_p0 }
  0x59   : > { %4066 = shalt.err (!%p4063_p11)
}
  0x5a   : > { %s4067_s29 = scalar_lea.vmem %s4756_s26, 512  ;;  %s4515_s20 = smov [#allocation8]  }
  0x5b   : > { %p4068_p12 = scmp.ne.s32.totalorder %s4756_s26, %s4067_s29  ;;  %s4072_s28 = sshll.u32 %s4515_s20, 4  ;;  %s4073_s28 = int_to_ptr.vmem [resolvable:$false] %s4072_s28 }
  0x5c   : > { %s4074_s21 = scalar_lea.vmem %s4073_s28, 1024  ;;  %p4075_p2 = scmp.lt.s32.totalorder %s4756_s26, %s4073_s28 }
  0x5d   : > { %p4070_p5 = pnand %p4068_p12, %p4764_p9  ;;  %p4076_p13 = scmp.lt.s32.totalorder %s4074_s21, %s4067_s29 }
  0x5f   : > { %p4071_p10 = pneg %p4070_p5  ;;  %p4077_p1 = por %p4076_p13, %p4075_p2 }
  0x61   : > { %p4078_p3 = pnand %p4077_p1, %p4071_p10 }
  0x63   : > { %4081 = shalt.err (!%p4078_p3)
}
  0x64   : > { %s5801_s25 = smov 128   ;;  %s4517_s19 = smov 8  }
  0x65   : > { %3917 = dma.hbm_to_vmem [thread:$0]  (!%p5844_p8), %s4754_s30, 512, %s4756_s26, %s4758_s14, %s5801_s25, %s5801_s25, %s4517_s19  }
  0x66   : > { %s5846_s6 = sld [smem:[#allocation38_spill]]  ;;  %s650_s28 = scalar_lea.vmem [#allocation9], %s4722_s23 }
  0x67   : > { %s657_s21 = sshll.u32 %s650_s28, 4  ;;  %s5847_s7 = sld [smem:[#allocation39_spill]]  ;;  %s4798_s21 = int_to_ptr.vmem [resolvable:$true] %s657_s21 }
  0x6c   : > { %s4795_s20 = scalar_lea.hbm %s5846_s6, %s4747_s13  ;;  %s4087_s4 = scalar_lea.hbm %s5846_s6, 1024 }
  0x6d   : > { %s4804_s22 = scalar_lea.hbm %s5847_s7, %s4747_s13  ;;  %s4082_s18 = scalar_lea.hbm %s4795_s20, 512 }
  0x6e   : > { %p4083_p13 = scmp.ne.s32.totalorder %s4795_s20, %s4082_s18  ;;  %p4088_p6 = scmp.lt.u32.totalorder %s4795_s20, %s5846_s6 }
  0x6f   : > { %p4089_p4 = scmp.lt.u32.totalorder %s4087_s4, %s4082_s18  ;;  %p4091_p11 = scmp.lt.u32.totalorder %s4082_s18, %s4795_s20 }
  0x70   : > { %p4085_p2 = pnand %p4083_p13, %p4764_p9 }
  0x71   : > { %p4090_p7 = por %p4089_p4, %p4088_p6 }
  0x72   : > { %p4086_p0 = pneg %p4085_p2 }
  0x73   : > { %p4092_p12 = por %p4091_p11, %p4090_p7 }
  0x75   : > { %p4093_p5 = pnand %p4092_p12, %p4086_p0 }
  0x77   : > { %4096 = shalt.err (!%p4093_p5)
}
  0x78   : > { %s4097_s3 = scalar_lea.vmem %s4798_s21, 512  ;;  %s4518_s5 = smov [#allocation9]  }
  0x79   : > { %p4098_p10 = scmp.ne.s32.totalorder %s4798_s21, %s4097_s3  ;;  %s4102_s28 = sshll.u32 %s4518_s5, 4  ;;  %s4103_s28 = int_to_ptr.vmem [resolvable:$false] %s4102_s28 }
  0x7a   : > { %s4104_s25 = scalar_lea.vmem %s4103_s28, 1024  ;;  %p4105_p13 = scmp.lt.s32.totalorder %s4798_s21, %s4103_s28 }
  0x7b   : > { %p4100_p1 = pnand %p4098_p10, %p4764_p9  ;;  %p4106_p2 = scmp.lt.s32.totalorder %s4104_s25, %s4097_s3 }
  0x7d   : > { %p4101_p3 = pneg %p4100_p1  ;;  %p4107_p6 = por %p4106_p2, %p4105_p13 }
  0x7f   : > { %p4108_p4 = pnand %p4107_p6, %p4101_p3 }
  0x81   : > { %4111 = shalt.err (!%p4108_p4)
}
  0x82   : > { %s5848_s18 = smov 128   ;;  %s671_s26 = scalar_lea.vmem [#allocation10], %s4722_s23 }
  0x83   : > { %3920 = dma.hbm_to_vmem [thread:$0]  (!%p5844_p8), %s4795_s20, 512, %s4798_s21, %s4758_s14, %s5848_s18, %s5848_s18, %s4517_s19  }
  0x84   : > { %s678_s30 = sshll.u32 %s671_s26, 4  ;;  %s4835_s4 = sshll.u32 %s4512_s27, 4  ;;  %s4832_s30 = int_to_ptr.vmem [resolvable:$true] %s678_s30 }
  0x85   : > { %s4112_s29 = scalar_lea.hbm %s4804_s22, 512  ;;  %s4117_s28 = scalar_lea.hbm %s5847_s7, 1024 }
  0x86   : > { %p4113_p0 = scmp.ne.s32.totalorder %s4804_s22, %s4112_s29  ;;  %p4118_p12 = scmp.lt.u32.totalorder %s4804_s22, %s5847_s7 }
  0x87   : > { %p4119_p5 = scmp.lt.u32.totalorder %s4117_s28, %s4112_s29  ;;  %p4121_p1 = scmp.lt.u32.totalorder %s4112_s29, %s4804_s22 }
  0x88   : > { %p4115_p7 = pnand %p4113_p0, %p4764_p9 }
  0x89   : > { %p4120_p10 = por %p4119_p5, %p4118_p12 }
  0x8a   : > { %p4116_p11 = pneg %p4115_p7 }
  0x8b   : > { %p4122_p3 = por %p4121_p1, %p4120_p10 }
  0x8d   : > { %p4123_p13 = pnand %p4122_p3, %p4116_p11 }
  0x8f   : > { %4126 = shalt.err (!%p4123_p13)
}
  0x90   : > { %s4127_s20 = scalar_lea.vmem %s4832_s30, 512  ;;  %s4519_s21 = smov [#allocation10]  }
  0x91   : > { %p4128_p2 = scmp.ne.s32.totalorder %s4832_s30, %s4127_s20  ;;  %s4132_s26 = sshll.u32 %s4519_s21, 4  ;;  %s4133_s26 = int_to_ptr.vmem [resolvable:$false] %s4132_s26 }
  0x92   : > { %s4134_s6 = scalar_lea.vmem %s4133_s26, 1024  ;;  %p4135_p0 = scmp.lt.s32.totalorder %s4832_s30, %s4133_s26 }
  0x93   : > { %p4130_p6 = pnand %p4128_p2, %p4764_p9  ;;  %p4136_p7 = scmp.lt.s32.totalorder %s4134_s6, %s4127_s20 }
  0x95   : > { %p4131_p4 = pneg %p4130_p6  ;;  %p4137_p12 = por %p4136_p7, %p4135_p0 }
  0x97   : > { %p4138_p5 = pnand %p4137_p12, %p4131_p4 }
  0x99   : > { %4141 = shalt.err (!%p4138_p5)
}
  0x9a   : > { %3923 = dma.hbm_to_vmem [thread:$0]  (!%p5844_p8), %s4804_s22, 512, %s4832_s30, %s4758_s14, %s5848_s18, %s5848_s18, %s4517_s19  }
  0x9b   : > { %s5849_s8 = sld [smem:[#allocation40_spill]]  ;;  %s691_s28 = scalar_lea.vmem [#allocation11], %s4706_s24 }
  0x9c   : > { %s698_s25 = sshll.u32 %s691_s28, 4  ;;  %s699_s25 = int_to_ptr.vmem [resolvable:$true] %s698_s25 }
  0xa1   : > { %s4866_s5 = scalar_lea.hbm %s5849_s8, %s4835_s4  ;;  %s4147_s22 = scalar_lea.hbm %s5849_s8, 32 }
  0xa2   : > { %s4142_s20 = scalar_lea.hbm %s4866_s5, 16  ;;  %p4148_p3 = scmp.lt.u32.totalorder %s4866_s5, %s5849_s8 }
  0xa3   : > { %p4143_p11 = scmp.ne.s32.totalorder %s4866_s5, %s4142_s20  ;;  %p4149_p13 = scmp.lt.u32.totalorder %s4147_s22, %s4142_s20 }
  0xa4   : > { %p4151_p6 = scmp.lt.u32.totalorder %s4142_s20, %s4866_s5 }
  0xa5   : > { %p4145_p10 = pnand %p4143_p11, %p4764_p9  ;;  %p4150_p2 = por %p4149_p13, %p4148_p3 }
  0xa7   : > { %p4146_p1 = pneg %p4145_p10  ;;  %p4152_p4 = por %p4151_p6, %p4150_p2 }
  0xa9   : > { %p4153_p0 = pnand %p4152_p4, %p4146_p1 }
  0xab   : > { %4156 = shalt.err (!%p4153_p0)
}
  0xac   : > { %s4157_s29 = scalar_lea.vmem %s699_s25, 16  ;;  %s4520_s3 = smov [#allocation11]  }
  0xad   : > { %p4158_p7 = scmp.ne.s32.totalorder %s699_s25, %s4157_s29  ;;  %s4162_s28 = sshll.u32 %s4520_s3, 4  ;;  %s4163_s28 = int_to_ptr.vmem [resolvable:$false] %s4162_s28 }
  0xae   : > { %s4164_s21 = scalar_lea.vmem %s4163_s28, 32  ;;  %p4165_p11 = scmp.lt.s32.totalorder %s699_s25, %s4163_s28 }
  0xaf   : > { %p4160_p12 = pnand %p4158_p7, %p4764_p9  ;;  %p4166_p10 = scmp.lt.s32.totalorder %s4164_s21, %s4157_s29 }
  0xb1   : > { %p4161_p5 = pneg %p4160_p12  ;;  %p4167_p8 = por %p4166_p10, %p4165_p11 }
  0xb3   : > { %p4168_p3 = pnand %p4167_p8, %p4161_p5 }
  0xb5   : > { %4171 = shalt.err (!%p4168_p3)
}
  0xb6   : > { %p5850_p13 = scmp.ne.s32.totalorder %s5840_s0, 0  ;;  %s5851_s9 = sld [smem:[#allocation41_spill]] }
  0xb7   : > { %s708_s30 = scalar_lea.vmem [#allocation12], %s4706_s24 }
  0xb8   : > { %3926 = dma.hbm_to_vmem [thread:$0]  (!%p5850_p13), %s4866_s5, 16, %s699_s25, %s4758_s14  }
  0xb9   : > { %s715_s6 = sshll.u32 %s708_s30, 4  ;;  %s716_s6 = int_to_ptr.vmem [resolvable:$true] %s715_s6 }
  0xbc   : > { %s4891_s22 = scalar_lea.hbm %s5851_s9, %s4835_s4  ;;  %s4177_s5 = scalar_lea.hbm %s5851_s9, 32 }
  0xbd   : > { %s4172_s29 = scalar_lea.hbm %s4891_s22, 16  ;;  %p4178_p6 = scmp.lt.u32.totalorder %s4891_s22, %s5851_s9 }
  0xbe   : > { %p4173_p8 = scmp.ne.s32.totalorder %s4891_s22, %s4172_s29  ;;  %p4179_p4 = scmp.lt.u32.totalorder %s4177_s5, %s4172_s29 }
  0xbf   : > { %p4181_p7 = scmp.lt.u32.totalorder %s4172_s29, %s4891_s22 }
  0xc0   : > { %p4175_p1 = pnand %p4173_p8, %p4764_p9  ;;  %p4180_p0 = por %p4179_p4, %p4178_p6 }
  0xc2   : > { %p4176_p2 = pneg %p4175_p1  ;;  %p4182_p12 = por %p4181_p7, %p4180_p0 }
  0xc4   : > { %p4183_p5 = pnand %p4182_p12, %p4176_p2 }
  0xc6   : > { %4186 = shalt.err (!%p4183_p5)
}
  0xc7   : > { %s4187_s20 = scalar_lea.vmem %s716_s6, 16  ;;  %s4521_s26 = smov [#allocation12]  }
  0xc8   : > { %p4188_p11 = scmp.ne.s32.totalorder %s716_s6, %s4187_s20  ;;  %s4192_s30 = sshll.u32 %s4521_s26, 4  ;;  %s4193_s30 = int_to_ptr.vmem [resolvable:$false] %s4192_s30 }
  0xc9   : > { %s4194_s3 = scalar_lea.vmem %s4193_s30, 32  ;;  %p4195_p8 = scmp.lt.s32.totalorder %s716_s6, %s4193_s30 }
  0xca   : > { %p4190_p10 = pnand %p4188_p11, %p4764_p9  ;;  %p4196_p1 = scmp.lt.s32.totalorder %s4194_s3, %s4187_s20 }
  0xcc   : > { %p4191_p3 = pneg %p4190_p10  ;;  %p4197_p13 = por %p4196_p1, %p4195_p8 }
  0xce   : > { %p4198_p4 = pnand %p4197_p13, %p4191_p3 }
  0xd0   : > { %4201 = shalt.err (!%p4198_p4)
}
  0xd1   : > { %p5852_p6 = scmp.ne.s32.totalorder %s5840_s0, 0  ;;  %s5853_s10 = sld [smem:[#allocation42_spill]] }
  0xd2   : > { %s725_s25 = scalar_lea.vmem [#allocation13], %s4706_s24 }
  0xd3   : > { %3929 = dma.hbm_to_vmem [thread:$0]  (!%p5852_p6), %s4891_s22, 16, %s716_s6, %s4758_s14  }
  0xd4   : > { %s732_s21 = sshll.u32 %s725_s25, 4  ;;  %s733_s21 = int_to_ptr.vmem [resolvable:$true] %s732_s21 }
  0xd7   : > { %s4916_s5 = scalar_lea.hbm %s5853_s10, %s4835_s4  ;;  %s4207_s22 = scalar_lea.hbm %s5853_s10, 32 }
  0xd8   : > { %s4202_s20 = scalar_lea.hbm %s4916_s5, 16  ;;  %p4208_p7 = scmp.lt.u32.totalorder %s4916_s5, %s5853_s10 }
  0xd9   : > { %p4203_p13 = scmp.ne.s32.totalorder %s4916_s5, %s4202_s20  ;;  %p4209_p12 = scmp.lt.u32.totalorder %s4207_s22, %s4202_s20 }
  0xda   : > { %p4211_p11 = scmp.lt.u32.totalorder %s4202_s20, %s4916_s5 }
  0xdb   : > { %p4205_p2 = pnand %p4203_p13, %p4764_p9  ;;  %p4210_p5 = por %p4209_p12, %p4208_p7 }
  0xdd   : > { %p4206_p0 = pneg %p4205_p2  ;;  %p4212_p10 = por %p4211_p11, %p4210_p5 }
  0xdf   : > { %p4213_p3 = pnand %p4212_p10, %p4206_p0 }
  0xe1   : > { %4216 = shalt.err (!%p4213_p3)
}
  0xe2   : > { %s4217_s29 = scalar_lea.vmem %s733_s21, 16  ;;  %s4522_s28 = smov [#allocation13]  }
  0xe3   : > { %p4218_p8 = scmp.ne.s32.totalorder %s733_s21, %s4217_s29  ;;  %s4222_s25 = sshll.u32 %s4522_s28, 4  ;;  %s4223_s25 = int_to_ptr.vmem [resolvable:$false] %s4222_s25 }
  0xe4   : > { %s4224_s26 = scalar_lea.vmem %s4223_s25, 32  ;;  %p4225_p13 = scmp.lt.s32.totalorder %s733_s21, %s4223_s25 }
  0xe5   : > { %p4220_p1 = pnand %p4218_p8, %p4764_p9  ;;  %p4226_p2 = scmp.lt.s32.totalorder %s4224_s26, %s4217_s29 }
  0xe7   : > { %p4221_p4 = pneg %p4220_p1  ;;  %p4227_p6 = por %p4226_p2, %p4225_p13 }
  0xe9   : > { %p4228_p7 = pnand %p4227_p6, %p4221_p4 }
  0xeb   : > { %4231 = shalt.err (!%p4228_p7)
}
  0xec   : > { %p5854_p12 = scmp.ne.s32.totalorder %s5840_s0, 0  ;;  %s5855_s11 = sld [smem:[#allocation43_spill]] }
  0xed   : > { %s743_s6 = scalar_lea.vmem [#allocation14], %s4722_s23 }
  0xee   : > { %3932 = dma.hbm_to_vmem [thread:$0]  (!%p5854_p12), %s4916_s5, 16, %s733_s21, %s4758_s14  }
  0xef   : > { %s750_s3 = sshll.u32 %s743_s6, 4  ;;  %s4944_s3 = int_to_ptr.vmem [resolvable:$true] %s750_s3 }
  0xf2   : > { %s4941_s22 = scalar_lea.hbm %s5855_s11, %s4747_s13  ;;  %s4237_s21 = scalar_lea.hbm %s5855_s11, 1024 }
  0xf3   : > { %s4232_s29 = scalar_lea.hbm %s4941_s22, 512  ;;  %p4238_p11 = scmp.lt.u32.totalorder %s4941_s22, %s5855_s11 }
  0xf4   : > { %p4233_p6 = scmp.ne.s32.totalorder %s4941_s22, %s4232_s29  ;;  %p4239_p10 = scmp.lt.u32.totalorder %s4237_s21, %s4232_s29 }
  0xf5   : > { %p4241_p8 = scmp.lt.u32.totalorder %s4232_s29, %s4941_s22 }
  0xf6   : > { %p4235_p0 = pnand %p4233_p6, %p4764_p9  ;;  %p4240_p3 = por %p4239_p10, %p4238_p11 }
  0xf8   : > { %p4236_p5 = pneg %p4235_p0  ;;  %p4242_p1 = por %p4241_p8, %p4240_p3 }
  0xfa   : > { %p4243_p4 = pnand %p4242_p1, %p4236_p5 }
  0xfc   : > { %4246 = shalt.err (!%p4243_p4)
}
  0xfd   : > { %s4247_s23 = scalar_lea.vmem %s4944_s3, 512  ;;  %s4523_s26 = smov [#allocation14]  }
  0xfe   : > { %p4248_p13 = scmp.ne.s32.totalorder %s4944_s3, %s4247_s23  ;;  %s4252_s20 = sshll.u32 %s4523_s26, 4  ;;  %s4253_s20 = int_to_ptr.vmem [resolvable:$false] %s4252_s20 }
  0xff   : > { %s4254_s30 = scalar_lea.vmem %s4253_s20, 1024  ;;  %p4255_p6 = scmp.lt.s32.totalorder %s4944_s3, %s4253_s20 }
 0x100   : > { %p4250_p2 = pnand %p4248_p13, %p4764_p9  ;;  %p4256_p0 = scmp.lt.s32.totalorder %s4254_s30, %s4247_s23 }
 0x102   : > { %p4251_p7 = pneg %p4250_p2  ;;  %p4257_p11 = por %p4256_p0, %p4255_p6 }
 0x104   : > { %p4258_p10 = pnand %p4257_p11, %p4251_p7 }
 0x106   : > { %4261 = shalt.err (!%p4258_p10)
}
 0x107   : > { %3935 = dma.hbm_to_vmem [thread:$0]  (!%p5854_p12), %s4941_s22, 512, %s4944_s3, %s4758_s14, %s5848_s18, %s5848_s18, %s4517_s19  }
 0x108   : > { %s5856_s12 = sld [smem:[#allocation44_spill]]  ;;  %s763_s5 = scalar_lea.vmem [#allocation15], %s4706_s24 }
 0x109   : > { %s770_s21 = sshll.u32 %s763_s5, 4  ;;  %s3495_s25 = sshll.u32 %s4706_s24, 9  ;;  %s771_s21 = int_to_ptr.vmem [resolvable:$true] %s770_s21 }
 0x10e   : > { %s4975_s28 = scalar_lea.hbm %s5856_s12, %s4835_s4  ;;  %s4267_s3 = scalar_lea.hbm %s5856_s12, 32 }
 0x10f   : > { %s4262_s13 = scalar_lea.hbm %s4975_s28, 16  ;;  %p4268_p1 = scmp.lt.u32.totalorder %s4975_s28, %s5856_s12 }
 0x110   : > { %p4263_p5 = scmp.ne.s32.totalorder %s4975_s28, %s4262_s13  ;;  %p4269_p4 = scmp.lt.u32.totalorder %s4267_s3, %s4262_s13 }
 0x111   : > { %p4271_p2 = scmp.lt.u32.totalorder %s4262_s13, %s4975_s28 }
 0x112   : > { %p4265_p3 = pnand %p4263_p5, %p4764_p9  ;;  %p4270_p13 = por %p4269_p4, %p4268_p1 }
 0x114   : > { %p4266_p8 = pneg %p4265_p3  ;;  %p4272_p7 = por %p4271_p2, %p4270_p13 }
 0x116   : > { %p4273_p6 = pnand %p4272_p7, %p4266_p8 }
 0x118   : > { %4276 = shalt.err (!%p4273_p6)
}
 0x119   : > { %s4277_s30 = scalar_lea.vmem %s771_s21, 16  ;;  %s4524_s6 = smov [#allocation15]  }
 0x11a   : > { %p4278_p0 = scmp.ne.s32.totalorder %s771_s21, %s4277_s30  ;;  %s4282_s29 = sshll.u32 %s4524_s6, 4  ;;  %s4283_s29 = int_to_ptr.vmem [resolvable:$false] %s4282_s29 }
 0x11b   : > { %s4284_s5 = scalar_lea.vmem %s4283_s29, 32  ;;  %p4285_p5 = scmp.lt.s32.totalorder %s771_s21, %s4283_s29 }
 0x11c   : > { %p4280_p11 = pnand %p4278_p0, %p4764_p9  ;;  %p4286_p3 = scmp.lt.s32.totalorder %s4284_s5, %s4277_s30 }
 0x11e   : > { %p4281_p10 = pneg %p4280_p11  ;;  %p4287_p12 = por %p4286_p3, %p4285_p5 }
 0x120   : > { %p4288_p1 = pnand %p4287_p12, %p4281_p10 }
 0x122   : > { %4291 = shalt.err (!%p4288_p1)
}
 0x123   : > { %p5857_p4 = scmp.ne.s32.totalorder %s5840_s0, 0  ;;  %s3552_s13 = sshll.u32 %s4512_s27, 13 }
 0x124   : > { %s5858_s15 = sld [smem:[#allocation47_spill]]  ;;  %s793_s26 = scalar_lea.vmem [#allocation16], %s3495_s25 }
 0x125   : > { %3938 = dma.hbm_to_vmem [thread:$0]  (!%p5857_p4), %s4975_s28, 16, %s771_s21, %s4758_s14  }
 0x126   : > { %s800_s20 = sshll.u32 %s793_s26, 4  ;;  %s5005_s20 = int_to_ptr.vmem [resolvable:$true] %s800_s20 }
 0x12a   : > { %s5001_s3 = scalar_lea.hbm %s5858_s15, %s3552_s13  ;;  %s4297_s6 = scalar_lea.hbm %s5858_s15, 16384 }
 0x12b   : > { %s4292_s30 = scalar_lea.hbm %s5001_s3, 8192  ;;  %p4298_p2 = scmp.lt.u32.totalorder %s5001_s3, %s5858_s15 }
 0x12c   : > { %p4293_p12 = scmp.ne.s32.totalorder %s5001_s3, %s4292_s30  ;;  %p4299_p7 = scmp.lt.u32.totalorder %s4297_s6, %s4292_s30 }
 0x12d   : > { %p4301_p0 = scmp.lt.u32.totalorder %s4292_s30, %s5001_s3 }
 0x12e   : > { %p4295_p8 = pnand %p4293_p12, %p4764_p9  ;;  %p4300_p6 = por %p4299_p7, %p4298_p2 }
 0x130   : > { %p4296_p13 = pneg %p4295_p8  ;;  %p4302_p11 = por %p4301_p0, %p4300_p6 }
 0x132   : > { %p4303_p10 = pnand %p4302_p11, %p4296_p13 }
 0x134   : > { %4306 = shalt.err (!%p4303_p10)
}
 0x135   : > { %s4307_s25 = scalar_lea.vmem %s5005_s20, 8192  ;;  %s4525_s13 = smov [#allocation16]  }
 0x136   : > { %p4308_p5 = scmp.ne.s32.totalorder %s5005_s20, %s4307_s25  ;;  %s4312_s23 = sshll.u32 %s4525_s13, 4  ;;  %s4313_s23 = int_to_ptr.vmem [resolvable:$false] %s4312_s23 }
 0x137   : > { %s4314_s22 = scalar_lea.vmem %s4313_s23, 16384  ;;  %p4315_p12 = scmp.lt.s32.totalorder %s5005_s20, %s4313_s23 }
 0x138   : > { %p4310_p3 = pnand %p4308_p5, %p4764_p9  ;;  %p4316_p8 = scmp.lt.s32.totalorder %s4314_s22, %s4307_s25 }
 0x13a   : > { %p4311_p1 = pneg %p4310_p3  ;;  %p4317_p2 = por %p4316_p8, %p4315_p12 }
 0x13c   : > { %p4318_p7 = pnand %p4317_p2, %p4311_p1 }
 0x13e   : > { %4321 = shalt.err (!%p4318_p7)
}
 0x13f   : > { %s4526_s26 = smov 2048   ;;  %s3498_s30 = sshll.u32 %s4706_s24, 4 }
 0x140   : > { %3941 = dma.hbm_to_vmem [thread:$0]  (!%p5857_p4), %s5001_s3, 8192, %s5005_s20, %s4758_s14, %s4526_s26, %s4526_s26, %s5848_s18  }
 0x141   : > { %s3553_s28 = sshll.u32 %s4512_s27, 8  ;;  %s814_s5 = scalar_lea.vmem [#allocation17], %s3498_s30 }
 0x142   : > { %s5035_s29 = scalar_lea.hbm %s5768_s16, %s3553_s28  ;;  %s822_s25 = sshll.u32 %s814_s5, 4  ;;  %s823_s25 = int_to_ptr.vmem [resolvable:$true] %s822_s25 }
 0x143   : > { %s3501_s13 = sshll.u32 %s4706_s24, 11  ;;  %s4322_s23 = scalar_lea.hbm %s5035_s29, 256 }
 0x144   : > { %p4323_p13 = scmp.ne.s32.totalorder %s5035_s29, %s4322_s23  ;;  %s4327_s22 = scalar_lea.hbm %s5768_s16, 512 }
 0x145   : > { %p4328_p11 = scmp.lt.u32.totalorder %s5035_s29, %s5768_s16  ;;  %p4329_p10 = scmp.lt.u32.totalorder %s4327_s22, %s4322_s23 }
 0x146   : > { %p4325_p6 = pnand %p4323_p13, %p4764_p9  ;;  %p4331_p3 = scmp.lt.u32.totalorder %s4322_s23, %s5035_s29 }
 0x147   : > { %p4330_p5 = por %p4329_p10, %p4328_p11 }
 0x148   : > { %p4326_p0 = pneg %p4325_p6 }
 0x149   : > { %p4332_p1 = por %p4331_p3, %p4330_p5 }
 0x14b   : > { %p4333_p12 = pnand %p4332_p1, %p4326_p0 }
 0x14d   : > { %4336 = shalt.err (!%p4333_p12)
}
 0x14e   : > { %s4337_s30 = scalar_lea.vmem %s823_s25, 256  ;;  %s4527_s21 = smov [#allocation17]  }
 0x14f   : > { %p4338_p8 = scmp.ne.s32.totalorder %s823_s25, %s4337_s30  ;;  %s4342_s6 = sshll.u32 %s4527_s21, 4  ;;  %s4343_s6 = int_to_ptr.vmem [resolvable:$false] %s4342_s6 }
 0x150   : > { %s4344_s5 = scalar_lea.vmem %s4343_s6, 512  ;;  %p4345_p13 = scmp.lt.s32.totalorder %s823_s25, %s4343_s6 }
 0x151   : > { %p4340_p2 = pnand %p4338_p8, %p4764_p9  ;;  %p4346_p6 = scmp.lt.s32.totalorder %s4344_s5, %s4337_s30 }
 0x153   : > { %p4341_p7 = pneg %p4340_p2  ;;  %p4347_p4 = por %p4346_p6, %p4345_p13 }
 0x155   : > { %p4348_p10 = pnand %p4347_p4, %p4341_p7 }
 0x157   : > { %4351 = shalt.err (!%p4348_p10)
}
 0x158   : > { %p5859_p11 = scmp.ne.s32.totalorder %s5840_s0, 0  ;;  %s3554_s23 = sshll.u32 %s4512_s27, 15 }
 0x159   : > { %s833_s3 = scalar_lea.vmem [#allocation18], %s3501_s13  ;;  %s5062_s28 = scalar_lea.hbm %s5769_s17, %s3554_s23 }
 0x15a   : > { %3944 = dma.hbm_to_vmem [thread:$0]  (!%p5859_p11), %s5035_s29, 256, %s823_s25, %s4758_s14  }
 0x15b   : > { %s840_s20 = sshll.u32 %s833_s3, 4  ;;  %s4352_s30 = scalar_lea.hbm %s5062_s28, 32768  ;;  %s5064_s20 = int_to_ptr.vmem [resolvable:$true] %s840_s20 }
 0x15c   : > { %p4353_p4 = scmp.ne.s32.totalorder %s5062_s28, %s4352_s30  ;;  %s4357_s25 = scalar_lea.hbm %s5769_s17, 65536 }
 0x15d   : > { %p4358_p3 = scmp.lt.u32.totalorder %s5062_s28, %s5769_s17  ;;  %p4359_p1 = scmp.lt.u32.totalorder %s4357_s25, %s4352_s30 }
 0x15e   : > { %p4355_p0 = pnand %p4353_p4, %p4764_p9  ;;  %p4361_p8 = scmp.lt.u32.totalorder %s4352_s30, %s5062_s28 }
 0x15f   : > { %p4360_p12 = por %p4359_p1, %p4358_p3 }
 0x160   : > { %p4356_p5 = pneg %p4355_p0 }
 0x161   : > { %p4362_p2 = por %p4361_p8, %p4360_p12 }
 0x163   : > { %p4363_p7 = pnand %p4362_p2, %p4356_p5 }
 0x165   : > { %4366 = shalt.err (!%p4363_p7)
}
 0x166   : > { %s4367_s6 = scalar_lea.vmem %s5064_s20, 32768  ;;  %s4528_s5 = smov [#allocation18]  }
 0x167   : > { %p4368_p13 = scmp.ne.s32.totalorder %s5064_s20, %s4367_s6  ;;  %s4372_s23 = sshll.u32 %s4528_s5, 4  ;;  %s4373_s23 = int_to_ptr.vmem [resolvable:$false] %s4372_s23 }
 0x168   : > { %s4374_s3 = scalar_lea.vmem %s4373_s23, 65536  ;;  %p4375_p4 = scmp.lt.s32.totalorder %s5064_s20, %s4373_s23 }
 0x169   : > { %p4370_p6 = pnand %p4368_p13, %p4764_p9  ;;  %p4376_p0 = scmp.lt.s32.totalorder %s4374_s3, %s4367_s6 }
 0x16b   : > { %p4371_p10 = pneg %p4370_p6  ;;  %p4377_p3 = por %p4376_p0, %p4375_p4 }
 0x16d   : > { %p4378_p1 = pnand %p4377_p3, %p4371_p10 }
 0x16f   : > { %4381 = shalt.err (!%p4378_p1)
}
 0x170   : > { %3947 = dma.hbm_to_vmem [thread:$0]  (!%p5859_p11), %s5062_s28, 32768, %s5064_s20, %s4758_s14, %s5848_s18, %s5848_s18, %s4517_s19  }
 0x171   : > { %s4529_s22 = smov [#allocation6]   ;;  %s5860_s29 = sld [smem:[#allocation48_spill]] }
 0x172   : > { %s608_s26 = sshll.u32 %s4529_s22, 4  ;;  %s853_s13 = scalar_lea.vmem [#allocation19], %s4706_s24  ;;  %s609_s26 = int_to_ptr.vmem [resolvable:$true] %s608_s26 }
 0x173   : > { %s860_s21 = sshll.u32 %s853_s13, 4  ;;  %s5861_s23 = sld [smem:[#allocation34_spill]]  ;;  %s861_s21 = int_to_ptr.vmem [resolvable:$true] %s860_s21 }
 0x174   : > { %p5862_p12 = scmp.ne.s32.totalorder %s5839_s2, 0 }
 0x176   : > { %p5863_p8 = pneg %p5862_p12 }
 0x177   : > { %s5095_s25 = scalar_lea.hbm %s5860_s29, %s4835_s4 }
 0x179   : > { %s4382_s3 = scalar_lea.hbm %s5861_s23, 16 }
 0x17a   : > { %p4383_p5 = scmp.ne.s32.totalorder %s5861_s23, %s4382_s3  ;;  %p4389_p13 = scmp.lt.u32.totalorder %s4382_s3, %s5861_s23 }
 0x17c   : > { %p4385_p2 = pnand %p4383_p5, %p5863_p8 }
 0x17e   : > { %p4386_p7 = pneg %p4385_p2 }
 0x180   : > { %p4391_p6 = pnand %p4389_p13, %p4386_p7 }
 0x182   : > { %4394 = shalt.err (!%p4391_p6)
}
 0x183   : > { %s4395_s24 = scalar_lea.vmem %s609_s26, 16  ;;  %p5864_p4 = pmov %p5863_p8 }
 0x184   : > { %p4396_p10 = scmp.ne.s32.totalorder %s609_s26, %s4395_s24  ;;  %s4402_s4 = scalar_lea.vmem %s609_s26, 32 }
 0x185   : > { %p4403_p1 = scmp.lt.s32.totalorder %s609_s26, %s609_s26  ;;  %p4404_p11 = scmp.lt.s32.totalorder %s4402_s4, %s4395_s24 }
 0x186   : > { %p4398_p0 = pnand %p4396_p10, %p5864_p4 }
 0x187   : > { %p4405_p9 = por %p4404_p11, %p4403_p1 }
 0x188   : > { %p4399_p3 = pneg %p4398_p0 }
 0x18a   : > { %p4406_p5 = pnand %p4405_p9, %p4399_p3 }
 0x18c   : > { %4409 = shalt.err (!%p4406_p5)
}
 0x18d   : > { %3913 = dma.hbm_to_vmem [thread:$0]  (!%p5862_p12), %s5861_s23, 16, %s609_s26, [#allocation7]  }
 0x18e   : > { %s4410_s20 = scalar_lea.hbm %s5095_s25, 16  ;;  %p5865_p2 = scmp.ne.s32.totalorder %s5845_s1, 0 }
 0x18f   : > { %p4411_p8 = scmp.ne.s32.totalorder %s5095_s25, %s4410_s20  ;;  %s4415_s30 = scalar_lea.hbm %s5860_s29, 32 }
 0x190   : > { %p4416_p9 = scmp.lt.u32.totalorder %s5095_s25, %s5860_s29  ;;  %p4417_p11 = scmp.lt.u32.totalorder %s4415_s30, %s4410_s20 }
 0x191   : > { %p4413_p7 = pnand %p4411_p8, %p5865_p2  ;;  %p4419_p10 = scmp.lt.u32.totalorder %s4410_s20, %s5095_s25 }
 0x192   : > { %p4418_p6 = por %p4417_p11, %p4416_p9 }
 0x193   : > { %p4414_p13 = pneg %p4413_p7 }
 0x194   : > { %p4420_p4 = por %p4419_p10, %p4418_p6 }
 0x196   : > { %p4421_p0 = pnand %p4420_p4, %p4414_p13 }
 0x198   : > { %4424 = shalt.err (!%p4421_p0)
}
 0x199   : > { %s4425_s26 = scalar_lea.vmem %s861_s21, 16  ;;  %s4530_s13 = smov [#allocation19]  }
 0x19a   : > { %p4426_p12 = scmp.ne.s32.totalorder %s861_s21, %s4425_s26  ;;  %s4430_s6 = sshll.u32 %s4530_s13, 4  ;;  %s4431_s6 = int_to_ptr.vmem [resolvable:$false] %s4430_s6 }
 0x19b   : > { %s4432_s5 = scalar_lea.vmem %s4431_s6, 32  ;;  %p4433_p5 = scmp.lt.s32.totalorder %s861_s21, %s4431_s6 }
 0x19c   : > { %p4428_p3 = pnand %p4426_p12, %p5865_p2  ;;  %p4434_p8 = scmp.lt.s32.totalorder %s4432_s5, %s4425_s26 }
 0x19e   : > { %p4429_p1 = pneg %p4428_p3  ;;  %p4435_p7 = por %p4434_p8, %p4433_p5 }
 0x1a0   : > { %p4436_p9 = pnand %p4435_p7, %p4429_p1 }
 0x1a2   : > { %4439 = shalt.err (!%p4436_p9)
}
 0x1a3   : > { %p5866_p11 = scmp.ne.s32.totalorder %s5840_s0, 0  ;;  %s5867_s3 = sld [smem:[#allocation31_spill]] }
 0x1a5   : > { %3950 = dma.hbm_to_vmem [thread:$0]  (!%p5866_p11), %s5095_s25, 16, %s861_s21, %s4758_s14  }
 0x1a9   : > { %p5868_p13 = scmp.ne.s32.totalorder %s5867_s3, 0 }
 0x1aa   : > { %s5869_s1 = sld [smem:[#allocation27_spill]] (!%p5868_p13) }
 0x1ab   : > { %881 = sbr.rel (%p5868_p13) target bundleno = 3007 (0xbbf), region = 104 }
 0x1b0   : > { %p5870_p2 = scmp.eq.s32.totalorder (!%p5868_p13), %s5869_s1, 0 }
 0x1b2   : > { %4483 = dma.done.wait (%p5870_p2), [#allocation4], 128   ;;  %p5871_p6 = pmov %p5870_p2 }
 0x1b3   : > { %p5872_p10 = pmov %p5870_p2 }
 0x1b4   : > { %4485 = vsyncadd (%p5871_p6), [#allocation4], 4294967168 }
 0x1b5   : > { %4487 = dma.done.wait (%p5872_p10), [#allocation7], 16   ;;  %p5873_p4 = pmov %p5870_p2 }
 0x1b6   : > { %s5874_s0 = sld [smem:[#allocation25_spill]]  ;;  %s5875_s19 = sld [smem:[#allocation30_spill]] }
 0x1b7   : > { %4489 = vsyncadd (%p5873_p4), [#allocation7], 4294967280  ;;  %s891_s18 = sand.u32 1, %s5869_s1  }
 0x1b8   : > { %s892_s21 = scalar_lea.sflag [#allocation4], %s891_s18 }
 0x1bc   : > { %s5148_s14 = sand.u32 1, %s5874_s0   ;;  %p5876_p0 = scmp.ne.s32.totalorder %s5875_s19, 0 }
 0x1bd   : > { %s3508_s25 = sshll.u32 %s5148_s14, 5 }
 0x1be   : > { %s5151_s24 = scalar_lea.vmem [#allocation8], %s3508_s25 }
 0x1bf   : > { %4491 = dma.done.wait (%p5876_p0), %s892_s21, 43344  }
 0x1c0   : > { %4493 = vsyncadd (%p5876_p0), %s892_s21, 4294923952  ;;  %s3512_s4 = sshll.u32 %s5148_s14, 9  ;;  %s3513_s7 = sshll.u32 %s5148_s14, 4 }
 0x1c1   : > { %s3514_s8 = sshll.u32 %s5148_s14, 11  ;;  %p1105_p12 = scmp.lt.s32.totalorder %s5869_s1, 1 }
 0x1c2   : > { %s5878_s13 = sld [smem:[#allocation46_spill]]  ;;  %s5879_s0 = sld [smem:[#allocation49_spill]] }
 0x1c3   : > { %s5162_s20 = scalar_select %p1105_p12, %s5869_s1, 1 }
 0x1c4   : > { %s5880_s9 = sld [smem:[#allocation50_spill]]  ;;  %s5180_s11 = scalar_lea.vmem [#allocation9], %s3508_s25 }
 0x1c5   : > { %s5182_s12 = scalar_lea.vmem [#allocation10], %s3508_s25  ;;  %s921_s28 = scalar_lea.vmem [#allocation11], %s5148_s14 }
 0x1c6   : > { %s929_s22 = scalar_lea.vmem [#allocation12], %s5148_s14  ;;  %s937_s15 = scalar_lea.vmem [#allocation13], %s5148_s14 }
 0x1c7   : > { %s5187_s30 = scalar_lea.vmem [#allocation14], %s3508_s25  ;;  %s954_s2 = scalar_lea.vmem [#allocation15], %s5148_s14 }
 0x1c8   : > { %s1110_s6 = scalar_lea.vmem %s5878_s13, %s5162_s20  ;;  %s1113_s19 = scalar_lea.vmem %s5879_s0, %s5162_s20 }
 0x1c9   : > { %s5190_s27 = scalar_lea.vmem [#allocation16], %s3512_s4  ;;  %s5192_s26 = scalar_lea.vmem [#allocation17], %s3513_s7 }
 0x1ca   : > { %s1116_s10 = scalar_lea.vmem %s5880_s9, %s5162_s20  ;;  %s5194_s13 = scalar_lea.vmem [#allocation18], %s3514_s8 }
 0x1cb   : > { %s989_s5 = scalar_lea.vmem [#allocation19], %s5148_s14  ;;  %p5881_p3 = scmp.ne.s32.totalorder %s5869_s1, 0 }
 0x1cc   : > { %v1124_v0 = vld [vmem:[#allocation3] sm:$0xff] (!%p5881_p3)  ;;  %vm1138_vm0 = vcmask (!%p5881_p3), 1043456   ;;  %s5882_s0 = sld [smem:[#allocation32_spill]] (!%p5881_p3)  ;;  %v4531_v3 = vmov (!%p5881_p3), 0.0   ;;  %vm4532_vm1 = vmmov (!%p5881_p3), 0   ;;  %vm1134_vm2 = vcmask (!%p5881_p3), 64512  }
 0x1cd   : > { %1121 = sbr.rel (%p5881_p3) target bundleno = 688 (0x2b0), region = 164  ;;  %3765 = vmatprep.subr.bf16.mxu0 (!%p5881_p3), %v4531_v3  ;;  %v1126_v4 = vpack.c.bf16 (!%p5881_p3), %v1124_v0, %v1124_v0  ;;  %3767 = vmatprep.mubr.msk.bf16.mxu0 (!%p5881_p3), %vm4532_vm1, %v4531_v3  ;;  %v3516_v7 = vld [vmem:[#allocation6] ss:$0 sm:$0xff] (!%p5881_p3)  ;;  %s5883_s7 = sld [smem:[#allocation35_spill]] (!%p5881_p3)  ;;  %vm1187_vm3 = vcmask (!%p5881_p3), 261120  }
 0x1cf   : > { %v1140_v5 = vsel (!%p5881_p3), %vm1138_vm0, %v1126_v4, 0 }
 0x1d0   : > { %3766 = vmatpush3.bf16.msra.mxu0 (!%p5881_p3), %v1140_v5 }
 0x1d2   : > { %v1122_v1 = vld [vmem:[%s5882_s0] sm:$0xff] (!%p5881_p3)  ;;  %v1123_v2 = vld [vmem:[%s5882_s0 + $0x8] sm:$0xff] (!%p5881_p3) }
 0x1d3   : > { %v1125_v6 = vpack.c.bf16 (!%p5881_p3), %v1123_v2, %v1122_v1  ;;  %v1183_v9 = vld [vmem:[%s5883_s7] sm:$0xff] (!%p5881_p3)  ;;  %v1184_v13 = vld [vmem:[%s5883_s7 + $0x8] sm:$0xff] (!%p5881_p3) }
 0x1d5   : > { %3768 = vmatmul.mubr.msk.bf16.vlgmr.msra.gmra.mrb[0].mxu0 %vm1134_vm2, %v1125_v6 }
 0x2a8   : > { %v1176_v8 = vpop.f32.mrb[0].mxu0 }
 0x2a9   : > { %v1177_v10 = vadd.f32 %v3516_v7, %v1176_v8  ;;  %v3769_v11 = vpop.f32.mrb[1].mxu0 }
 0x2aa   : > { %v1179_v12 = vpop.f32.mrb[2].mxu0 }
 0x2ab   : > { %v1185_v14 = vadd.f32 %v1183_v9, %v1177_v10  ;;  %v1180_v15 = vadd.f32 %v3516_v7, %v1179_v12  ;;  %v3770_v16 = vpop.f32.mrb[3].mxu0 }
 0x2ad   : > { %1188 = vst.msk [vmem:[#allocation2] sm:$0xff] %vm1187_vm3, %v1185_v14  ;;  %v1186_v17 = vadd.f32 %v1184_v13, %v1180_v15 }
 0x2af   : > { %1189 = vst.msk [vmem:[#allocation2 + $0x8] sm:$0xff] %vm1187_vm3, %v1186_v17 }
 0x2b0 PF: > { %v1192_v18 = vld [vmem:[%s5151_s24] sm:$0xff]  ;;  %v1193_v19 = vld [vmem:[%s5151_s24 + $0x8] sm:$0xff]  ;;  %v4533_v21 = vmov 0.0   ;;  %v1194_v24 = vld [vmem:[%s5151_s24 + $0x10] sm:$0xff]  ;;  %vm4534_vm4 = vmmov 0   ;;  %s5884_s9 = sld [smem:[#allocation36_spill]] }
 0x2b1   : > { %v1253_v20 = vld [vmem:[%s5180_s11] sm:$0xff]  ;;  %3771 = vmatprep.subr.bf16.mxu0 %v4533_v21  ;;  %3779 = vmatprep.subr.bf16.mxu1 %v4533_v21  ;;  %v1197_v22 = vpack.c.bf16 %v1193_v19, %v1192_v18  ;;  %v1254_v23 = vld [vmem:[%s5180_s11 + $0x8] sm:$0xff]  ;;  %v1195_v25 = vld [vmem:[%s5151_s24 + $0x18] sm:$0xff]  ;;  %vm1206_vm5 = vcmask 261120   ;;  %v4535_v41 = vmov 0.0|0.0  }
 0x2b2   : > { %v1257_v26 = vpack.c.bf16 %v1254_v23, %v1253_v20  ;;  %v1255_v27 = vld [vmem:[%s5180_s11 + $0x10] sm:$0xff]  ;;  %v1256_v28 = vld [vmem:[%s5180_s11 + $0x18] sm:$0xff]  ;;  %3775 = vmatprep.mubr.msk.bf16.mxu0 %vm4534_vm4, %v4533_v21  ;;  %3783 = vmatprep.mubr.msk.bf16.mxu1 %vm4534_vm4, %v4533_v21  ;;  %v1198_v29 = vpack.c.bf16 %v1195_v25, %v1194_v24  ;;  %v1307_v33 = vld [vmem:[%s5182_s12] sm:$0xff]  ;;  %s5890_s11 = sld [smem:[#allocation27_spill]] }
 0x2b3   : > { %3772 = vmatpush3.bf16.msra.mxu0 %v1197_v22  ;;  %v1258_v32 = vpack.c.bf16 %v1256_v28, %v1255_v27  ;;  %v1308_v34 = vld [vmem:[%s5182_s12 + $0x8] sm:$0xff]  ;;  %v1309_v39 = vld [vmem:[%s5182_s12 + $0x10] sm:$0xff]  ;;  %v1310_v40 = vld [vmem:[%s5182_s12 + $0x18] sm:$0xff] }
 0x2b4   : > { %v5225_v30 = vld [vmem:[#allocation2] sm:$0xff]  ;;  %3780 = vmatpush3.bf16.msra.mxu1 %v1257_v26  ;;  %3773 = vmatprep.subr.bf16.mxu0 %v4533_v21  ;;  %v1311_v38 = vpack.c.bf16 %v1308_v34, %v1307_v33  ;;  %v1312_v43 = vpack.c.bf16 %v1310_v40, %v1309_v39  ;;  %v1692_v8 = vld [vmem:[%s5187_s30 + $0x8] sm:$0xff]  ;;  %v1693_v10 = vld [vmem:[%s5187_s30 + $0x10] sm:$0xff] }
 0x2b5   : > { %3781 = vmatprep.subr.bf16.mxu1 %v4533_v21  ;;  %v3518_v47 = vld [vmem:[%s921_s28] ss:$0 sm:$0xff]  ;;  %v1694_v11 = vld [vmem:[%s5187_s30 + $0x18] sm:$0xff]  ;;  %s5885_s28 = sld [smem:[#allocation45_spill]] }
 0x2b6   : > { %v5227_v31 = vld [vmem:[#allocation2 + $0x8] sm:$0xff]  ;;  %v1361_v36 = vld [vmem:[%s5884_s9] sm:$0xff]  ;;  %v1363_v44 = vld [vmem:[%s5884_s9 + $0x10] sm:$0xff]  ;;  %v1697_v12 = vpack.c.bf16 %v1694_v11, %v1693_v10 }
 0x2b7   : > { %v1196_v35 = vpack.c.bf16 %v5227_v31, %v5225_v30  ;;  %v1362_v37 = vld [vmem:[%s5884_s9 + $0x8] sm:$0xff]  ;;  %3774 = vmatpush3.bf16.msra.mxu0 %v1198_v29  ;;  %v1364_v45 = vld [vmem:[%s5884_s9 + $0x18] sm:$0xff]  ;;  %v3520_v49 = vld [vmem:[%s929_s22] ss:$0 sm:$0xff] }
 0x2b8   : > { %3782 = vmatpush3.bf16.msra.mxu1 %v1258_v32  ;;  %3787 = vmatprep.subr.bf16.mxu0 %v4533_v21  ;;  %v3848_v42 = vpack.c.bf16 %v1362_v37, %v1361_v36  ;;  %v3851_v46 = vpack.c.bf16 %v1364_v45, %v1363_v44  ;;  %v1691_v7 = vld [vmem:[%s5187_s30] sm:$0xff]  ;;  %v1798_v10 = vld [vmem:[%s5190_s27 + $0x8] sm:$0xff]  ;;  %p3543_p1 = scmp.ne.s32.totalorder %s5890_s11, 1 }
 0x2b9   : > { %3847 = vmatprep.subr.bf16.mxu1 %v4535_v41  ;;  %v1696_v9 = vpack.c.bf16 %v1692_v8, %v1691_v7  ;;  %v3522_v39 = vld [vmem:[%s937_s15] ss:$0 sm:$0xff]  ;;  %v1802_v11 = vld [vmem:[%s5190_s27 + $0x88] sm:$0xff] }
 0x2ba   : > { %3776 = vmatmul.mubr.msk.bf16.vlgmr.msra.gmra.mrb[0].mxu0 %vm1206_vm5, %v1196_v35 }
 0x2bb   : > { %3784 = vmatmul.mubr.msk.bf16.vlgmr.msra.gmra.mrb[0].mxu1 %vm1206_vm5, %v1196_v35  ;;  %3788 = vmatpush3.bf16.msra.mxu0 %v1311_v38  ;;  %s5886_s22 = scalar_lea.vmem %s5885_s28, %s5162_s20 }
 0x2bc   : > { %3789 = vmatprep.subr.bf16.mxu0 %v4533_v21  ;;  %3791 = vmatprep.mubr.msk.bf16.mxu0 %vm4534_vm4, %v4533_v21 }
 0x2bd   : > { %3849 = vmatpush3.bf16.msra.mxu1 %v3848_v42  ;;  %3803 = vmatprep.mubr.msk.f32.mxu1 %vm4534_vm4, %v4533_v21 }
 0x2be   : > { %3850 = vmatprep.subr.bf16.mxu1 %v4535_v41 }
 0x2bf   : > { %3790 = vmatpush3.bf16.msra.mxu0 %v1312_v43 }
 0x2c0   : > { %3853 = vmatprep.subr.bf16.mxu0 %v4535_v41 }
 0x2c1   : > { %3852 = vmatpush3.bf16.msra.mxu1 %v3851_v46 }
 0x2c2   : > { %3792 = vmatmul.mubr.msk.bf16.vlgmr.msra.gmra.mrb[4].mxu0 %vm1206_vm5, %v1196_v35  ;;  %3859 = vmatprep.subr.bf16.mxu1 %v4535_v41 }
 0x2c3   : > { %3855 = vmatpush3.bf16.msra.mxu0 %v3848_v42  ;;  %3814 = vmatprep.mubr.msk.f32.mxu0 %vm4534_vm4, %v4533_v21 }
 0x2c4   : > { %3856 = vmatprep.subr.bf16.mxu0 %v4535_v41 }
 0x2c7   : > { %3858 = vmatpush3.bf16.msra.mxu0 %v3851_v46 }
 0x2c8   : > { %3865 = vmatprep.subr.bf16.mxu0 %v4535_v41 }
 0x38d   : > { %v1244_v48 = vpop.f32.mrb[0].mxu0 }
 0x38e   : > { %v1245_v50 = vadd.f32 %v3518_v47, %v1244_v48  ;;  %v1300_v51 = vpop.f32.mrb[0].mxu1  ;;  %v3777_v52 = vpop.f32.mrb[1].mxu0 }
 0x38f   : > { %v3785_v53 = vpop.f32.mrb[1].mxu1  ;;  %v1247_v54 = vpop.f32.mrb[2].mxu0  ;;  %v1301_v56 = vadd.f32 %v3520_v49, %v1300_v51 }
 0x390   : > { %v1251_v55 = vmul.f32 0.35355338, %v1245_v50  ;;  %v1248_v57 = vadd.f32 %v3518_v47, %v1247_v54  ;;  %v1303_v58 = vpop.f32.mrb[2].mxu1  ;;  %v3778_v59 = vpop.f32.mrb[3].mxu0 }
 0x391   : > { %v1304_v60 = vadd.f32 %v3520_v49, %v1303_v58  ;;  %v3786_v61 = vpop.f32.mrb[3].mxu1 }
 0x392   : > { %v1365_v62 = vmul.f32 %v1301_v56, %v1251_v55  ;;  %v1252_v63 = vmul.f32 0.35355338, %v1248_v57 }
 0x393   : > { %v1439_v0 = vmul.f32 %v1304_v60, %v1251_v55  ;;  %v3528_v55 = vld [vmem:[%s954_s2] ss:$0 sm:$0xff] }
 0x394   : > { %v1528_v1 = vmul.f32 %v1301_v56, %v1252_v63  ;;  %v1602_v2 = vmul.f32 %v1304_v60, %v1252_v63  ;;  %3804 = vmatmul.mubr.msk.f32.vlgmr.msra.gmra.mrb[4].mxu1 %vm1206_vm5, %v1365_v62 }
 0x395   : > { %3815 = vmatmul.mubr.msk.f32.vlgmr.msra.gmra.mrb[8].mxu0 %vm1206_vm5, %v1439_v0  ;;  %3861 = vmatpush3.bf16.msra.mxu1 %v3848_v42  ;;  %v1354_v3 = vpop.f32.mrb[4].mxu0 }
 0x396   : > { %3867 = vmatpush3.bf16.msra.mxu0 %v3848_v42  ;;  %3862 = vmatprep.subr.bf16.mxu1 %v4535_v41  ;;  %v3793_v4 = vpop.f32.mrb[5].mxu0 }
 0x397   : > { %3868 = vmatprep.subr.bf16.mxu0 %v4535_v41  ;;  %3825 = vmatprep.mubr.msk.f32.mxu1 %vm4534_vm4, %v4533_v21  ;;  %v1357_v5 = vpop.f32.mrb[6].mxu0  ;;  %v1355_v41 = vadd.f32 %v3522_v39, %v1354_v3 }
 0x398   : > { %3836 = vmatprep.mubr.msk.f32.mxu0 %vm4534_vm4, %v4533_v21  ;;  %v3794_v6 = vpop.f32.mrb[7].mxu0  ;;  %v1358_v42 = vadd.f32 %v3522_v39, %v1357_v5 }
 0x399   : > { %3864 = vmatpush3.bf16.msra.mxu1 %v3851_v46 }
 0x39a   : > { %3870 = vmatpush3.bf16.msra.mxu0 %v3851_v46  ;;  %3839 = vmatprep.subr.bf16.mxu1 %v4533_v21 }
 0x39c   : > { %3826 = vmatmul.mubr.msk.f32.vlgmr.msra.gmra.mrb[6].mxu1 %vm1206_vm5, %v1528_v1 }
 0x39d   : > { %3837 = vmatmul.mubr.msk.f32.vlgmr.msra.gmra.mrb[10].mxu0 %vm1206_vm5, %v1602_v2  ;;  %3843 = vmatprep.mubr.msk.bf16.mxu1 %vm4534_vm4, %v4533_v21 }
 0x39e   : > { %3840 = vmatpush3.bf16.msra.mxu1 %v1696_v9 }
 0x39f   : > { %3841 = vmatprep.subr.bf16.mxu1 %v4533_v21 }
 0x3a2   : > { %3842 = vmatpush3.bf16.msra.mxu1 %v1697_v12  ;;  %v1800_v12 = vld [vmem:[%s5190_s27 + $0x18] sm:$0xff] }
 0x467   : > { %v1435_v13 = vpop.f32.mrb[4].mxu1 }
 0x468   : > { %v1509_v14 = vpop.f32.mrb[8].mxu0  ;;  %v3805_v15 = vpop.f32.mrb[5].mxu1 }
 0x469   : > { %v1513_v16 = vmax.f32 %v1435_v13, %v1509_v14  ;;  %v3816_v17 = vpop.f32.mrb[9].mxu0  ;;  %v1797_v15 = vld [vmem:[%s5190_s27] sm:$0xff] }
 0x46b   : > { %v1514_v18 = vsub.f32 %v1435_v13, %v1513_v16  ;;  %v1517_v19 = vsub.f32 %v1509_v14, %v1513_v16  ;;  %v1814_v13 = vpack.c.bf16 %v1802_v11, %v1798_v10  ;;  %v1804_v14 = vld [vmem:[%s5190_s27 + $0x98] sm:$0xff]  ;;  %v1801_v16 = vld [vmem:[%s5190_s27 + $0x80] sm:$0xff]  ;;  %v2201_v11 = vld [vmem:[%s5194_s13 + $0x288] sm:$0xff] }
 0x46c   : > { %v1816_v17 = vpack.c.bf16 %v1804_v14, %v1800_v12  ;;  %v2200_v10 = vld [vmem:[%s5194_s13 + $0x280] sm:$0xff] }
 0x46d   : > { %v1515_v20 = vmul.f32 1.442695, %v1514_v18  ;;  %v1518_v22 = vmul.f32 1.442695, %v1517_v19  ;;  %v1813_v18 = vpack.c.bf16 %v1801_v16, %v1797_v15  ;;  %v1799_v19 = vld [vmem:[%s5190_s27 + $0x10] sm:$0xff]  ;;  %1846 = vmatprep.subr.bf16.mxu0 %v1814_v13  ;;  %v2232_v12 = vld [vmem:[%s5194_s13 + $0x380] sm:$0xff] }
 0x46e   : > { %1889 = vmatprep.subr.bf16.mxu1 %v1816_v17  ;;  %v2233_v13 = vld [vmem:[%s5194_s13 + $0x388] sm:$0xff]  ;;  %v2184_v16 = vld [vmem:[%s5194_s13 + $0x200] sm:$0xff] }
 0x46f   : > { %4004 = vpow2.f32 %v1515_v20  ;;  %v1598_v23 = vpop.f32.mrb[6].mxu1  ;;  %v1803_v20 = vld [vmem:[%s5190_s27 + $0x90] sm:$0xff]  ;;  %1847 = vmatpush1.bf16.msra.mxu0 %v1813_v18  ;;  %v2185_v17 = vld [vmem:[%s5194_s13 + $0x208] sm:$0xff]  ;;  %v2256_v18 = vpack.c.bf16 %v2201_v11, %v2200_v10 }
 0x470   : > { %4006 = vpow2.f32 %v1518_v22  ;;  %v1672_v24 = vpop.f32.mrb[10].mxu0  ;;  %v3827_v25 = vpop.f32.mrb[7].mxu1  ;;  %v1815_v22 = vpack.c.bf16 %v1803_v20, %v1799_v19  ;;  %v2272_v19 = vpack.c.bf16 %v2233_v13, %v2232_v12  ;;  %v2216_v20 = vld [vmem:[%s5194_s13 + $0x300] sm:$0xff]  ;;  %v2225_v10 = vld [vmem:[%s5194_s13 + $0x348] sm:$0xff]  ;;  %v2210_v12 = vld [vmem:[%s5194_s13 + $0x2d0] sm:$0xff] }
 0x471   : > { %v1676_v21 = vmax.f32 %v1598_v23, %v1672_v24  ;;  %v3838_v26 = vpop.f32.mrb[11].mxu0  ;;  %v1808_v25 = vld [vmem:[%s5190_s27 + $0x118] sm:$0xff] }
 0x472   : > { %v1812_v26 = vld [vmem:[%s5190_s27 + $0x198] sm:$0xff] }
 0x473   : > { %v1677_v27 = vsub.f32 %v1598_v23, %v1676_v21  ;;  %v1680_v28 = vsub.f32 %v1672_v24, %v1676_v21  ;;  %v1806_v23 = vld [vmem:[%s5190_s27 + $0x108] sm:$0xff]  ;;  %v2211_v13 = vld [vmem:[%s5194_s13 + $0x2d8] sm:$0xff] }
 0x474   : > { %v1810_v24 = vld [vmem:[%s5190_s27 + $0x188] sm:$0xff] }
 0x475   : > { %v1678_v29 = vmul.f32 1.442695, %v1677_v27  ;;  %v1681_v32 = vmul.f32 1.442695, %v1680_v28  ;;  %v1818_v21 = vpack.c.bf16 %v1810_v24, %v1806_v23  ;;  %v1805_v27 = vld [vmem:[%s5190_s27 + $0x100] sm:$0xff]  ;;  %v2202_v23 = vld [vmem:[%s5194_s13 + $0x290] sm:$0xff] }
 0x476   : > { %v1809_v28 = vld [vmem:[%s5190_s27 + $0x180] sm:$0xff]  ;;  %v2203_v24 = vld [vmem:[%s5194_s13 + $0x298] sm:$0xff] }
 0x477   : > { %4008 = vpow2.f32 %v1678_v29  ;;  %v1820_v29 = vpack.c.bf16 %v1812_v26, %v1808_v25  ;;  %1848 = vmatprep.subr.bf16.mxu0 %v1818_v21  ;;  %v2234_v25 = vld [vmem:[%s5194_s13 + $0x390] sm:$0xff]  ;;  %v2235_v21 = vld [vmem:[%s5194_s13 + $0x398] sm:$0xff]  ;;  %v2248_v26 = vpack.c.bf16 %v2185_v17, %v2184_v16 }
 0x478   : > { %4010 = vpow2.f32 %v1681_v32  ;;  %v1817_v32 = vpack.c.bf16 %v1809_v28, %v1805_v27  ;;  %v2186_v28 = vld [vmem:[%s5194_s13 + $0x210] sm:$0xff]  ;;  %v2243_v16 = vld [vmem:[%s5194_s13 + $0x3d8] sm:$0xff] }
 0x479   : > { %v4005_v33 = vpop.eup %4004  ;;  %v2194_v17 = vld [vmem:[%s5194_s13 + $0x250] sm:$0xff] }
 0x47a   : > { %v4007_v34 = vpop.eup %4006  ;;  %1849 = vmatpush1.bf16.msra.mxu0 %v1817_v32  ;;  %v2257_v32 = vpack.c.bf16 %v2203_v24, %v2202_v23  ;;  %v2227_v23 = vld [vmem:[%s5194_s13 + $0x358] sm:$0xff] }
 0x47b   : > { %v1520_v35 = vadd.f32 %v4007_v34, %v4005_v33 }
 0x47d   : > { %4012 = vrcp.f32 %v1520_v35 }
 0x481   : > { %v4009_v36 = vpop.eup %4008 }
 0x482   : > { %v4011_v37 = vpop.eup %4010 }
 0x483   : > { %v1683_v38 = vadd.f32 %v4011_v37, %v4009_v36 }
 0x485   : > { %4014 = vrcp.f32 %v1683_v38  ;;  %v2043_v38 = vld [vmem:[%s5190_s27 + $0x38] sm:$0xff] }
 0x487   : > { %v4013_v40 = vpop.eup %4012 }
 0x488   : > { %v1523_v43 = vmul.f32 %v4013_v40, %v4005_v33  ;;  %v1525_v44 = vmul.f32 %v4013_v40, %v4007_v34  ;;  %v1807_v33 = vld [vmem:[%s5190_s27 + $0x110] sm:$0xff]  ;;  %v2047_v40 = vld [vmem:[%s5190_s27 + $0xb8] sm:$0xff] }
 0x489   : > { %v1811_v34 = vld [vmem:[%s5190_s27 + $0x190] sm:$0xff] }
 0x48a   : > { %v1526_v45 = vmul.f32 %v1525_v44, %v1358_v42  ;;  %v1524_v46 = vmul.f32 %v1523_v43, %v1355_v41  ;;  %v1819_v35 = vpack.c.bf16 %v1811_v34, %v1807_v33  ;;  %v2273_v33 = vpack.c.bf16 %v2235_v21, %v2234_v25  ;;  %v2218_v34 = vld [vmem:[%s5194_s13 + $0x310] sm:$0xff]  ;;  %v2212_v25 = vld [vmem:[%s5194_s13 + $0x2e0] sm:$0xff]  ;;  %v2213_v21 = vld [vmem:[%s5194_s13 + $0x2e8] sm:$0xff] }
 0x48c   : > { %v1527_v47 = vadd.f32 %v1526_v45, %v1524_v46 }
 0x48f   : > { %v4015_v48 = vpop.eup %4014 }
 0x490   : > { %v1686_v49 = vmul.f32 %v4015_v48, %v4009_v36  ;;  %v1688_v50 = vmul.f32 %v4015_v48, %v4011_v37  ;;  %v2041_v36 = vld [vmem:[%s5190_s27 + $0x28] sm:$0xff] }
 0x491   : > { %v2045_v37 = vld [vmem:[%s5190_s27 + $0xa8] sm:$0xff] }
 0x492   : > { %v1689_v51 = vmul.f32 %v1688_v50, %v1358_v42  ;;  %v1687_v52 = vmul.f32 %v1686_v49, %v1355_v41  ;;  %v2057_v39 = vpack.c.bf16 %v2045_v37, %v2041_v36  ;;  %v4536_v41 = vmov 0   ;;  %v2204_v36 = vld [vmem:[%s5194_s13 + $0x2a0] sm:$0xff]  ;;  %v2205_v37 = vld [vmem:[%s5194_s13 + $0x2a8] sm:$0xff] }
 0x493   : > { %1878 = vmatprep.mubr.bf16.mxu0 %v4536_v41  ;;  %v2059_v42 = vpack.c.bf16 %v2047_v40, %v2043_v38  ;;  %v2236_v38 = vld [vmem:[%s5194_s13 + $0x3a0] sm:$0xff] }
 0x494   : > { %v1690_v53 = vadd.f32 %v1689_v51, %v1687_v52  ;;  %2086 = vmatprep.subr.bf16.mxu0 %v2057_v39  ;;  %v3530_v51 = vld [vmem:[%s5886_s22] ss:$0 sm:$0xff]  ;;  %v2237_v39 = vld [vmem:[%s5194_s13 + $0x3a8] sm:$0xff] }
 0x496   : > { %v1695_v54 = vpack.c.bf16 %v1690_v53, %v1527_v47 }
 0x498   : > { %3844 = vmatmul.mubr.msk.bf16.vlgmr.msra.gmra.mrb[8].mxu1 %vm1206_vm5, %v1695_v54 }
 0x499   : > { %1890 = vmatpush1.bf16.msra.mxu1 %v1815_v22  ;;  %1921 = vmatprep.mubr.bf16.mxu1 %v4536_v41  ;;  %v2217_v22 = vld [vmem:[%s5194_s13 + $0x308] sm:$0xff] }
 0x49a   : > { %1891 = vmatprep.subr.bf16.mxu1 %v1820_v29  ;;  %v2264_v27 = vpack.c.bf16 %v2217_v22, %v2216_v20  ;;  %v2187_v29 = vld [vmem:[%s5194_s13 + $0x218] sm:$0xff]  ;;  %v2226_v22 = vld [vmem:[%s5194_s13 + $0x350] sm:$0xff] }
 0x49b   : > { %v2249_v40 = vpack.c.bf16 %v2187_v29, %v2186_v28  ;;  %v2269_v24 = vpack.c.bf16 %v2227_v23, %v2226_v22  ;;  %v2245_v28 = vld [vmem:[%s5194_s13 + $0x3e8] sm:$0xff]  ;;  %v2196_v29 = vld [vmem:[%s5194_s13 + $0x260] sm:$0xff] }
 0x49d   : > { %1892 = vmatpush1.bf16.msra.mxu1 %v1819_v35  ;;  %v2219_v35 = vld [vmem:[%s5194_s13 + $0x318] sm:$0xff] }
 0x49e   : > { %2129 = vmatprep.subr.bf16.mxu1 %v2059_v42  ;;  %v2265_v42 = vpack.c.bf16 %v2219_v35, %v2218_v34  ;;  %v2228_v35 = vld [vmem:[%s5194_s13 + $0x360] sm:$0xff] }
 0x56b   : > { %v1742_v56 = vpop.f32.mrb[8].mxu1 }
 0x56c   : > { %v1743_v57 = vadd.f32 %v3528_v55, %v1742_v56  ;;  %v3845_v58 = vpop.f32.mrb[9].mxu1  ;;  %v2040_v56 = vld [vmem:[%s5190_s27 + $0x20] sm:$0xff] }
 0x56d   : > { %v1745_v59 = vpop.f32.mrb[10].mxu1 }
 0x56e   : > { %v1746_v60 = vadd.f32 %v3528_v55, %v1745_v59  ;;  %v3846_v61 = vpop.f32.mrb[11].mxu1  ;;  %v1749_v62 = vadd.f32 %v1743_v57, %v5225_v30  ;;  %v3531_v55 = vld [vmem:[%s1110_s6] ss:$0 sm:$0xff]  ;;  %v2044_v57 = vld [vmem:[%s5190_s27 + $0xa0] sm:$0xff]  ;;  %v2042_v59 = vld [vmem:[%s5190_s27 + $0x30] sm:$0xff] }
 0x56f   : > { %v2049_v61 = vld [vmem:[%s5190_s27 + $0x128] sm:$0xff] }
 0x570   : > { %v1753_v63 = vsel %vm1206_vm5, %v1749_v62, 0.0  ;;  %v1750_v0 = vadd.f32 %v1746_v60, %v5227_v31  ;;  %v2046_v60 = vld [vmem:[%s5190_s27 + $0xb0] sm:$0xff] }
 0x571   : > { %1754 = vadd.xlane.f32.xlu0 %v1753_v63  ;;  %v2051_v63 = vld [vmem:[%s5190_s27 + $0x138] sm:$0xff] }
 0x572   : > { %v1756_v1 = vsel %vm1206_vm5, %v1750_v0, 0.0 }
 0x575   : > { %1757 = vadd.xlane.f32.xlu0 %v1756_v1 }
 0x5fe   : > { %v1755_v2 = vpop.xlane.xlu0 %1754 }
 0x5ff   : > { %v1760_v3 = vmul.f32 0.03125, %v1755_v2 }
 0x601   : > { %v1762_v4 = vsub.f32 %v1749_v62, %v1760_v3  ;;  %v2053_v62 = vld [vmem:[%s5190_s27 + $0x1a8] sm:$0xff]  ;;  %v2056_v3 = vpack.c.bf16 %v2044_v57, %v2040_v56 }
 0x602   : > { %v1758_v5 = vpop.xlane.xlu0 %1757 }
 0x603   : > { %v1761_v6 = vmul.f32 0.03125, %v1758_v5  ;;  %v1764_v30 = vmul.f32 %v1762_v4, %v1762_v4  ;;  %v2048_v5 = vld [vmem:[%s5190_s27 + $0x120] sm:$0xff] }
 0x605   : > { %v1763_v7 = vsub.f32 %v1750_v0, %v1761_v6  ;;  %v1766_v31 = vsel %vm1206_vm5, %v1764_v30, 0.0  ;;  %v2055_v0 = vld [vmem:[%s5190_s27 + $0x1b8] sm:$0xff]  ;;  %v2052_v6 = vld [vmem:[%s5190_s27 + $0x1a0] sm:$0xff] }
 0x606   : > { %1767 = vadd.xlane.f32.xlu1 %v1766_v31  ;;  %v2063_v31 = vpack.c.bf16 %v2055_v0, %v2051_v63  ;;  %v2060_v14 = vpack.c.bf16 %v2052_v6, %v2048_v5  ;;  %v2208_v63 = vld [vmem:[%s5194_s13 + $0x2c0] sm:$0xff]  ;;  %v2209_v0 = vld [vmem:[%s5194_s13 + $0x2c8] sm:$0xff] }
 0x607   : > { %v1765_v8 = vmul.f32 %v1763_v7, %v1763_v7  ;;  %v2241_v5 = vld [vmem:[%s5194_s13 + $0x3c8] sm:$0xff]  ;;  %v2192_v6 = vld [vmem:[%s5194_s13 + $0x240] sm:$0xff] }
 0x609   : > { %v1769_v9 = vsel %vm1206_vm5, %v1765_v8, 0.0  ;;  %v2050_v8 = vld [vmem:[%s5190_s27 + $0x130] sm:$0xff] }
 0x60a   : > { %1770 = vadd.xlane.f32.xlu1 %v1769_v9  ;;  %v2054_v9 = vld [vmem:[%s5190_s27 + $0x1b0] sm:$0xff] }
 0x60b   : > { %v2062_v15 = vpack.c.bf16 %v2054_v9, %v2050_v8  ;;  %v2224_v9 = vld [vmem:[%s5194_s13 + $0x340] sm:$0xff] }
 0x60c   : > { %v2268_v11 = vpack.c.bf16 %v2225_v10, %v2224_v9 }
 0x693   : > { %v1768_v43 = vpop.xlane.xlu1 %1767 }
 0x694   : > { %v1772_v44 = vmul.f32 0.03125, %v1768_v43  ;;  %v2188_v43 = vld [vmem:[%s5194_s13 + $0x220] sm:$0xff] }
 0x696   : > { %v1774_v45 = vadd.f32 1e-05, %v1772_v44  ;;  %v2189_v44 = vld [vmem:[%s5194_s13 + $0x228] sm:$0xff] }
 0x697   : > { %v1771_v46 = vpop.xlane.xlu1 %1770 }
 0x698   : > { %4016 = vrsqrt.f32 %v1774_v45  ;;  %v1773_v47 = vmul.f32 0.03125, %v1771_v46  ;;  %v2258_v45 = vpack.c.bf16 %v2205_v37, %v2204_v36  ;;  %v2274_v46 = vpack.c.bf16 %v2237_v39, %v2236_v38  ;;  %v2229_v36 = vld [vmem:[%s5194_s13 + $0x368] sm:$0xff]  ;;  %v2214_v38 = vld [vmem:[%s5194_s13 + $0x2f0] sm:$0xff]  ;;  %v2215_v39 = vld [vmem:[%s5194_s13 + $0x2f8] sm:$0xff] }
 0x699   : > { %v2270_v37 = vpack.c.bf16 %v2229_v36, %v2228_v35 }
 0x69a   : > { %v1775_v48 = vadd.f32 1e-05, %v1773_v47  ;;  %v2220_v47 = vld [vmem:[%s5194_s13 + $0x320] sm:$0xff] }
 0x69c   : > { %4018 = vrsqrt.f32 %v1775_v48  ;;  %v2221_v48 = vld [vmem:[%s5194_s13 + $0x328] sm:$0xff] }
 0x6a2   : > { %v4017_v49 = vpop.eup %4016 }
 0x6a3   : > { %v1778_v50 = vmul.f32 %v4017_v49, %v1762_v4  ;;  %v2058_v4 = vpack.c.bf16 %v2046_v60, %v2042_v59  ;;  %v2206_v49 = vld [vmem:[%s5194_s13 + $0x2b0] sm:$0xff]  ;;  %v2223_v60 = vld [vmem:[%s5194_s13 + $0x338] sm:$0xff] }
 0x6a4   : > { %v2222_v59 = vld [vmem:[%s5194_s13 + $0x330] sm:$0xff] }
 0x6a5   : > { %v1786_v53 = vmul.f32 %v3530_v51, %v1778_v50  ;;  %v2207_v50 = vld [vmem:[%s5194_s13 + $0x2b8] sm:$0xff] }
 0x6a6   : > { %v4019_v52 = vpop.eup %4018  ;;  %v2259_v56 = vpack.c.bf16 %v2207_v50, %v2206_v49  ;;  %v2231_v49 = vld [vmem:[%s5194_s13 + $0x378] sm:$0xff] }
 0x6a7   : > { %v1779_v54 = vmul.f32 %v4019_v52, %v1763_v7  ;;  %v5331_v1 = vadd.f32 %v3531_v55, %v1786_v53  ;;  %v2061_v7 = vpack.c.bf16 %v2053_v62, %v2049_v61  ;;  %v2239_v52 = vld [vmem:[%s5194_s13 + $0x3b8] sm:$0xff]  ;;  %v2250_v53 = vpack.c.bf16 %v2189_v44, %v2188_v43  ;;  %v2198_v44 = vld [vmem:[%s5194_s13 + $0x270] sm:$0xff] }
 0x6a8   : > { %v2267_v62 = vpack.c.bf16 %v2223_v60, %v2222_v59  ;;  %v2247_v43 = vld [vmem:[%s5194_s13 + $0x3f8] sm:$0xff] }
 0x6a9   : > { %v1787_v58 = vmul.f32 %v3530_v51, %v1779_v54  ;;  %v2238_v51 = vld [vmem:[%s5194_s13 + $0x3b0] sm:$0xff]  ;;  %v2266_v54 = vpack.c.bf16 %v2221_v48, %v2220_v47 }
 0x6aa   : > { %v2275_v57 = vpack.c.bf16 %v2239_v52, %v2238_v51  ;;  %v2230_v48 = vld [vmem:[%s5194_s13 + $0x370] sm:$0xff]  ;;  %v1960_v51 = vld [vmem:[%s5194_s13 + $0x80] sm:$0xff]  ;;  %v1961_v52 = vld [vmem:[%s5194_s13 + $0x88] sm:$0xff] }
 0x6ab   : > { %v5333_v2 = vadd.f32 %v3531_v55, %v1787_v58  ;;  %v2190_v55 = vld [vmem:[%s5194_s13 + $0x230] sm:$0xff]  ;;  %v2191_v58 = vld [vmem:[%s5194_s13 + $0x238] sm:$0xff]  ;;  %v2271_v50 = vpack.c.bf16 %v2231_v49, %v2230_v48 }
 0x6ac   : > { %v2251_v61 = vpack.c.bf16 %v2191_v58, %v2190_v55  ;;  %v1993_v55 = vld [vmem:[%s5194_s13 + $0x188] sm:$0xff] }
 0x6ad   : > { %v5339_v30 = vpack.c.bf16 %v5333_v2, %v5331_v1 }
 0x6af   : > { %3532 = vmatmul.mubr.msk.bf16.vlgmr.msra.gmra.mrb[12].mxu0 %vm1206_vm5, %v5339_v30  ;;  %3533 = vmatmul.mubr.msk.bf16.vlgmr.msra.gmra.mrb[12].mxu1 %vm1206_vm5, %v5339_v30 }
 0x6b0   : > { %2087 = vmatpush1.bf16.msra.mxu0 %v2056_v3  ;;  %2130 = vmatpush1.bf16.msra.mxu1 %v2058_v4  ;;  %v2240_v3 = vld [vmem:[%s5194_s13 + $0x3c0] sm:$0xff]  ;;  %v2260_v4 = vpack.c.bf16 %v2209_v0, %v2208_v63 }
 0x6b1   : > { %2088 = vmatprep.subr.bf16.mxu0 %v2061_v7  ;;  %2131 = vmatprep.subr.bf16.mxu1 %v2063_v31  ;;  %v2193_v7 = vld [vmem:[%s5194_s13 + $0x248] sm:$0xff]  ;;  %v2276_v31 = vpack.c.bf16 %v2241_v5, %v2240_v3 }
 0x6b2   : > { %2118 = vmatprep.mubr.bf16.mxu0 %v4536_v41  ;;  %2161 = vmatprep.mubr.bf16.mxu1 %v4536_v41  ;;  %v2252_v8 = vpack.c.bf16 %v2193_v7, %v2192_v6 }
 0x6b4   : > { %2089 = vmatpush1.bf16.msra.mxu0 %v2060_v14  ;;  %2132 = vmatpush1.bf16.msra.mxu1 %v2062_v15  ;;  %v2242_v14 = vld [vmem:[%s5194_s13 + $0x3d0] sm:$0xff]  ;;  %v2261_v15 = vpack.c.bf16 %v2211_v13, %v2210_v12 }
 0x6b5   : > { %3589 = vmatprep.subr.bf16.mxu0 %v2256_v18  ;;  %3611 = vmatprep.subr.bf16.mxu1 %v2272_v19  ;;  %v2195_v18 = vld [vmem:[%s5194_s13 + $0x258] sm:$0xff]  ;;  %v2277_v19 = vpack.c.bf16 %v2243_v16, %v2242_v14 }
 0x6b6   : > { %v2253_v20 = vpack.c.bf16 %v2195_v18, %v2194_v17 }
 0x6b7   : > { %3534 = vmatmul.mubr.msk.bf16.vlgmr.msra.gmra.mrb[16].mxu0 %vm1206_vm5, %v5339_v30  ;;  %3535 = vmatmul.mubr.msk.bf16.vlgmr.msra.gmra.mrb[16].mxu1 %vm1206_vm5, %v5339_v30 }
 0x6b8   : > { %3590 = vmatpush3.bf16.msra.mxu0 %v2248_v26  ;;  %3612 = vmatpush3.bf16.msra.mxu1 %v2264_v27  ;;  %v2244_v26 = vld [vmem:[%s5194_s13 + $0x3e0] sm:$0xff]  ;;  %v2262_v27 = vpack.c.bf16 %v2213_v21, %v2212_v25 }
 0x6b9   : > { %3591 = vmatprep.subr.bf16.mxu0 %v2257_v32  ;;  %3613 = vmatprep.subr.bf16.mxu1 %v2273_v33  ;;  %v2197_v32 = vld [vmem:[%s5194_s13 + $0x268] sm:$0xff]  ;;  %v2278_v33 = vpack.c.bf16 %v2245_v28, %v2244_v26 }
 0x6ba   : > { %v2254_v34 = vpack.c.bf16 %v2197_v32, %v2196_v29 }
 0x6bc   : > { %3592 = vmatpush3.bf16.msra.mxu0 %v2249_v40  ;;  %3614 = vmatpush3.bf16.msra.mxu1 %v2265_v42  ;;  %v2246_v40 = vld [vmem:[%s5194_s13 + $0x3f0] sm:$0xff]  ;;  %v2263_v42 = vpack.c.bf16 %v2215_v39, %v2214_v38 }
 0x6bd   : > { %3593 = vmatprep.subr.bf16.mxu0 %v2258_v45  ;;  %3615 = vmatprep.subr.bf16.mxu1 %v2274_v46  ;;  %v2199_v45 = vld [vmem:[%s5194_s13 + $0x278] sm:$0xff]  ;;  %v2279_v46 = vpack.c.bf16 %v2247_v43, %v2246_v40 }
 0x6be   : > { %v2255_v47 = vpack.c.bf16 %v2199_v45, %v2198_v44 }
 0x6c0   : > { %3594 = vmatpush3.bf16.msra.mxu0 %v2250_v53  ;;  %3616 = vmatpush3.bf16.msra.mxu1 %v2266_v54  ;;  %v1992_v53 = vld [vmem:[%s5194_s13 + $0x180] sm:$0xff]  ;;  %v2016_v54 = vpack.c.bf16 %v1961_v52, %v1960_v51 }
 0x6c1   : > { %3595 = vmatprep.subr.bf16.mxu0 %v2259_v56  ;;  %3617 = vmatprep.subr.bf16.mxu1 %v2275_v57  ;;  %v2032_v56 = vpack.c.bf16 %v1993_v55, %v1992_v53  ;;  %v1823_v57 = vlaneseq }
 0x6c3   : > { %v1824_v58 = vshrl.u32 %v1823_v57, 7  ;;  %v1944_v57 = vld [vmem:[%s5194_s13] sm:$0xff] }
 0x6c4   : > { %3596 = vmatpush3.bf16.msra.mxu0 %v2251_v61  ;;  %3618 = vmatpush3.bf16.msra.mxu1 %v2267_v62  ;;  %v1821_v61 = vld [vmem:[%s5192_s26] sm:$0xf] }
 0x6c5   : > { %3597 = vmatprep.subr.bf16.mxu0 %v2260_v4  ;;  %3619 = vmatprep.subr.bf16.mxu1 %v2276_v31  ;;  %v5421_v59 = vsub.s32 0, %v1824_v58  ;;  %v5423_v60 = vsub.s32 2, %v1824_v58  ;;  %v5426_v62 = vsub.s32 1, %v1824_v58  ;;  %v5428_v63 = vsub.s32 3, %v1824_v58  ;;  %v2064_v31 = vld [vmem:[%s5192_s26 + $0x4] sm:$0xf] }
 0x6c6   : > { %v1945_v58 = vld [vmem:[%s5194_s13 + $0x8] sm:$0xff] }
 0x6c7   : > { %v1826_v0 = vrot.slane %v1821_v61, %v5421_v59  ;;  %v1834_v3 = vrot.slane %v1821_v61, %v5423_v60  ;;  %v1830_v4 = vrot.slane %v1821_v61, %v5426_v62  ;;  %v1838_v5 = vrot.slane %v1821_v61, %v5428_v63 }
 0x6c8   : > { %3598 = vmatpush3.bf16.msra.mxu0 %v2252_v8  ;;  %3620 = vmatpush3.bf16.msra.mxu1 %v2268_v11  ;;  %v2077_v22 = vrot.slane %v2064_v31, %v5423_v60  ;;  %v2073_v25 = vrot.slane %v2064_v31, %v5426_v62  ;;  %v2081_v21 = vrot.slane %v2064_v31, %v5428_v63 }
 0x6c9   : > { %3599 = vmatprep.subr.bf16.mxu0 %v2261_v15  ;;  %3621 = vmatprep.subr.bf16.mxu1 %v2277_v19 }
 0x6cc   : > { %3600 = vmatpush3.bf16.msra.mxu0 %v2253_v20  ;;  %3622 = vmatpush3.bf16.msra.mxu1 %v2269_v24  ;;  %v2069_v20 = vrot.slane %v2064_v31, %v5421_v59 }
 0x6cd   : > { %3601 = vmatprep.subr.bf16.mxu0 %v2262_v27  ;;  %3623 = vmatprep.subr.bf16.mxu1 %v2278_v33 }
 0x6d0   : > { %3602 = vmatpush3.bf16.msra.mxu0 %v2254_v34  ;;  %3624 = vmatpush3.bf16.msra.mxu1 %v2270_v37 }
 0x6d1   : > { %3603 = vmatprep.subr.bf16.mxu0 %v2263_v42  ;;  %3625 = vmatprep.subr.bf16.mxu1 %v2279_v46 }
 0x6d4   : > { %3604 = vmatpush3.bf16.msra.mxu0 %v2255_v47  ;;  %3626 = vmatpush3.bf16.msra.mxu1 %v2271_v50 }
 0x6d5   : > { %3633 = vmatprep.subr.bf16.mxu0 %v2016_v54  ;;  %3655 = vmatprep.subr.bf16.mxu1 %v2032_v56 }
 0x782   : > { %v1880_v6 = vpop.f32.mrb[12].mxu0  ;;  %v1923_v7 = vpop.f32.mrb[12].mxu1 }
 0x783   : > { %v1881_v8 = vadd.f32 %v1880_v6, %v1826_v0  ;;  %v1924_v9 = vadd.f32 %v1923_v7, %v1834_v3  ;;  %v1882_v10 = vpop.f32.mrb[13].mxu0  ;;  %v1925_v11 = vpop.f32.mrb[13].mxu1  ;;  %v1977_v6 = vld [vmem:[%s5194_s13 + $0x108] sm:$0xff] }
 0x784   : > { %v1883_v12 = vadd.f32 %v1882_v10, %v1830_v4  ;;  %v1926_v13 = vadd.f32 %v1925_v11, %v1838_v5  ;;  %v1884_v14 = vpop.f32.mrb[14].mxu0  ;;  %v1927_v15 = vpop.f32.mrb[14].mxu1  ;;  %v1962_v10 = vld [vmem:[%s5194_s13 + $0x90] sm:$0xff] }
 0x785   : > { %v1885_v16 = vadd.f32 %v1884_v14, %v1826_v0  ;;  %v1928_v17 = vadd.f32 %v1927_v15, %v1834_v3  ;;  %v1886_v18 = vpop.f32.mrb[15].mxu0  ;;  %v1929_v19 = vpop.f32.mrb[15].mxu1  ;;  %v1932_v26 = vmax.f32 %v1881_v8, 0.0  ;;  %v1934_v27 = vmax.f32 %v1924_v9, 0.0  ;;  %v1994_v14 = vld [vmem:[%s5194_s13 + $0x190] sm:$0xff]  ;;  %v1995_v15 = vld [vmem:[%s5194_s13 + $0x198] sm:$0xff] }
 0x786   : > { %v1887_v23 = vadd.f32 %v1886_v18, %v1830_v4  ;;  %v1930_v24 = vadd.f32 %v1929_v19, %v1838_v5  ;;  %v1933_v32 = vmax.f32 %v1883_v12, 0.0  ;;  %v1935_v33 = vmax.f32 %v1926_v13, 0.0  ;;  %v1976_v5 = vld [vmem:[%s5194_s13 + $0x100] sm:$0xff]  ;;  %v1963_v13 = vld [vmem:[%s5194_s13 + $0x98] sm:$0xff] }
 0x787   : > { %v1936_v28 = vmax.f32 %v1885_v16, 0.0  ;;  %v1938_v29 = vmax.f32 %v1928_v17, 0.0  ;;  %v2008_v18 = vpack.c.bf16 %v1945_v58, %v1944_v57  ;;  %v2024_v19 = vpack.c.bf16 %v1977_v6, %v1976_v5  ;;  %v2000_v57 = vld [vmem:[%s5194_s13 + $0x1c0] sm:$0xff]  ;;  %v2001_v58 = vld [vmem:[%s5194_s13 + $0x1c8] sm:$0xff] }
 0x788   : > { %v1937_v34 = vmax.f32 %v1887_v23, 0.0  ;;  %v1939_v35 = vmax.f32 %v1930_v24, 0.0  ;;  %v1978_v23 = vld [vmem:[%s5194_s13 + $0x110] sm:$0xff]  ;;  %v1979_v24 = vld [vmem:[%s5194_s13 + $0x118] sm:$0xff]  ;;  %v2036_v6 = vpack.c.bf16 %v2001_v58, %v2000_v57 }
 0x789   : > { %v5439_v36 = vpack.c.bf16 %v1936_v28, %v1932_v26  ;;  %v5441_v37 = vpack.c.bf16 %v1938_v29, %v1934_v27  ;;  %v2033_v26 = vpack.c.bf16 %v1995_v15, %v1994_v14  ;;  %v1965_v27 = vld [vmem:[%s5194_s13 + $0xa8] sm:$0xff]  ;;  %v1996_v28 = vld [vmem:[%s5194_s13 + $0x1a0] sm:$0xff]  ;;  %v1954_v14 = vld [vmem:[%s5194_s13 + $0x50] sm:$0xff] }
 0x78a   : > { %v1941_v38 = vpack.c.bf16 %v1937_v34, %v1933_v32  ;;  %v1943_v39 = vpack.c.bf16 %v1939_v35, %v1935_v33  ;;  %v2120_v40 = vpop.f32.mrb[16].mxu0  ;;  %v2163_v42 = vpop.f32.mrb[16].mxu1  ;;  %v1997_v29 = vld [vmem:[%s5194_s13 + $0x1a8] sm:$0xff]  ;;  %v2025_v33 = vpack.c.bf16 %v1979_v24, %v1978_v23  ;;  %v1948_v34 = vld [vmem:[%s5194_s13 + $0x20] sm:$0xff]  ;;  %v1955_v15 = vld [vmem:[%s5194_s13 + $0x58] sm:$0xff] }
 0x78b   : > { %v2121_v43 = vadd.f32 %v2120_v40, %v2069_v20  ;;  %v2164_v44 = vadd.f32 %v2163_v42, %v2077_v22  ;;  %v2122_v45 = vpop.f32.mrb[17].mxu0  ;;  %v2165_v46 = vpop.f32.mrb[17].mxu1  ;;  %v1949_v35 = vld [vmem:[%s5194_s13 + $0x28] sm:$0xff]  ;;  %v2034_v42 = vpack.c.bf16 %v1997_v29, %v1996_v28  ;;  %v2004_v23 = vld [vmem:[%s5194_s13 + $0x1e0] sm:$0xff] }
 0x78c   : > { %v2123_v47 = vadd.f32 %v2122_v45, %v2073_v25  ;;  %v2166_v48 = vadd.f32 %v2165_v46, %v2081_v21  ;;  %v2124_v49 = vpop.f32.mrb[18].mxu0  ;;  %v2167_v50 = vpop.f32.mrb[18].mxu1  ;;  %v1966_v45 = vld [vmem:[%s5194_s13 + $0xb0] sm:$0xff]  ;;  %v1967_v46 = vld [vmem:[%s5194_s13 + $0xb8] sm:$0xff]  ;;  %v2005_v24 = vld [vmem:[%s5194_s13 + $0x1e8] sm:$0xff] }
 0x78d   : > { %v2125_v51 = vadd.f32 %v2124_v49, %v2069_v20  ;;  %v2168_v52 = vadd.f32 %v2167_v50, %v2077_v22  ;;  %v2126_v53 = vpop.f32.mrb[19].mxu0  ;;  %v2169_v54 = vpop.f32.mrb[19].mxu1  ;;  %v2172_v61 = vmax.f32 %v2121_v43, 0.0  ;;  %v2174_v0 = vmax.f32 %v2164_v44, 0.0  ;;  %v1946_v20 = vld [vmem:[%s5194_s13 + $0x10] sm:$0xff]  ;;  %v1947_v22 = vld [vmem:[%s5194_s13 + $0x18] sm:$0xff] }
 0x78e   : > { %v2127_v55 = vadd.f32 %v2126_v53, %v2073_v25  ;;  %v2170_v56 = vadd.f32 %v2169_v54, %v2081_v21  ;;  %v2173_v7 = vmax.f32 %v2123_v47, 0.0  ;;  %v2175_v31 = vmax.f32 %v2166_v48, 0.0  ;;  %v1964_v25 = vld [vmem:[%s5194_s13 + $0xa0] sm:$0xff]  ;;  %v1981_v44 = vld [vmem:[%s5194_s13 + $0x128] sm:$0xff]  ;;  %v1998_v47 = vld [vmem:[%s5194_s13 + $0x1b0] sm:$0xff] }
 0x78f   : > { %v2176_v3 = vmax.f32 %v2125_v51, 0.0  ;;  %v2178_v4 = vmax.f32 %v2168_v52, 0.0  ;;  %v2017_v21 = vpack.c.bf16 %v1963_v13, %v1962_v10  ;;  %v2009_v32 = vpack.c.bf16 %v1947_v22, %v1946_v20  ;;  %v1980_v43 = vld [vmem:[%s5194_s13 + $0x120] sm:$0xff]  ;;  %v1999_v48 = vld [vmem:[%s5194_s13 + $0x1b8] sm:$0xff]  ;;  %v1950_v49 = vld [vmem:[%s5194_s13 + $0x30] sm:$0xff] }
 0x790   : > { %v2177_v8 = vmax.f32 %v2127_v55, 0.0  ;;  %v2179_v9 = vmax.f32 %v2170_v56, 0.0  ;;  %v2018_v40 = vpack.c.bf16 %v1965_v27, %v1964_v25  ;;  %v1951_v50 = vld [vmem:[%s5194_s13 + $0x38] sm:$0xff]  ;;  %v2019_v51 = vpack.c.bf16 %v1967_v46, %v1966_v45  ;;  %v1982_v53 = vld [vmem:[%s5194_s13 + $0x130] sm:$0xff]  ;;  %v1968_v55 = vld [vmem:[%s5194_s13 + $0xc0] sm:$0xff] }
 0x791   : > { %v2180_v11 = vpack.c.bf16 %v2176_v3, %v2172_v61  ;;  %v2182_v12 = vpack.c.bf16 %v2178_v4, %v2174_v0  ;;  %v2035_v52 = vpack.c.bf16 %v1999_v48, %v1998_v47  ;;  %v1983_v54 = vld [vmem:[%s5194_s13 + $0x138] sm:$0xff]  ;;  %v1969_v56 = vld [vmem:[%s5194_s13 + $0xc8] sm:$0xff]  ;;  %v2011_v61 = vpack.c.bf16 %v1951_v50, %v1950_v49  ;;  %v1952_v3 = vld [vmem:[%s5194_s13 + $0x40] sm:$0xff] }
 0x792   : > { %v2181_v16 = vpack.c.bf16 %v2177_v8, %v2173_v7  ;;  %v2183_v17 = vpack.c.bf16 %v2179_v9, %v2175_v31  ;;  %v2027_v0 = vpack.c.bf16 %v1983_v54, %v1982_v53  ;;  %v1953_v4 = vld [vmem:[%s5194_s13 + $0x48] sm:$0xff]  ;;  %v2020_v5 = vpack.c.bf16 %v1969_v56, %v1968_v55  ;;  %v1984_v7 = vld [vmem:[%s5194_s13 + $0x140] sm:$0xff]  ;;  %v1970_v8 = vld [vmem:[%s5194_s13 + $0xd0] sm:$0xff] }
 0x793   : > { %v1985_v31 = vld [vmem:[%s5194_s13 + $0x148] sm:$0xff]  ;;  %v1971_v9 = vld [vmem:[%s5194_s13 + $0xd8] sm:$0xff]  ;;  %v2002_v10 = vld [vmem:[%s5194_s13 + $0x1d0] sm:$0xff]  ;;  %v2013_v25 = vpack.c.bf16 %v1955_v15, %v1954_v14  ;;  %v2038_v29 = vpack.c.bf16 %v2005_v24, %v2004_v23 }
 0x794   : > { %2312 = vmatprep.mubr.bf16.mxu0 %v2181_v16  ;;  %2353 = vmatprep.mubr.bf16.mxu1 %v2183_v17  ;;  %v2028_v13 = vpack.c.bf16 %v1985_v31, %v1984_v7  ;;  %v2021_v16 = vpack.c.bf16 %v1971_v9, %v1970_v8  ;;  %v1972_v20 = vld [vmem:[%s5194_s13 + $0xe0] sm:$0xff]  ;;  %v1973_v22 = vld [vmem:[%s5194_s13 + $0xe8] sm:$0xff]  ;;  %v1958_v45 = vld [vmem:[%s5194_s13 + $0x70] sm:$0xff] }
 0x795   : > { %2313 = vmatmul.mubr.bf16.vlgmr.msra.gmra.mrb[20].mxu0 %v2180_v11  ;;  %2354 = vmatmul.mubr.bf16.vlgmr.msra.gmra.mrb[20].mxu1 %v2182_v12  ;;  %v2003_v11 = vld [vmem:[%s5194_s13 + $0x1d8] sm:$0xff]  ;;  %v2012_v12 = vpack.c.bf16 %v1953_v4, %v1952_v3  ;;  %v1957_v27 = vld [vmem:[%s5194_s13 + $0x68] sm:$0xff]  ;;  %v2022_v28 = vpack.c.bf16 %v1973_v22, %v1972_v20  ;;  %v2444_v55 = vld [vmem:[%s5190_s27 + $0x40] sm:$0xff] }
 0x796   : > { %3634 = vmatpush3.bf16.msra.mxu0 %v2008_v18  ;;  %3656 = vmatpush3.bf16.msra.mxu1 %v2024_v19  ;;  %v2037_v17 = vpack.c.bf16 %v2003_v11, %v2002_v10  ;;  %v1986_v18 = vld [vmem:[%s5194_s13 + $0x150] sm:$0xff]  ;;  %v1987_v19 = vld [vmem:[%s5194_s13 + $0x158] sm:$0xff]  ;;  %v2445_v49 = vld [vmem:[%s5190_s27 + $0x48] sm:$0xff] }
 0x797   : > { %2394 = vmatprep.mubr.bf16.mxu0 %v1941_v38  ;;  %2435 = vmatprep.mubr.bf16.mxu1 %v1943_v39  ;;  %v2010_v38 = vpack.c.bf16 %v1949_v35, %v1948_v34  ;;  %v2026_v39 = vpack.c.bf16 %v1981_v44, %v1980_v43  ;;  %v1974_v34 = vld [vmem:[%s5194_s13 + $0xf0] sm:$0xff]  ;;  %v1975_v35 = vld [vmem:[%s5194_s13 + $0xf8] sm:$0xff]  ;;  %v2449_v50 = vld [vmem:[%s5190_s27 + $0xc8] sm:$0xff] }
 0x798   : > { %3635 = vmatprep.subr.bf16.mxu0 %v2017_v21  ;;  %3657 = vmatprep.subr.bf16.mxu1 %v2033_v26  ;;  %v2029_v21 = vpack.c.bf16 %v1987_v19, %v1986_v18  ;;  %v1956_v26 = vld [vmem:[%s5194_s13 + $0x60] sm:$0xff]  ;;  %v1959_v46 = vld [vmem:[%s5194_s13 + $0x78] sm:$0xff]  ;;  %v2023_v47 = vpack.c.bf16 %v1975_v35, %v1974_v34  ;;  %v2461_v57 = vpack.c.bf16 %v2449_v50, %v2445_v49  ;;  %v2453_v3 = vld [vmem:[%s5190_s27 + $0x148] sm:$0xff] }
 0x799   : > { %v2014_v43 = vpack.c.bf16 %v1957_v27, %v1956_v26  ;;  %v2015_v53 = vpack.c.bf16 %v1959_v46, %v1958_v45  ;;  %v2448_v56 = vld [vmem:[%s5190_s27 + $0xc0] sm:$0xff]  ;;  %v2457_v4 = vld [vmem:[%s5190_s27 + $0x1c8] sm:$0xff]  ;;  %v2607_v27 = vld [vmem:[%s5194_s13 + $0x498] sm:$0xff] }
 0x79a   : > { %3636 = vmatpush3.bf16.msra.mxu0 %v2009_v32  ;;  %3658 = vmatpush3.bf16.msra.mxu1 %v2025_v33  ;;  %v1988_v32 = vld [vmem:[%s5194_s13 + $0x160] sm:$0xff]  ;;  %v1989_v33 = vld [vmem:[%s5194_s13 + $0x168] sm:$0xff]  ;;  %v2460_v7 = vpack.c.bf16 %v2448_v56, %v2444_v55  ;;  %v2465_v9 = vpack.c.bf16 %v2457_v4, %v2453_v3  ;;  %v2590_v34 = vld [vmem:[%s5194_s13 + $0x410] sm:$0xff] }
 0x79b   : > { %3637 = vmatprep.subr.bf16.mxu0 %v2018_v40  ;;  %3659 = vmatprep.subr.bf16.mxu1 %v2034_v42  ;;  %v2006_v40 = vld [vmem:[%s5194_s13 + $0x1f0] sm:$0xff]  ;;  %v2007_v42 = vld [vmem:[%s5194_s13 + $0x1f8] sm:$0xff]  ;;  %v2030_v44 = vpack.c.bf16 %v1989_v33, %v1988_v32  ;;  %v2452_v8 = vld [vmem:[%s5190_s27 + $0x140] sm:$0xff] }
 0x79c   : > { %v2039_v48 = vpack.c.bf16 %v2007_v42, %v2006_v40  ;;  %v2456_v11 = vld [vmem:[%s5190_s27 + $0x1c0] sm:$0xff]  ;;  %v2637_v18 = vld [vmem:[%s5194_s13 + $0x588] sm:$0xff]  ;;  %v2591_v35 = vld [vmem:[%s5194_s13 + $0x418] sm:$0xff] }
 0x79d   : > { %v2464_v14 = vpack.c.bf16 %v2456_v11, %v2452_v8  ;;  %v2588_v19 = vld [vmem:[%s5194_s13 + $0x400] sm:$0xff]  ;;  %v2589_v20 = vld [vmem:[%s5194_s13 + $0x408] sm:$0xff]  ;;  %v2622_v40 = vld [vmem:[%s5194_s13 + $0x510] sm:$0xff]  ;;  %v2653_v42 = vpack.c.bf16 %v2591_v35, %v2590_v34 }
 0x79e   : > { %3638 = vmatpush3.bf16.msra.mxu0 %v2010_v38  ;;  %3660 = vmatpush3.bf16.msra.mxu1 %v2026_v39  ;;  %v1990_v38 = vld [vmem:[%s5194_s13 + $0x170] sm:$0xff]  ;;  %v1991_v39 = vld [vmem:[%s5194_s13 + $0x178] sm:$0xff]  ;;  %v2652_v23 = vpack.c.bf16 %v2589_v20, %v2588_v19  ;;  %v2620_v24 = vld [vmem:[%s5194_s13 + $0x500] sm:$0xff] }
 0x79f   : > { %3639 = vmatprep.subr.bf16.mxu0 %v2019_v51  ;;  %3661 = vmatprep.subr.bf16.mxu1 %v2035_v52  ;;  %v2447_v51 = vld [vmem:[%s5190_s27 + $0x58] sm:$0xff]  ;;  %v2031_v54 = vpack.c.bf16 %v1991_v39, %v1990_v38  ;;  %v2609_v45 = vld [vmem:[%s5194_s13 + $0x4a8] sm:$0xff]  ;;  %v2592_v39 = vld [vmem:[%s5194_s13 + $0x420] sm:$0xff] }
 0x7a0   : > { %v2451_v52 = vld [vmem:[%s5190_s27 + $0xd8] sm:$0xff]  ;;  %v2641_v38 = vld [vmem:[%s5194_s13 + $0x5a8] sm:$0xff]  ;;  %v2642_v56 = vld [vmem:[%s5194_s13 + $0x5b0] sm:$0xff] }
 0x7a1   : > { %v2463_v58 = vpack.c.bf16 %v2451_v52, %v2447_v51  ;;  %v2593_v50 = vld [vmem:[%s5194_s13 + $0x428] sm:$0xff]  ;;  %v2624_v51 = vld [vmem:[%s5194_s13 + $0x520] sm:$0xff]  ;;  %v2611_v55 = vld [vmem:[%s5194_s13 + $0x4b8] sm:$0xff] }
 0x7a2   : > { %3640 = vmatpush3.bf16.msra.mxu0 %v2011_v61  ;;  %3662 = vmatpush3.bf16.msra.mxu1 %v2027_v0  ;;  %v2446_v61 = vld [vmem:[%s5190_s27 + $0x50] sm:$0xff]  ;;  %v2625_v52 = vld [vmem:[%s5194_s13 + $0x528] sm:$0xff]  ;;  %v2595_v4 = vld [vmem:[%s5194_s13 + $0x438] sm:$0xff] }
 0x7a3   : > { %3641 = vmatprep.subr.bf16.mxu0 %v2020_v5  ;;  %3663 = vmatprep.subr.bf16.mxu1 %v2036_v6  ;;  %v2450_v0 = vld [vmem:[%s5190_s27 + $0xd0] sm:$0xff]  ;;  %v2455_v5 = vld [vmem:[%s5190_s27 + $0x158] sm:$0xff]  ;;  %v2612_v8 = vld [vmem:[%s5194_s13 + $0x4c0] sm:$0xff] }
 0x7a4   : > { %v2459_v6 = vld [vmem:[%s5190_s27 + $0x1d8] sm:$0xff]  ;;  %v2462_v31 = vpack.c.bf16 %v2450_v0, %v2446_v61  ;;  %v2594_v3 = vld [vmem:[%s5194_s13 + $0x430] sm:$0xff]  ;;  %v2648_v34 = vld [vmem:[%s5194_s13 + $0x5e0] sm:$0xff] }
 0x7a5   : > { %v2467_v10 = vpack.c.bf16 %v2459_v6, %v2455_v5  ;;  %v2643_v61 = vld [vmem:[%s5194_s13 + $0x5b8] sm:$0xff]  ;;  %v2626_v5 = vld [vmem:[%s5194_s13 + $0x530] sm:$0xff]  ;;  %v2655_v6 = vpack.c.bf16 %v2595_v4, %v2594_v3 }
 0x7a6   : > { %3642 = vmatpush3.bf16.msra.mxu0 %v2012_v12  ;;  %3664 = vmatpush3.bf16.msra.mxu1 %v2028_v13  ;;  %v2454_v12 = vld [vmem:[%s5190_s27 + $0x150] sm:$0xff]  ;;  %v2679_v0 = vpack.c.bf16 %v2643_v61, %v2642_v56  ;;  %v2615_v19 = vld [vmem:[%s5194_s13 + $0x4d8] sm:$0xff]  ;;  %v2769_v61 = vld [vmem:[%s5190_s27 + $0x68] sm:$0xff] }
 0x7a7   : > { %3643 = vmatprep.subr.bf16.mxu0 %v2021_v16  ;;  %3665 = vmatprep.subr.bf16.mxu1 %v2037_v17  ;;  %v2458_v13 = vld [vmem:[%s5190_s27 + $0x1d0] sm:$0xff]  ;;  %v2636_v16 = vld [vmem:[%s5194_s13 + $0x580] sm:$0xff]  ;;  %v2771_v3 = vld [vmem:[%s5190_s27 + $0x78] sm:$0xff] }
 0x7a8   : > { %v2466_v15 = vpack.c.bf16 %v2458_v13, %v2454_v12  ;;  %v2676_v22 = vpack.c.bf16 %v2637_v18, %v2636_v16  ;;  %v2645_v12 = vld [vmem:[%s5194_s13 + $0x5c8] sm:$0xff]  ;;  %v2596_v13 = vld [vmem:[%s5194_s13 + $0x440] sm:$0xff]  ;;  %v2614_v18 = vld [vmem:[%s5194_s13 + $0x4d0] sm:$0xff] }
 0x7a9   : > { %v2629_v16 = vld [vmem:[%s5194_s13 + $0x548] sm:$0xff]  ;;  %v2646_v20 = vld [vmem:[%s5194_s13 + $0x5d0] sm:$0xff] }
 0x7aa   : > { %3644 = vmatpush3.bf16.msra.mxu0 %v2013_v25  ;;  %3666 = vmatpush3.bf16.msra.mxu1 %v2029_v21  ;;  %v2621_v25 = vld [vmem:[%s5194_s13 + $0x508] sm:$0xff]  ;;  %v2606_v21 = vld [vmem:[%s5194_s13 + $0x490] sm:$0xff] }
 0x7ab   : > { %3645 = vmatprep.subr.bf16.mxu0 %v2022_v28  ;;  %3667 = vmatprep.subr.bf16.mxu1 %v2038_v29  ;;  %v2668_v26 = vpack.c.bf16 %v2621_v25, %v2620_v24  ;;  %v2638_v28 = vld [vmem:[%s5194_s13 + $0x590] sm:$0xff]  ;;  %v2639_v29 = vld [vmem:[%s5194_s13 + $0x598] sm:$0xff]  ;;  %v2661_v32 = vpack.c.bf16 %v2607_v27, %v2606_v21 }
 0x7ac   : > { %v2677_v33 = vpack.c.bf16 %v2639_v29, %v2638_v28  ;;  %v2598_v24 = vld [vmem:[%s5194_s13 + $0x450] sm:$0xff]  ;;  %v2599_v25 = vld [vmem:[%s5194_s13 + $0x458] sm:$0xff] }
 0x7ad   : > { %v2630_v27 = vld [vmem:[%s5194_s13 + $0x550] sm:$0xff]  ;;  %v2631_v28 = vld [vmem:[%s5194_s13 + $0x558] sm:$0xff] }
 0x7ae   : > { %3646 = vmatpush3.bf16.msra.mxu0 %v2014_v43  ;;  %3668 = vmatpush3.bf16.msra.mxu1 %v2030_v44  ;;  %v2623_v43 = vld [vmem:[%s5194_s13 + $0x518] sm:$0xff]  ;;  %v2608_v44 = vld [vmem:[%s5194_s13 + $0x4a0] sm:$0xff]  ;;  %v2673_v29 = vpack.c.bf16 %v2631_v28, %v2630_v27  ;;  %v2634_v56 = vld [vmem:[%s5194_s13 + $0x570] sm:$0xff] }
 0x7af   : > { %3647 = vmatprep.subr.bf16.mxu0 %v2023_v47  ;;  %3669 = vmatprep.subr.bf16.mxu1 %v2039_v48  ;;  %v2669_v46 = vpack.c.bf16 %v2623_v43, %v2622_v40  ;;  %v2662_v47 = vpack.c.bf16 %v2609_v45, %v2608_v44  ;;  %v2640_v48 = vld [vmem:[%s5194_s13 + $0x5a0] sm:$0xff]  ;;  %v2649_v40 = vld [vmem:[%s5194_s13 + $0x5e8] sm:$0xff] }
 0x7b0   : > { %v2678_v49 = vpack.c.bf16 %v2641_v38, %v2640_v48  ;;  %v2601_v43 = vld [vmem:[%s5194_s13 + $0x468] sm:$0xff]  ;;  %v2682_v44 = vpack.c.bf16 %v2649_v40, %v2648_v34  ;;  %v2618_v38 = vld [vmem:[%s5194_s13 + $0x4f0] sm:$0xff] }
 0x7b2   : > { %3648 = vmatpush3.bf16.msra.mxu0 %v2015_v53  ;;  %3670 = vmatpush3.bf16.msra.mxu1 %v2031_v54  ;;  %v2654_v53 = vpack.c.bf16 %v2593_v50, %v2592_v39  ;;  %v2610_v54 = vld [vmem:[%s5194_s13 + $0x4b0] sm:$0xff]  ;;  %v2619_v39 = vld [vmem:[%s5194_s13 + $0x4f8] sm:$0xff] }
 0x7b3   : > { %2490 = vmatprep.subr.bf16.mxu0 %v2461_v57  ;;  %2533 = vmatprep.subr.bf16.mxu1 %v2463_v58  ;;  %v2670_v57 = vpack.c.bf16 %v2625_v52, %v2624_v51  ;;  %v2663_v58 = vpack.c.bf16 %v2611_v55, %v2610_v54  ;;  %v2667_v50 = vpack.c.bf16 %v2619_v39, %v2618_v38  ;;  %v2651_v51 = vld [vmem:[%s5194_s13 + $0x5f8] sm:$0xff]  ;;  %v2602_v52 = vld [vmem:[%s5194_s13 + $0x470] sm:$0xff] }
 0x7b5   : > { %2395 = vmatmul.mubr.bf16.vlgmr.msra.gmra.mrb[24].mxu0 %v5439_v36  ;;  %2436 = vmatmul.mubr.bf16.vlgmr.msra.gmra.mrb[24].mxu1 %v5441_v37  ;;  %v2604_v36 = vld [vmem:[%s5194_s13 + $0x480] sm:$0xff]  ;;  %v2605_v37 = vld [vmem:[%s5194_s13 + $0x488] sm:$0xff] }
 0x7b6   : > { %2491 = vmatpush1.bf16.msra.mxu0 %v2460_v7  ;;  %2534 = vmatpush1.bf16.msra.mxu1 %v2462_v31  ;;  %v2660_v17 = vpack.c.bf16 %v2605_v37, %v2604_v36  ;;  %v2627_v7 = vld [vmem:[%s5194_s13 + $0x538] sm:$0xff]  ;;  %v2628_v37 = vld [vmem:[%s5194_s13 + $0x540] sm:$0xff] }
 0x7b7   : > { %2492 = vmatprep.subr.bf16.mxu0 %v2465_v9  ;;  %2535 = vmatprep.subr.bf16.mxu1 %v2467_v10  ;;  %v2671_v31 = vpack.c.bf16 %v2627_v7, %v2626_v5  ;;  %v2613_v9 = vld [vmem:[%s5194_s13 + $0x4c8] sm:$0xff]  ;;  %v2644_v10 = vld [vmem:[%s5194_s13 + $0x5c0] sm:$0xff]  ;;  %v2775_v5 = vld [vmem:[%s5190_s27 + $0xf8] sm:$0xff] }
 0x7b8   : > { %2522 = vmatprep.mubr.bf16.mxu0 %v4536_v41  ;;  %2565 = vmatprep.mubr.bf16.mxu1 %v4536_v41  ;;  %v2664_v11 = vpack.c.bf16 %v2613_v9, %v2612_v8 }
 0x7ba   : > { %2493 = vmatpush1.bf16.msra.mxu0 %v2464_v14  ;;  %2536 = vmatpush1.bf16.msra.mxu1 %v2466_v15  ;;  %v2597_v14 = vld [vmem:[%s5194_s13 + $0x448] sm:$0xff]  ;;  %v2680_v15 = vpack.c.bf16 %v2645_v12, %v2644_v10 }
 0x7bb   : > { %3677 = vmatprep.subr.bf16.mxu0 %v2660_v17  ;;  %3699 = vmatprep.subr.bf16.mxu1 %v2676_v22  ;;  %v2656_v36 = vpack.c.bf16 %v2597_v14, %v2596_v13  ;;  %v2672_v17 = vpack.c.bf16 %v2629_v16, %v2628_v37  ;;  %v2665_v22 = vpack.c.bf16 %v2615_v19, %v2614_v18 }
 0x7bd   : > { %3536 = vmatmul.mubr.msk.bf16.vlgmr.msra.gmra.mrb[28].mxu0 %vm1206_vm5, %v5339_v30  ;;  %3537 = vmatmul.mubr.msk.bf16.vlgmr.msra.gmra.mrb[28].mxu1 %vm1206_vm5, %v5339_v30 }
 0x7be   : > { %3678 = vmatpush3.bf16.msra.mxu0 %v2652_v23  ;;  %3700 = vmatpush3.bf16.msra.mxu1 %v2668_v26  ;;  %v2647_v23 = vld [vmem:[%s5194_s13 + $0x5d8] sm:$0xff]  ;;  %v2657_v26 = vpack.c.bf16 %v2599_v25, %v2598_v24 }
 0x7bf   : > { %3679 = vmatprep.subr.bf16.mxu0 %v2661_v32  ;;  %3701 = vmatprep.subr.bf16.mxu1 %v2677_v33  ;;  %v2681_v21 = vpack.c.bf16 %v2647_v23, %v2646_v20  ;;  %v2616_v32 = vld [vmem:[%s5194_s13 + $0x4e0] sm:$0xff]  ;;  %v2617_v33 = vld [vmem:[%s5194_s13 + $0x4e8] sm:$0xff] }
 0x7c0   : > { %v2666_v35 = vpack.c.bf16 %v2617_v33, %v2616_v32 }
 0x7c2   : > { %3680 = vmatpush3.bf16.msra.mxu0 %v2653_v42  ;;  %3702 = vmatpush3.bf16.msra.mxu1 %v2669_v46  ;;  %v2600_v42 = vld [vmem:[%s5194_s13 + $0x460] sm:$0xff] }
 0x7c3   : > { %3681 = vmatprep.subr.bf16.mxu0 %v2662_v47  ;;  %3703 = vmatprep.subr.bf16.mxu1 %v2678_v49  ;;  %v2658_v45 = vpack.c.bf16 %v2601_v43, %v2600_v42  ;;  %v2632_v46 = vld [vmem:[%s5194_s13 + $0x560] sm:$0xff]  ;;  %v2633_v47 = vld [vmem:[%s5194_s13 + $0x568] sm:$0xff]  ;;  %v2650_v49 = vld [vmem:[%s5194_s13 + $0x5f0] sm:$0xff] }
 0x7c4   : > { %v2674_v48 = vpack.c.bf16 %v2633_v47, %v2632_v46  ;;  %v2683_v54 = vpack.c.bf16 %v2651_v51, %v2650_v49 }
 0x7c6   : > { %3682 = vmatpush3.bf16.msra.mxu0 %v2654_v53  ;;  %3704 = vmatpush3.bf16.msra.mxu1 %v2670_v57  ;;  %v2603_v53 = vld [vmem:[%s5194_s13 + $0x478] sm:$0xff] }
 0x7c7   : > { %3683 = vmatprep.subr.bf16.mxu0 %v2663_v58  ;;  %3705 = vmatprep.subr.bf16.mxu1 %v2679_v0  ;;  %v2659_v55 = vpack.c.bf16 %v2603_v53, %v2602_v52  ;;  %v2635_v57 = vld [vmem:[%s5194_s13 + $0x578] sm:$0xff]  ;;  %v2773_v0 = vld [vmem:[%s5190_s27 + $0xe8] sm:$0xff] }
 0x7c8   : > { %v2675_v58 = vpack.c.bf16 %v2635_v57, %v2634_v56  ;;  %v2785_v4 = vpack.c.bf16 %v2773_v0, %v2769_v61 }
 0x7ca   : > { %3684 = vmatpush3.bf16.msra.mxu0 %v2655_v6  ;;  %3706 = vmatpush3.bf16.msra.mxu1 %v2671_v31  ;;  %v2787_v6 = vpack.c.bf16 %v2775_v5, %v2771_v3  ;;  %v2772_v3 = vld [vmem:[%s5190_s27 + $0xe0] sm:$0xff]  ;;  %v2774_v5 = vld [vmem:[%s5190_s27 + $0xf0] sm:$0xff] }
 0x7cb   : > { %3685 = vmatprep.subr.bf16.mxu0 %v2664_v11  ;;  %3707 = vmatprep.subr.bf16.mxu1 %v2680_v15 }
 0x7ce   : > { %3686 = vmatpush3.bf16.msra.mxu0 %v2656_v36  ;;  %3708 = vmatpush3.bf16.msra.mxu1 %v2672_v17 }
 0x7cf   : > { %3687 = vmatprep.subr.bf16.mxu0 %v2665_v22  ;;  %3709 = vmatprep.subr.bf16.mxu1 %v2681_v21 }
 0x7d2   : > { %3688 = vmatpush3.bf16.msra.mxu0 %v2657_v26  ;;  %3710 = vmatpush3.bf16.msra.mxu1 %v2673_v29  ;;  %v2468_v26 = vld [vmem:[%s5192_s26 + $0x8] sm:$0xf] }
 0x7d3   : > { %3689 = vmatprep.subr.bf16.mxu0 %v2666_v35  ;;  %3711 = vmatprep.subr.bf16.mxu1 %v2682_v44  ;;  %v2473_v34 = vrot.slane %v2468_v26, %v5421_v59  ;;  %v2481_v35 = vrot.slane %v2468_v26, %v5423_v60  ;;  %v2477_v43 = vrot.slane %v2468_v26, %v5426_v62 }
 0x7d4   : > { %v2485_v44 = vrot.slane %v2468_v26, %v5428_v63  ;;  %v2782_v26 = vld [vmem:[%s5190_s27 + $0x1f0] sm:$0xff] }
 0x7d6   : > { %3690 = vmatpush3.bf16.msra.mxu0 %v2658_v45  ;;  %3712 = vmatpush3.bf16.msra.mxu1 %v2674_v48 }
 0x7d7   : > { %3691 = vmatprep.subr.bf16.mxu0 %v2667_v50  ;;  %3713 = vmatprep.subr.bf16.mxu1 %v2683_v54 }
 0x7da   : > { %3692 = vmatpush3.bf16.msra.mxu0 %v2659_v55  ;;  %3714 = vmatpush3.bf16.msra.mxu1 %v2675_v58  ;;  %v2768_v58 = vld [vmem:[%s5190_s27 + $0x60] sm:$0xff] }
 0x7db   : > { %2814 = vmatprep.subr.bf16.mxu0 %v2785_v4  ;;  %2857 = vmatprep.subr.bf16.mxu1 %v2787_v6  ;;  %v2770_v4 = vld [vmem:[%s5190_s27 + $0x70] sm:$0xff] }
 0x868   : > { %v3605_v7 = vpop.f32.mrb[20].mxu0  ;;  %v3627_v31 = vpop.f32.mrb[20].mxu1 }
 0x869   : > { %v3606_v8 = vpop.f32.mrb[21].mxu0  ;;  %v3628_v9 = vpop.f32.mrb[21].mxu1 }
 0x86a   : > { %v3607_v10 = vadd.f32 %v3606_v8, %v3605_v7  ;;  %v3629_v11 = vadd.f32 %v3628_v9, %v3627_v31  ;;  %v3608_v12 = vpop.f32.mrb[22].mxu0  ;;  %v3630_v13 = vpop.f32.mrb[22].mxu1  ;;  %v2777_v9 = vld [vmem:[%s5190_s27 + $0x168] sm:$0xff] }
 0x86b   : > { %v3609_v14 = vpop.f32.mrb[23].mxu0  ;;  %v3631_v15 = vpop.f32.mrb[23].mxu1 }
 0x86c   : > { %v2356_v36 = vadd.f32 %v3629_v11, %v3607_v10  ;;  %v3610_v37 = vadd.f32 %v3609_v14, %v3608_v12  ;;  %v3632_v16 = vadd.f32 %v3631_v15, %v3630_v13  ;;  %v2781_v10 = vld [vmem:[%s5190_s27 + $0x1e8] sm:$0xff]  ;;  %v2779_v15 = vld [vmem:[%s5190_s27 + $0x178] sm:$0xff] }
 0x86e   : > { %v2359_v17 = vadd.f32 %v3632_v16, %v3610_v37 }
 0x888   : > { %v3649_v18 = vpop.f32.mrb[24].mxu0  ;;  %v3671_v19 = vpop.f32.mrb[24].mxu1 }
 0x889   : > { %v3650_v20 = vpop.f32.mrb[25].mxu0  ;;  %v3672_v22 = vpop.f32.mrb[25].mxu1 }
 0x88a   : > { %v3651_v23 = vadd.f32 %v3650_v20, %v3649_v18  ;;  %v3673_v24 = vadd.f32 %v3672_v22, %v3671_v19  ;;  %v3652_v25 = vpop.f32.mrb[26].mxu0  ;;  %v3674_v21 = vpop.f32.mrb[26].mxu1  ;;  %v2784_v19 = vpack.c.bf16 %v2772_v3, %v2768_v58  ;;  %v2786_v20 = vpack.c.bf16 %v2774_v5, %v2770_v4  ;;  %v2776_v22 = vld [vmem:[%s5190_s27 + $0x160] sm:$0xff]  ;;  %v2933_v58 = vld [vmem:[%s5194_s13 + $0x6a8] sm:$0xff] }
 0x88b   : > { %v3653_v27 = vpop.f32.mrb[27].mxu0  ;;  %v3675_v28 = vpop.f32.mrb[27].mxu1  ;;  %v2916_v5 = vld [vmem:[%s5194_s13 + $0x620] sm:$0xff] }
 0x88c   : > { %v2397_v29 = vadd.f32 %v3651_v23, %v2356_v36  ;;  %v3654_v32 = vadd.f32 %v3653_v27, %v3652_v25  ;;  %v3676_v33 = vadd.f32 %v3675_v28, %v3674_v21  ;;  %v2783_v36 = vld [vmem:[%s5190_s27 + $0x1f8] sm:$0xff]  ;;  %v2780_v23 = vld [vmem:[%s5190_s27 + $0x1e0] sm:$0xff]  ;;  %v2778_v21 = vld [vmem:[%s5190_s27 + $0x170] sm:$0xff] }
 0x88d   : > { %v2791_v25 = vpack.c.bf16 %v2783_v36, %v2779_v15  ;;  %v2928_v27 = vld [vmem:[%s5194_s13 + $0x680] sm:$0xff]  ;;  %v2929_v28 = vld [vmem:[%s5194_s13 + $0x688] sm:$0xff] }
 0x88e   : > { %v5598_v40 = vadd.f32 %v3673_v24, %v2397_v29  ;;  %v2400_v42 = vadd.f32 %v3654_v32, %v2359_v17  ;;  %v2789_v24 = vpack.c.bf16 %v2781_v10, %v2777_v9  ;;  %v2960_v29 = vld [vmem:[%s5194_s13 + $0x780] sm:$0xff]  ;;  %v2961_v32 = vld [vmem:[%s5194_s13 + $0x788] sm:$0xff]  ;;  %v2934_v10 = vld [vmem:[%s5194_s13 + $0x6b0] sm:$0xff] }
 0x88f   : > { %v2949_v9 = vld [vmem:[%s5194_s13 + $0x728] sm:$0xff] }
 0x890   : > { %v5602_v45 = vadd.f32 %v3676_v33, %v2400_v42  ;;  %v2524_v46 = vpop.f32.mrb[28].mxu0  ;;  %v2567_v47 = vpop.f32.mrb[28].mxu1  ;;  %v2788_v33 = vpack.c.bf16 %v2780_v23, %v2776_v22  ;;  %v2913_v42 = vld [vmem:[%s5194_s13 + $0x608] sm:$0xff]  ;;  %v2936_v22 = vld [vmem:[%s5194_s13 + $0x6c0] sm:$0xff] }
 0x891   : > { %v2525_v48 = vadd.f32 %v2524_v46, %v2473_v34  ;;  %v2568_v38 = vadd.f32 %v2567_v47, %v2481_v35  ;;  %v2526_v39 = vpop.f32.mrb[29].mxu0  ;;  %v2569_v49 = vpop.f32.mrb[29].mxu1  ;;  %v2944_v46 = vld [vmem:[%s5194_s13 + $0x700] sm:$0xff]  ;;  %v2945_v47 = vld [vmem:[%s5194_s13 + $0x708] sm:$0xff] }
 0x892   : > { %v2527_v50 = vadd.f32 %v2526_v39, %v2477_v43  ;;  %v2570_v51 = vadd.f32 %v2569_v49, %v2485_v44  ;;  %v2528_v52 = vpop.f32.mrb[30].mxu0  ;;  %v2571_v53 = vpop.f32.mrb[30].mxu1  ;;  %v2962_v39 = vld [vmem:[%s5194_s13 + $0x790] sm:$0xff]  ;;  %v2963_v49 = vld [vmem:[%s5194_s13 + $0x798] sm:$0xff]  ;;  %v2937_v23 = vld [vmem:[%s5194_s13 + $0x6c8] sm:$0xff] }
 0x893   : > { %v2529_v54 = vadd.f32 %v2528_v52, %v2473_v34  ;;  %v2572_v55 = vadd.f32 %v2571_v53, %v2481_v35  ;;  %v2530_v56 = vpop.f32.mrb[31].mxu0  ;;  %v2573_v57 = vpop.f32.mrb[31].mxu1  ;;  %v2576_v6 = vmax.f32 %v2525_v48, 0.0  ;;  %v2578_v7 = vmax.f32 %v2568_v38, 0.0  ;;  %v2912_v35 = vld [vmem:[%s5194_s13 + $0x600] sm:$0xff]  ;;  %v2930_v48 = vld [vmem:[%s5194_s13 + $0x690] sm:$0xff] }
 0x894   : > { %v2531_v61 = vadd.f32 %v2530_v56, %v2477_v43  ;;  %v2574_v0 = vadd.f32 %v2573_v57, %v2485_v44  ;;  %v2577_v11 = vmax.f32 %v2527_v50, 0.0  ;;  %v2579_v12 = vmax.f32 %v2570_v51, 0.0  ;;  %v2931_v38 = vld [vmem:[%s5194_s13 + $0x698] sm:$0xff]  ;;  %v2914_v52 = vld [vmem:[%s5194_s13 + $0x610] sm:$0xff]  ;;  %v2932_v57 = vld [vmem:[%s5194_s13 + $0x6a0] sm:$0xff] }
 0x895   : > { %v2580_v31 = vmax.f32 %v2529_v54, 0.0  ;;  %v2582_v8 = vmax.f32 %v2572_v55, 0.0  ;;  %v2790_v34 = vpack.c.bf16 %v2782_v26, %v2778_v21  ;;  %v2984_v43 = vpack.c.bf16 %v2929_v28, %v2928_v27  ;;  %v2915_v53 = vld [vmem:[%s5194_s13 + $0x618] sm:$0xff]  ;;  %v2969_v21 = vld [vmem:[%s5194_s13 + $0x7c8] sm:$0xff]  ;;  %v2920_v26 = vld [vmem:[%s5194_s13 + $0x640] sm:$0xff] }
 0x896   : > { %v2581_v13 = vmax.f32 %v2531_v61, 0.0  ;;  %v2583_v14 = vmax.f32 %v2574_v0, 0.0  ;;  %v3000_v44 = vpack.c.bf16 %v2961_v32, %v2960_v29  ;;  %v2976_v50 = vpack.c.bf16 %v2913_v42, %v2912_v35  ;;  %v2947_v56 = vld [vmem:[%s5194_s13 + $0x718] sm:$0xff]  ;;  %v2964_v61 = vld [vmem:[%s5194_s13 + $0x7a0] sm:$0xff]  ;;  %v2965_v0 = vld [vmem:[%s5194_s13 + $0x7a8] sm:$0xff] }
 0x897   : > { %v2584_v37 = vpack.c.bf16 %v2580_v31, %v2576_v6  ;;  %v2586_v16 = vpack.c.bf16 %v2582_v8, %v2578_v7  ;;  %v2992_v51 = vpack.c.bf16 %v2945_v47, %v2944_v46  ;;  %v2985_v54 = vpack.c.bf16 %v2931_v38, %v2930_v48  ;;  %v2917_v6 = vld [vmem:[%s5194_s13 + $0x628] sm:$0xff]  ;;  %v2948_v8 = vld [vmem:[%s5194_s13 + $0x720] sm:$0xff]  ;;  %v2938_v35 = vld [vmem:[%s5194_s13 + $0x6d0] sm:$0xff] }
 0x898   : > { %v2585_v17 = vpack.c.bf16 %v2581_v13, %v2577_v11  ;;  %v2587_v18 = vpack.c.bf16 %v2583_v14, %v2579_v12  ;;  %v3001_v55 = vpack.c.bf16 %v2963_v49, %v2962_v39  ;;  %v2977_v3 = vpack.c.bf16 %v2915_v53, %v2914_v52  ;;  %v2935_v11 = vld [vmem:[%s5194_s13 + $0x6b8] sm:$0xff]  ;;  %v2966_v12 = vld [vmem:[%s5194_s13 + $0x7b0] sm:$0xff]  ;;  %v2921_v27 = vld [vmem:[%s5194_s13 + $0x648] sm:$0xff] }
 0x899   : > { %v2986_v7 = vpack.c.bf16 %v2933_v58, %v2932_v57  ;;  %v3002_v31 = vpack.c.bf16 %v2965_v0, %v2964_v61  ;;  %v2978_v13 = vpack.c.bf16 %v2917_v6, %v2916_v5  ;;  %v2994_v14 = vpack.c.bf16 %v2949_v9, %v2948_v8  ;;  %v2952_v32 = vld [vmem:[%s5194_s13 + $0x740] sm:$0xff]  ;;  %v2939_v42 = vld [vmem:[%s5194_s13 + $0x6d8] sm:$0xff]  ;;  %v2922_v47 = vld [vmem:[%s5194_s13 + $0x650] sm:$0xff] }
 0x89a   : > { %2716 = vmatprep.mubr.bf16.mxu0 %v2585_v17  ;;  %2757 = vmatprep.mubr.bf16.mxu1 %v2587_v18  ;;  %v2987_v15 = vpack.c.bf16 %v2935_v11, %v2934_v10  ;;  %v2950_v17 = vld [vmem:[%s5194_s13 + $0x730] sm:$0xff]  ;;  %v2980_v29 = vpack.c.bf16 %v2921_v27, %v2920_v26  ;;  %v2971_v46 = vld [vmem:[%s5194_s13 + $0x7d8] sm:$0xff]  ;;  %v2940_v52 = vld [vmem:[%s5194_s13 + $0x6e0] sm:$0xff] }
 0x89b   : > { %2717 = vmatmul.mubr.bf16.vlgmr.msra.gmra.mrb[32].mxu0 %v2584_v37  ;;  %2758 = vmatmul.mubr.bf16.vlgmr.msra.gmra.mrb[32].mxu1 %v2586_v16  ;;  %v2918_v37 = vld [vmem:[%s5194_s13 + $0x630] sm:$0xff]  ;;  %v2919_v16 = vld [vmem:[%s5194_s13 + $0x638] sm:$0xff]  ;;  %v2941_v53 = vld [vmem:[%s5194_s13 + $0x6e8] sm:$0xff] }
 0x89c   : > { %2815 = vmatpush1.bf16.msra.mxu0 %v2784_v19  ;;  %2858 = vmatpush1.bf16.msra.mxu1 %v2786_v20  ;;  %v2979_v18 = vpack.c.bf16 %v2919_v16, %v2918_v37  ;;  %v2951_v19 = vld [vmem:[%s5194_s13 + $0x738] sm:$0xff]  ;;  %v2954_v49 = vld [vmem:[%s5194_s13 + $0x750] sm:$0xff]  ;;  %v2925_v57 = vld [vmem:[%s5194_s13 + $0x668] sm:$0xff] }
 0x89d   : > { %2816 = vmatprep.subr.bf16.mxu0 %v2789_v24  ;;  %2859 = vmatprep.subr.bf16.mxu1 %v2791_v25  ;;  %v2995_v20 = vpack.c.bf16 %v2951_v19, %v2950_v17  ;;  %v2968_v24 = vld [vmem:[%s5194_s13 + $0x7c0] sm:$0xff]  ;;  %v2988_v25 = vpack.c.bf16 %v2937_v23, %v2936_v22  ;;  %v2923_v48 = vld [vmem:[%s5194_s13 + $0x658] sm:$0xff]  ;;  %v2942_v5 = vld [vmem:[%s5194_s13 + $0x6f0] sm:$0xff] }
 0x89e   : > { %2846 = vmatprep.mubr.bf16.mxu0 %v4536_v41  ;;  %2889 = vmatprep.mubr.bf16.mxu1 %v4536_v41  ;;  %v2946_v41 = vld [vmem:[%s5194_s13 + $0x710] sm:$0xff]  ;;  %v3004_v28 = vpack.c.bf16 %v2969_v21, %v2968_v24  ;;  %v2981_v39 = vpack.c.bf16 %v2923_v48, %v2922_v47  ;;  %v2956_v0 = vld [vmem:[%s5194_s13 + $0x760] sm:$0xff]  ;;  %v2943_v6 = vld [vmem:[%s5194_s13 + $0x6f8] sm:$0xff] }
 0x89f   : > { %v2993_v4 = vpack.c.bf16 %v2947_v56, %v2946_v41  ;;  %v2973_v41 = vld [vmem:[%s5194_s13 + $0x7e8] sm:$0xff]  ;;  %v2924_v56 = vld [vmem:[%s5194_s13 + $0x660] sm:$0xff]  ;;  %v2975_v8 = vld [vmem:[%s5194_s13 + $0x7f8] sm:$0xff] }
 0x8a0   : > { %2817 = vmatpush1.bf16.msra.mxu0 %v2788_v33  ;;  %2860 = vmatpush1.bf16.msra.mxu1 %v2790_v34  ;;  %v2953_v33 = vld [vmem:[%s5194_s13 + $0x748] sm:$0xff]  ;;  %v2982_v61 = vpack.c.bf16 %v2925_v57, %v2924_v56  ;;  %v2926_v9 = vld [vmem:[%s5194_s13 + $0x670] sm:$0xff]  ;;  %v2927_v10 = vld [vmem:[%s5194_s13 + $0x678] sm:$0xff] }
 0x8a1   : > { %3721 = vmatprep.subr.bf16.mxu0 %v2984_v43  ;;  %3743 = vmatprep.subr.bf16.mxu1 %v3000_v44  ;;  %v2996_v34 = vpack.c.bf16 %v2953_v33, %v2952_v32  ;;  %v2970_v43 = vld [vmem:[%s5194_s13 + $0x7d0] sm:$0xff]  ;;  %v2989_v44 = vpack.c.bf16 %v2939_v42, %v2938_v35  ;;  %v2792_v22 = vld [vmem:[%s5192_s26 + $0xc] sm:$0xf] }
 0x8a2   : > { %v3005_v38 = vpack.c.bf16 %v2971_v46, %v2970_v43  ;;  %v2797_v27 = vrot.slane %v2792_v22, %v5421_v59  ;;  %v2801_v33 = vrot.slane %v2792_v22, %v5426_v62 }
 0x8a3   : > { %3538 = vmatmul.mubr.msk.bf16.vlgmr.msra.gmra.mrb[36].mxu0 %vm1206_vm5, %v5339_v30  ;;  %3539 = vmatmul.mubr.msk.bf16.vlgmr.msra.gmra.mrb[36].mxu1 %vm1206_vm5, %v5339_v30  ;;  %v2967_v30 = vld [vmem:[%s5194_s13 + $0x7b8] sm:$0xff] }
 0x8a4   : > { %3722 = vmatpush3.bf16.msra.mxu0 %v2976_v50  ;;  %3744 = vmatpush3.bf16.msra.mxu1 %v2992_v51  ;;  %v3003_v36 = vpack.c.bf16 %v2967_v30, %v2966_v12  ;;  %v2955_v50 = vld [vmem:[%s5194_s13 + $0x758] sm:$0xff]  ;;  %v2983_v12 = vpack.c.bf16 %v2927_v10, %v2926_v9  ;;  %v2958_v30 = vld [vmem:[%s5194_s13 + $0x770] sm:$0xff] }
 0x8a5   : > { %3723 = vmatprep.subr.bf16.mxu0 %v2985_v54  ;;  %3745 = vmatprep.subr.bf16.mxu1 %v3001_v55  ;;  %v2997_v51 = vpack.c.bf16 %v2955_v50, %v2954_v49  ;;  %v2972_v54 = vld [vmem:[%s5194_s13 + $0x7e0] sm:$0xff]  ;;  %v2990_v55 = vpack.c.bf16 %v2941_v53, %v2940_v52 }
 0x8a6   : > { %v3006_v58 = vpack.c.bf16 %v2973_v41, %v2972_v54 }
 0x8a8   : > { %3724 = vmatpush3.bf16.msra.mxu0 %v2977_v3  ;;  %3746 = vmatpush3.bf16.msra.mxu1 %v2993_v4  ;;  %v2957_v3 = vld [vmem:[%s5194_s13 + $0x768] sm:$0xff] }
 0x8a9   : > { %3725 = vmatprep.subr.bf16.mxu0 %v2986_v7  ;;  %3747 = vmatprep.subr.bf16.mxu1 %v3002_v31  ;;  %v2998_v4 = vpack.c.bf16 %v2957_v3, %v2956_v0  ;;  %v2974_v7 = vld [vmem:[%s5194_s13 + $0x7f0] sm:$0xff]  ;;  %v2991_v31 = vpack.c.bf16 %v2943_v6, %v2942_v5 }
 0x8aa   : > { %v3007_v11 = vpack.c.bf16 %v2975_v8, %v2974_v7 }
 0x8ac   : > { %3726 = vmatpush3.bf16.msra.mxu0 %v2978_v13  ;;  %3748 = vmatpush3.bf16.msra.mxu1 %v2994_v14  ;;  %v2959_v13 = vld [vmem:[%s5194_s13 + $0x778] sm:$0xff] }
 0x8ad   : > { %3727 = vmatprep.subr.bf16.mxu0 %v2987_v15  ;;  %3749 = vmatprep.subr.bf16.mxu1 %v3003_v36  ;;  %v2999_v14 = vpack.c.bf16 %v2959_v13, %v2958_v30 }
 0x8b0   : > { %3728 = vmatpush3.bf16.msra.mxu0 %v2979_v18  ;;  %3750 = vmatpush3.bf16.msra.mxu1 %v2995_v20 }
 0x8b1   : > { %3729 = vmatprep.subr.bf16.mxu0 %v2988_v25  ;;  %3751 = vmatprep.subr.bf16.mxu1 %v3004_v28  ;;  %v2805_v28 = vrot.slane %v2792_v22, %v5423_v60 }
 0x8b4   : > { %3730 = vmatpush3.bf16.msra.mxu0 %v2980_v29  ;;  %3752 = vmatpush3.bf16.msra.mxu1 %v2996_v34  ;;  %v2809_v34 = vrot.slane %v2792_v22, %v5428_v63 }
 0x8b5   : > { %3731 = vmatprep.subr.bf16.mxu0 %v2989_v44  ;;  %3753 = vmatprep.subr.bf16.mxu1 %v3005_v38 }
 0x8b8   : > { %3732 = vmatpush3.bf16.msra.mxu0 %v2981_v39  ;;  %3754 = vmatpush3.bf16.msra.mxu1 %v2997_v51 }
 0x8b9   : > { %3733 = vmatprep.subr.bf16.mxu0 %v2990_v55  ;;  %3755 = vmatprep.subr.bf16.mxu1 %v3006_v58 }
 0x8bc   : > { %3734 = vmatpush3.bf16.msra.mxu0 %v2982_v61  ;;  %3756 = vmatpush3.bf16.msra.mxu1 %v2998_v4 }
 0x8bd   : > { %3735 = vmatprep.subr.bf16.mxu0 %v2991_v31  ;;  %3757 = vmatprep.subr.bf16.mxu1 %v3007_v11 }
 0x8c0   : > { %3736 = vmatpush3.bf16.msra.mxu0 %v2983_v12  ;;  %3758 = vmatpush3.bf16.msra.mxu1 %v2999_v14 }
 0x96e   : > { %v3693_v15 = vpop.f32.mrb[32].mxu0  ;;  %v3715_v36 = vpop.f32.mrb[32].mxu1 }
 0x96f   : > { %v3694_v37 = vpop.f32.mrb[33].mxu0  ;;  %v3716_v16 = vpop.f32.mrb[33].mxu1 }
 0x970   : > { %v3695_v17 = vadd.f32 %v3694_v37, %v3693_v15  ;;  %v3717_v18 = vadd.f32 %v3716_v16, %v3715_v36  ;;  %v3696_v19 = vpop.f32.mrb[34].mxu0  ;;  %v3718_v20 = vpop.f32.mrb[34].mxu1  ;;  %v3540_v15 = vld [vmem:[%s989_s5] ss:$0 sm:$0xff] }
 0x971   : > { %v3697_v23 = vpop.f32.mrb[35].mxu0  ;;  %v3719_v24 = vpop.f32.mrb[35].mxu1 }
 0x972   : > { %v2760_v25 = vadd.f32 %v3717_v18, %v3695_v17  ;;  %v3698_v21 = vadd.f32 %v3697_v23, %v3696_v19  ;;  %v3720_v26 = vadd.f32 %v3719_v24, %v3718_v20 }
 0x974   : > { %v2766_v29 = vadd.f32 %v2760_v25, %v5598_v40  ;;  %v2763_v32 = vadd.f32 %v3720_v26, %v3698_v21 }
 0x976   : > { %v2767_v35 = vadd.f32 %v2763_v32, %v5602_v45  ;;  %v2848_v42 = vpop.f32.mrb[36].mxu0  ;;  %v2891_v43 = vpop.f32.mrb[36].mxu1 }
 0x977   : > { %v2849_v44 = vadd.f32 %v2848_v42, %v2797_v27  ;;  %v2892_v46 = vadd.f32 %v2891_v43, %v2805_v28  ;;  %v2850_v47 = vpop.f32.mrb[37].mxu0  ;;  %v2893_v48 = vpop.f32.mrb[37].mxu1 }
 0x978   : > { %v2851_v38 = vadd.f32 %v2850_v47, %v2801_v33  ;;  %v2894_v39 = vadd.f32 %v2893_v48, %v2809_v34  ;;  %v2852_v59 = vpop.f32.mrb[38].mxu0  ;;  %v2895_v49 = vpop.f32.mrb[38].mxu1  ;;  %v3541_v47 = vld [vmem:[%s1113_s19] ss:$0 sm:$0xff] }
 0x979   : > { %v2853_v60 = vadd.f32 %v2852_v59, %v2797_v27  ;;  %v2896_v50 = vadd.f32 %v2895_v49, %v2805_v28  ;;  %v2854_v40 = vpop.f32.mrb[39].mxu0  ;;  %v2897_v51 = vpop.f32.mrb[39].mxu1  ;;  %v2900_v53 = vmax.f32 %v2849_v44, 0.0  ;;  %v2902_v63 = vmax.f32 %v2892_v46, 0.0 }
 0x97a   : > { %v2855_v52 = vadd.f32 %v2854_v40, %v2801_v33  ;;  %v2898_v62 = vadd.f32 %v2897_v51, %v2809_v34  ;;  %v2901_v55 = vmax.f32 %v2851_v38, 0.0  ;;  %v2903_v41 = vmax.f32 %v2894_v39, 0.0  ;;  %v3542_v39 = vld [vmem:[%s1116_s10] ss:$0 sm:$0xff] }
 0x97b   : > { %v2904_v54 = vmax.f32 %v2853_v60, 0.0  ;;  %v2906_v45 = vmax.f32 %v2896_v50, 0.0 }
 0x97c   : > { %v2905_v56 = vmax.f32 %v2855_v52, 0.0  ;;  %v2907_v57 = vmax.f32 %v2898_v62, 0.0 }
 0x97d   : > { %v2908_v58 = vpack.c.bf16 %v2904_v54, %v2900_v53  ;;  %v2910_v61 = vpack.c.bf16 %v2906_v45, %v2902_v63 }
 0x97e   : > { %v2909_v0 = vpack.c.bf16 %v2905_v56, %v2901_v55  ;;  %v2911_v3 = vpack.c.bf16 %v2907_v57, %v2903_v41 }
 0x980   : > { %3040 = vmatprep.mubr.bf16.mxu0 %v2909_v0  ;;  %3081 = vmatprep.mubr.bf16.mxu1 %v2911_v3 }
 0x981   : > { %3041 = vmatmul.mubr.bf16.vlgmr.msra.gmra.mrb[40].mxu0 %v2908_v58  ;;  %3082 = vmatmul.mubr.bf16.vlgmr.msra.gmra.mrb[40].mxu1 %v2910_v61 }
 0xa54   : > { %v3737_v4 = vpop.f32.mrb[40].mxu0  ;;  %v3759_v5 = vpop.f32.mrb[40].mxu1 }
 0xa55   : > { %v3738_v6 = vpop.f32.mrb[41].mxu0  ;;  %v3760_v7 = vpop.f32.mrb[41].mxu1 }
 0xa56   : > { %v3739_v31 = vadd.f32 %v3738_v6, %v3737_v4  ;;  %v3761_v8 = vadd.f32 %v3760_v7, %v3759_v5  ;;  %v3740_v9 = vpop.f32.mrb[42].mxu0  ;;  %v3762_v10 = vpop.f32.mrb[42].mxu1 }
 0xa57   : > { %v3741_v11 = vpop.f32.mrb[43].mxu0  ;;  %v3763_v12 = vpop.f32.mrb[43].mxu1 }
 0xa58   : > { %v3084_v30 = vadd.f32 %v3761_v8, %v3739_v31  ;;  %v3742_v13 = vadd.f32 %v3741_v11, %v3740_v9  ;;  %v3764_v14 = vadd.f32 %v3763_v12, %v3762_v10 }
 0xa5a   : > { %v3090_v36 = vadd.f32 %v3084_v30, %v2766_v29  ;;  %v3087_v37 = vadd.f32 %v3764_v14, %v3742_v13 }
 0xa5c   : > { %v3091_v16 = vadd.f32 %v3087_v37, %v2767_v35  ;;  %v3099_v17 = vadd.f32 %v3540_v15, %v3090_v36 }
 0xa5e   : > { %v3101_v18 = vadd.f32 %v3099_v17, %v5331_v1  ;;  %v3100_v19 = vadd.f32 %v3540_v15, %v3091_v16 }
 0xa60   : > { %v3105_v20 = vsel %vm1206_vm5, %v3101_v18, 0.0  ;;  %v3102_v22 = vadd.f32 %v3100_v19, %v5333_v2 }
 0xa61   : > { %3106 = vadd.xlane.f32.xlu0 %v3105_v20 }
 0xa62   : > { %v3108_v23 = vsel %vm1206_vm5, %v3102_v22, 0.0 }
 0xa63   : > { %3109 = vadd.xlane.f32.xlu1 %v3108_v23 }
 0xaee   : > { %v3107_v24 = vpop.xlane.xlu0 %3106 }
 0xaef   : > { %v3111_v25 = vmul.f32 0.03125, %v3107_v24 }
 0xaf0   : > { %v3110_v21 = vpop.xlane.xlu1 %3109 }
 0xaf1   : > { %v3113_v26 = vsub.f32 %v3101_v18, %v3111_v25  ;;  %v3112_v27 = vmul.f32 0.03125, %v3110_v21 }
 0xaf3   : > { %v3114_v28 = vsub.f32 %v3102_v22, %v3112_v27  ;;  %v3115_v29 = vmul.f32 %v3113_v26, %v3113_v26 }
 0xaf5   : > { %v3117_v32 = vsel %vm1206_vm5, %v3115_v29, 0.0  ;;  %v3116_v1 = vmul.f32 %v3114_v28, %v3114_v28 }
 0xaf6   : > { %3118 = vadd.xlane.f32.xlu0 %v3117_v32 }
 0xaf7   : > { %v3120_v33 = vsel %vm1206_vm5, %v3116_v1, 0.0 }
 0xaf8   : > { %3121 = vadd.xlane.f32.xlu1 %v3120_v33 }
 0xb83   : > { %v3119_v2 = vpop.xlane.xlu0 %3118 }
 0xb84   : > { %v3123_v34 = vmul.f32 0.03125, %v3119_v2 }
 0xb85   : > { %v3122_v35 = vpop.xlane.xlu1 %3121 }
 0xb86   : > { %v3125_v42 = vadd.f32 1e-05, %v3123_v34  ;;  %v3124_v43 = vmul.f32 0.03125, %v3122_v35 }
 0xb88   : > { %4020 = vrsqrt.f32 %v3125_v42  ;;  %v3126_v44 = vadd.f32 1e-05, %v3124_v43 }
 0xb8a   : > { %4022 = vrsqrt.f32 %v3126_v44 }
 0xb92   : > { %v4021_v46 = vpop.eup %4020 }
 0xb93   : > { %v3129_v48 = vmul.f32 %v4021_v46, %v3113_v26 }
 0xb94   : > { %v4023_v38 = vpop.eup %4022 }
 0xb95   : > { %v3137_v59 = vmul.f32 %v3541_v47, %v3129_v48  ;;  %v3130_v49 = vmul.f32 %v4023_v38, %v3114_v28  ;;  %3152 = sbr.rel (%p3543_p1) target bundleno = 2972 (0xb9c), region = 168 }
 0xb97   : > { %v3145_v60 = vadd.f32 %v3542_v39, %v3137_v59  ;;  %v3138_v50 = vmul.f32 %v3541_v47, %v3130_v49 }
 0xb99   : > { %3147 = vst.msk [vmem:[#allocation2] sm:$0xff] %vm1206_vm5, %v3145_v60  ;;  %v3146_v40 = vadd.f32 %v3542_v39, %v3138_v50  ;;  %3153 = vst.msk [vmem:[#allocation20] sm:$0xff] (!%p3543_p1), %vm1206_vm5, %v3145_v60 }
 0xb9b   : > { %3148 = vst.msk [vmem:[#allocation2 + $0x8] sm:$0xff] %vm1206_vm5, %v3146_v40  ;;  %3154 = vst.msk [vmem:[#allocation20 + $0x8] sm:$0xff] (!%p3543_p1), %vm1206_vm5, %v3146_v40 }
 0xb9c PF: > { %s5891_s19 = sld [smem:[#allocation27_spill]]  ;;  %s4537_s10 = smov [#allocation20]  }
 0xb9d   : > { %s3161_s20 = sshll.u32 %s4537_s10, 4  ;;  %s3162_s20 = int_to_ptr.vmem [resolvable:$true] %s3161_s20 }
 0xb9e   : > { %s4440_s24 = scalar_lea.vmem %s3162_s20, 256  ;;  %p4447_p11 = scmp.lt.s32.totalorder %s3162_s20, %s3162_s20 }
 0xb9f   : > { %p4441_p8 = scmp.ne.s32.totalorder %s3162_s20, %s4440_s24  ;;  %p4448_p13 = scmp.lt.s32.totalorder %s4440_s24, %s4440_s24 }
 0xba1   : > { %p4449_p2 = por %p4448_p13, %p4447_p11 }
 0xba2   : > { %p3956_p5 = scmp.eq.s32.totalorder %s5891_s19, 1 }
 0xba4   : > { %p4442_p7 = pnand %p4441_p8, %p3956_p5 }
 0xba6   : > { %p4443_p9 = pneg %p4442_p7 }
 0xba8   : > { %p4450_p6 = pnand %p4449_p2, %p4443_p9 }
 0xbaa   : > { %4453 = shalt.err (!%p4450_p6)
}
 0xbab   : > { %s5892_s12 = sld [smem:[#allocation51_spill]] }
 0xbb1   : > { %s4454_s25 = scalar_lea.hbm %s5892_s12, 256 }
 0xbb2   : > { %p4455_p10 = scmp.ne.s32.totalorder %s5892_s12, %s4454_s25  ;;  %p4460_p12 = scmp.lt.u32.totalorder %s4454_s25, %s5892_s12 }
 0xbb4   : > { %p4456_p4 = pnand %p4455_p10, %p3956_p5 }
 0xbb6   : > { %p4457_p0 = pneg %p4456_p4 }
 0xbb8   : > { %p4462_p3 = pnand %p4460_p12, %p4457_p0 }
 0xbba   : > { %4465 = shalt.err (!%p4462_p3)
}
 0xbbb   : > { %s4538_s28 = smov 128   ;;  %s4539_s22 = smov 8  }
 0xbbc   : > { %3904 = dma.vmem_to_hbm [thread:$0]  (%p3956_p5), %s3162_s20, 256, %s5892_s12, [#allocation5], %s4538_s28, %s4538_s28, %s4539_s22  }
 0xbbd   : > { %4495 = dma.done.wait (%p3956_p5), [#allocation5], 256  }
 0xbbe   : > { %4497 = vsyncadd (%p3956_p5), [#allocation5], 4294967040 }
 0xbbf PF: > { %s5893_s27 = sld [smem:[#allocation28_spill]]  ;;  %s5894_s2 = sld [smem:[#allocation25_spill]] }
 0xbc0   : > { %s5895_s25 = sld [smem:[#allocation26_spill]]  ;;  %s5896_s26 = sld [smem:[#allocation29_spill]] }
 0xbc5   : > { %p31_p1 = scmp.ge.s32.totalorder %s5893_s27, 4  }
 0xbc7   :  { %33 = sbr.rel (!%p31_p1) target bundleno = 25 (0x19), region = 289 }
 0xbce   :  { %3177 = vsyncpa [#allocation4], 1 }
 0xbcf   :  { %3179 = vsyncpa [#allocation4 + $0x1], 1 }
 0xbd0   :  { %3180 = vsyncpa [#allocation7], 1 }
 0xbd1   :  { %3181 = vsyncpa [#allocation5], 1 }
 0xbd2   :  { %3183 = vsyncpa [#allocation5 + $0x1], 1 }

</bundles_post_ra>
